<compile_context>
chip_gen: v5e
topology: v5e:2x2
jax: 0.10.0
libtpu: 0.0.40
codegen_flags: <defaults>
</compile_context>

<pallas_src>
import math

import jax
import jax.numpy as jnp
from jax.experimental import pallas as pl
from jax.experimental.pallas import tpu as pltpu  # noqa: F401  (TPU backend)

# ---------------------------------------------------------------------------
# MANO-like constants
# ---------------------------------------------------------------------------
NUM_VERTS = 778
NUM_JOINTS = 16                       # 1 wrist + 15 finger joints
NUM_BETAS = 10
NUM_PCA = 45
POSE_FEAT = (NUM_JOINTS - 1) * 9      # 135

PARENTS = [-1, 0, 1, 2, 0, 4, 5, 0, 7, 8, 0, 10, 11, 0, 13, 14]


# ---------------------------------------------------------------------------
# Pallas kernels (gridless; whole arrays resident in VMEM — total < 1 MB)
# ---------------------------------------------------------------------------
def joints_kernel(betas_ref, shapedirs_ref, vtmpl_ref, jregT_ref, joints_ref):
    """Shape blend + joint regression, SoA (vertices on the lane axis).

      betas      : (1, 10)         f32
      shapedirs  : (3, 10, 778)    f32   shapedirs[coord, beta, vert]
      vtmpl      : (3, 778)        f32
      jregT      : (778, 16)       f32   J_regressor^T
      joints out : (3, 16)         f32   joints[coord, joint]
    """
    betas = betas_ref[...]
    for c in range(3):
        # v_shaped row c: (1,778) = template + betas @ shapedirs[c]
        vs_c = vtmpl_ref[c:c + 1, :] + jnp.dot(
            betas, shapedirs_ref[c], preferred_element_type=jnp.float32)
        # joints row c: (1,778) @ (778,16) -> (1,16)
        joints_ref[c:c + 1, :] = jnp.dot(
            vs_c, jregT_ref[...], preferred_element_type=jnp.float32)


def lbs_kernel(betas_ref, posefeat_ref, shapedirs_ref, posedirs_ref,
               vtmpl_ref, weightsT_ref, aflatT_ref, transl_ref, verts_ref):
    """Fused shape blend + pose blend + linear blend skinning + translation.

    SoA layout, vertices on the lane axis throughout:
      betas      : (1, 10)         f32
      posefeat   : (1, 135)        f32
      shapedirs  : (3, 10, 778)    f32
      posedirs   : (3, 135, 778)   bf16  (dominant tensor; halved HBM DMA)
      vtmpl      : (3, 778)        f32
      weightsT   : (16, 778)       f32   lbs_weights^T
      aflatT     : (16, 16)        f32   per-joint 4x4 transforms, entry-major
      transl     : (3, 1)          f32
      verts out  : (3, 778)        f32
    """
    betas = betas_ref[...]
    pf = posefeat_ref[...].astype(jnp.bfloat16)          # (1, 135) bf16

    # Per-vertex transform entries, vertices on lanes:
    # T[k, v] = sum_j A_flat[j, k] * weights[v, j]  ->  (16, 778)
    T = jnp.dot(aflatT_ref[...], weightsT_ref[...],
                preferred_element_type=jnp.float32)

    # v_posed rows (each (1, 778), lane dense)
    vp = []
    for c in range(3):
        vs_c = vtmpl_ref[c:c + 1, :] + jnp.dot(
            betas, shapedirs_ref[c], preferred_element_type=jnp.float32)
        vp_c = vs_c + jnp.dot(
            pf, posedirs_ref[c], preferred_element_type=jnp.float32)
        vp.append(vp_c)
    vx, vy, vz = vp

    transl = transl_ref[...]                             # (3, 1)
    for c in range(3):
        row = (T[4 * c + 0:4 * c + 1, :] * vx
               + T[4 * c + 1:4 * c + 2, :] * vy
               + T[4 * c + 2:4 * c + 3, :] * vz
               + T[4 * c + 3:4 * c + 4, :])
        # direct lane-dense row store (no concatenate / masked width-3 store)
        verts_ref[c:c + 1, :] = row + transl[c:c + 1, :]


# ---------------------------------------------------------------------------
# Pallas wrappers (no grid, no index_map: whole-array VMEM blocks)
# ---------------------------------------------------------------------------
def regress_joints(betas, shapedirs_soa, v_template_soa, jreg_T):
    return pl.pallas_call(
        joints_kernel,
        out_shape=jax.ShapeDtypeStruct((3, NUM_JOINTS), jnp.float32),
    )(betas, shapedirs_soa, v_template_soa, jreg_T)


def lbs(betas, pose_feature, shapedirs_soa, posedirs_soa, v_template_soa,
        weights_T, a_flat_T, transl_col):
    return pl.pallas_call(
        lbs_kernel,
        out_shape=jax.ShapeDtypeStruct((3, NUM_VERTS), jnp.float32),
    )(betas, pose_feature, shapedirs_soa, posedirs_soa, v_template_soa,
      weights_T, a_flat_T, transl_col)


# ---------------------------------------------------------------------------
# Plain-JAX glue (tiny per-joint math, runs inside the jit)
# ---------------------------------------------------------------------------
def batch_rodrigues(rot_vecs, eps=1e-8):
    """rot_vecs: (J, 3) axis-angle -> (J, 3, 3) rotation matrices.

    NOTE: eps is added to each component before squaring to match the SMPL-X
    reference implementation (slight axis bias near zero rotation; intended).
    """
    angle = jnp.sqrt(jnp.sum((rot_vecs + eps) ** 2, axis=1, keepdims=True))
    rot_dir = rot_vecs / angle
    cos = jnp.cos(angle)[..., None]
    sin = jnp.sin(angle)[..., None]
    rx, ry, rz = rot_dir[:, 0], rot_dir[:, 1], rot_dir[:, 2]
    zeros = jnp.zeros_like(rx)
    K = jnp.stack([zeros, -rz, ry,
                   rz, zeros, -rx,
                   -ry, rx, zeros], axis=1).reshape(-1, 3, 3)
    ident = jnp.eye(3, dtype=rot_vecs.dtype)[None]
    return ident + sin * K + (1.0 - cos) * jnp.matmul(K, K)


def rigid_transform(rot_mats, joints):
    """Global joint transforms relative to the rest pose. Returns (J, 16)."""
    parent_idx = jnp.array(PARENTS[1:], dtype=jnp.int32)
    rel_joints = jnp.concatenate(
        [joints[:1], joints[1:] - joints[parent_idx]], axis=0)         # (J,3)
    top = jnp.concatenate([rot_mats, rel_joints[:, :, None]], axis=2)  # (J,3,4)
    bottom = jnp.tile(jnp.array([[[0.0, 0.0, 0.0, 1.0]]], jnp.float32),
                      (NUM_JOINTS, 1, 1))
    T = jnp.concatenate([top, bottom], axis=1)                         # (J,4,4)

    # 15-step kinematic chain; unrolled under jit (static tree).
    mats = [T[0]]
    for i in range(1, NUM_JOINTS):
        mats.append(mats[PARENTS[i]] @ T[i])
    G = jnp.stack(mats, axis=0)                                        # (J,4,4)

    rot_j = jnp.einsum('jab,jb->ja', G[:, :3, :3], joints)
    A = G.at[:, :3, 3].add(-rot_j)
    return A.reshape(NUM_JOINTS, 16)


def init_mano_params(key):
    """Deterministic synthetic stand-ins for the MANO_RIGHT.pkl tensors,
    pre-laid-out in the SoA (coord-major, vertices-on-lanes) kernel layout."""
    ks = jax.random.split(key, 7)
    v_template = 0.1 * jax.random.normal(ks[0], (NUM_VERTS, 3), jnp.float32)
    shapedirs = 0.01 * jax.random.normal(ks[1], (NUM_VERTS, 3, NUM_BETAS),
                                         jnp.float32)
    posedirs = 0.001 * jax.random.normal(ks[2], (POSE_FEAT, NUM_VERTS, 3),
                                         jnp.float32)
    j_regressor = jax.nn.softmax(
        jax.random.normal(ks[3], (NUM_JOINTS, NUM_VERTS), jnp.float32), axis=1)
    lbs_weights = jax.nn.softmax(
        4.0 * jax.random.normal(ks[4], (NUM_VERTS, NUM_JOINTS), jnp.float32),
        axis=1)
    hand_components = 0.5 * jax.random.normal(ks[5], (NUM_PCA, 45), jnp.float32)
    hand_mean = 0.1 * jax.random.normal(ks[6], (45,), jnp.float32)
    return dict(
        v_template_soa=jnp.transpose(v_template, (1, 0)),              # (3,778)
        shapedirs_soa=jnp.transpose(shapedirs, (1, 2, 0)),             # (3,10,778)
        posedirs_soa=jnp.transpose(posedirs, (2, 0, 1)).astype(jnp.bfloat16),  # (3,135,778) bf16
        jreg_T=j_regressor.T,                                          # (778,16)
        weights_T=lbs_weights.T,                                       # (16,778)
        hand_components=hand_components,                               # (45,45)
        hand_mean=hand_mean,                                           # (45,)
    )


@jax.jit
def calibration_forward(shape, pose, global_orient, transl, params):
    """Equivalent of CalibrationModel.forward() up to sim_hist."""
    # PCA coeffs -> full 45-dim hand pose (flat_hand_mean=False -> add mean)
    full_hand_pose = pose @ params['hand_components'] + params['hand_mean']
    full_pose = jnp.concatenate([global_orient, full_hand_pose], axis=1)  # (1,48)

    rot_mats = batch_rodrigues(full_pose.reshape(NUM_JOINTS, 3))          # (16,3,3)
    pose_feature = (rot_mats[1:] -
                    jnp.eye(3, dtype=jnp.float32)).reshape(1, POSE_FEAT)  # (1,135)

    # --- Pallas kernel 1: shape blend + joint regression (SoA) ---
    joints_soa = regress_joints(shape, params['shapedirs_soa'],
                                params['v_template_soa'], params['jreg_T'])
    joints = joints_soa.T                                                 # (16,3)

    # Tiny sequential kinematic chain in JAX (inside jit)
    a_flat = rigid_transform(rot_mats, joints)                            # (16,16)

    # --- Pallas kernel 2: fused blend shapes + LBS + translation (SoA) ---
    verts_soa = lbs(shape, pose_feature, params['shapedirs_soa'],
                    params['posedirs_soa'], params['v_template_soa'],
                    params['weights_T'], a_flat.T, transl.reshape(3, 1))  # (3,778)

    # TODO(synk): sim_hist(vertices, mesh) is undefined in the reference code;
    # return posed vertices (the MANO forward output) instead.
    return verts_soa.T                                                    # (778,3)


if __name__ == "__main__":
    key = jax.random.PRNGKey(0)
    k_shape, k_pose, k_params = jax.random.split(key, 3)

    # nn.Parameter(shape): (1, 10) betas, nn.Parameter(pose): (1, 45) PCA comps
    shape = 0.1 * jax.random.normal(k_shape, (1, NUM_BETAS), jnp.float32)
    pose = 0.1 * jax.random.normal(k_pose, (1, NUM_PCA), jnp.float32)

    # global_orient = [0, pi/2, 0]; transl = [-0.1, -0.01, 0.0]
    global_orient = jnp.array([[0.0, math.pi / 2.0, 0.0]], jnp.float32)
    transl = jnp.array([[-0.1, -0.01, 0.0]], jnp.float32)

    params = init_mano_params(k_params)

    verts = calibration_forward(shape, pose, global_orient, transl, params)
    verts = jax.block_until_ready(verts)
    assert verts.shape == (NUM_VERTS, 3) and verts.dtype == jnp.float32
    assert bool(jnp.all(jnp.isfinite(verts)))
    print("KERNEL_OK")
</pallas_src>

<mosaic_0001>
module attributes {stable_mosaic.version = 11 : i64} {
  func.func @joints_kernel(%arg0: memref<1x10xf32, #tpu.memory_space<vmem>>, %arg1: memref<3x10x778xf32, #tpu.memory_space<vmem>>, %arg2: memref<3x778xf32, #tpu.memory_space<vmem>>, %arg3: memref<778x16xf32, #tpu.memory_space<vmem>>, %arg4: memref<3x16xf32, #tpu.memory_space<vmem>>) attributes {dimension_semantics = [], scalar_prefetch = 0 : i64, scratch_operands = 0 : i64, tpu.core_type = #tpu.core_type<tc>} {
    %c0 = arith.constant 0 : index
    %c0_0 = arith.constant 0 : index
    %0 = vector.load %arg0[%c0, %c0_0] : memref<1x10xf32, #tpu.memory_space<vmem>>, vector<1x10xf32>
    %c0_1 = arith.constant 0 : index
    %c0_2 = arith.constant 0 : index
    %1 = vector.load %arg2[%c0_1, %c0_2] : memref<3x778xf32, #tpu.memory_space<vmem>>, vector<1x778xf32>
    %c0_3 = arith.constant 0 : index
    %c0_4 = arith.constant 0 : index
    %c0_5 = arith.constant 0 : index
    %2 = vector.load %arg1[%c0_3, %c0_4, %c0_5] : memref<3x10x778xf32, #tpu.memory_space<vmem>>, vector<1x10x778xf32>
    %3 = vector.shape_cast %2 : vector<1x10x778xf32> to vector<10x778xf32>
    %cst = arith.constant dense<0.000000e+00> : vector<1x778xf32>
    %4 = tpu.matmul %0, %3, %cst {dimension_numbers = #tpu.dot_dimension_numbers<[1], [0], [0], [1], [0, 0, 1, 1], [], []>} : vector<1x10xf32>, vector<10x778xf32>, vector<1x778xf32> -> vector<1x778xf32>
    %5 = arith.addf %1, %4 : vector<1x778xf32>
    %c0_6 = arith.constant 0 : index
    %c0_7 = arith.constant 0 : index
    %6 = vector.load %arg3[%c0_6, %c0_7] : memref<778x16xf32, #tpu.memory_space<vmem>>, vector<778x16xf32>
    %cst_8 = arith.constant dense<0.000000e+00> : vector<1x16xf32>
    %7 = tpu.matmul %5, %6, %cst_8 {dimension_numbers = #tpu.dot_dimension_numbers<[1], [0], [0], [1], [0, 0, 1, 1], [], []>} : vector<1x778xf32>, vector<778x16xf32>, vector<1x16xf32> -> vector<1x16xf32>
    %c0_9 = arith.constant 0 : index
    %c0_10 = arith.constant 0 : index
    %8 = vector.load %arg4[%c0_9, %c0_10] : memref<3x16xf32, #tpu.memory_space<vmem>>, vector<1x16xf32>
    tpu.vector_store %arg4[%c0_9, %c0_10], %7 {strides = array<i32>} : memref<3x16xf32, #tpu.memory_space<vmem>>, vector<1x16xf32>,
    %c1 = arith.constant 1 : index
    %c0_11 = arith.constant 0 : index
    %9 = vector.load %arg2[%c1, %c0_11] : memref<3x778xf32, #tpu.memory_space<vmem>>, vector<1x778xf32>
    %c1_12 = arith.constant 1 : index
    %c0_13 = arith.constant 0 : index
    %c0_14 = arith.constant 0 : index
    %10 = vector.load %arg1[%c1_12, %c0_13, %c0_14] : memref<3x10x778xf32, #tpu.memory_space<vmem>>, vector<1x10x778xf32>
    %11 = vector.shape_cast %10 : vector<1x10x778xf32> to vector<10x778xf32>
    %cst_15 = arith.constant dense<0.000000e+00> : vector<1x778xf32>
    %12 = tpu.matmul %0, %11, %cst_15 {dimension_numbers = #tpu.dot_dimension_numbers<[1], [0], [0], [1], [0, 0, 1, 1], [], []>} : vector<1x10xf32>, vector<10x778xf32>, vector<1x778xf32> -> vector<1x778xf32>
    %13 = arith.addf %9, %12 : vector<1x778xf32>
    %c0_16 = arith.constant 0 : index
    %c0_17 = arith.constant 0 : index
    %14 = vector.load %arg3[%c0_16, %c0_17] : memref<778x16xf32, #tpu.memory_space<vmem>>, vector<778x16xf32>
    %cst_18 = arith.constant dense<0.000000e+00> : vector<1x16xf32>
    %15 = tpu.matmul %13, %14, %cst_18 {dimension_numbers = #tpu.dot_dimension_numbers<[1], [0], [0], [1], [0, 0, 1, 1], [], []>} : vector<1x778xf32>, vector<778x16xf32>, vector<1x16xf32> -> vector<1x16xf32>
    %c1_19 = arith.constant 1 : index
    %c0_20 = arith.constant 0 : index
    %16 = vector.load %arg4[%c1_19, %c0_20] : memref<3x16xf32, #tpu.memory_space<vmem>>, vector<1x16xf32>
    tpu.vector_store %arg4[%c1_19, %c0_20], %15 {strides = array<i32>} : memref<3x16xf32, #tpu.memory_space<vmem>>, vector<1x16xf32>,
    %c2 = arith.constant 2 : index
    %c0_21 = arith.constant 0 : index
    %17 = vector.load %arg2[%c2, %c0_21] : memref<3x778xf32, #tpu.memory_space<vmem>>, vector<1x778xf32>
    %c2_22 = arith.constant 2 : index
    %c0_23 = arith.constant 0 : index
    %c0_24 = arith.constant 0 : index
    %18 = vector.load %arg1[%c2_22, %c0_23, %c0_24] : memref<3x10x778xf32, #tpu.memory_space<vmem>>, vector<1x10x778xf32>
    %19 = vector.shape_cast %18 : vector<1x10x778xf32> to vector<10x778xf32>
    %cst_25 = arith.constant dense<0.000000e+00> : vector<1x778xf32>
    %20 = tpu.matmul %0, %19, %cst_25 {dimension_numbers = #tpu.dot_dimension_numbers<[1], [0], [0], [1], [0, 0, 1, 1], [], []>} : vector<1x10xf32>, vector<10x778xf32>, vector<1x778xf32> -> vector<1x778xf32>
    %21 = arith.addf %17, %20 : vector<1x778xf32>
    %c0_26 = arith.constant 0 : index
    %c0_27 = arith.constant 0 : index
    %22 = vector.load %arg3[%c0_26, %c0_27] : memref<778x16xf32, #tpu.memory_space<vmem>>, vector<778x16xf32>
    %cst_28 = arith.constant dense<0.000000e+00> : vector<1x16xf32>
    %23 = tpu.matmul %21, %22, %cst_28 {dimension_numbers = #tpu.dot_dimension_numbers<[1], [0], [0], [1], [0, 0, 1, 1], [], []>} : vector<1x778xf32>, vector<778x16xf32>, vector<1x16xf32> -> vector<1x16xf32>
    %c2_29 = arith.constant 2 : index
    %c0_30 = arith.constant 0 : index
    %24 = vector.load %arg4[%c2_29, %c0_30] : memref<3x16xf32, #tpu.memory_space<vmem>>, vector<1x16xf32>
    tpu.vector_store %arg4[%c2_29, %c0_30], %23 {strides = array<i32>} : memref<3x16xf32, #tpu.memory_space<vmem>>, vector<1x16xf32>,
    return
  }
}

module attributes {stable_mosaic.version = 11 : i64} {
  func.func @lbs_kernel(%arg0: memref<1x10xf32, #tpu.memory_space<vmem>>, %arg1: memref<1x135xf32, #tpu.memory_space<vmem>>, %arg2: memref<3x10x778xf32, #tpu.memory_space<vmem>>, %arg3: memref<3x135x778xbf16, #tpu.memory_space<vmem>>, %arg4: memref<3x778xf32, #tpu.memory_space<vmem>>, %arg5: memref<16x778xf32, #tpu.memory_space<vmem>>, %arg6: memref<16x16xf32, #tpu.memory_space<vmem>>, %arg7: memref<3x1xf32, #tpu.memory_space<vmem>>, %arg8: memref<3x778xf32, #tpu.memory_space<vmem>>) attributes {dimension_semantics = [], scalar_prefetch = 0 : i64, scratch_operands = 0 : i64, tpu.core_type = #tpu.core_type<tc>} {
    %c0 = arith.constant 0 : index
    %c0_0 = arith.constant 0 : index
    %0 = vector.load %arg0[%c0, %c0_0] : memref<1x10xf32, #tpu.memory_space<vmem>>, vector<1x10xf32>
    %c0_1 = arith.constant 0 : index
    %c0_2 = arith.constant 0 : index
    %1 = vector.load %arg1[%c0_1, %c0_2] : memref<1x135xf32, #tpu.memory_space<vmem>>, vector<1x135xf32>
    %2 = arith.truncf %1 : vector<1x135xf32> to vector<1x135xbf16>
    %c0_3 = arith.constant 0 : index
    %c0_4 = arith.constant 0 : index
    %3 = vector.load %arg6[%c0_3, %c0_4] : memref<16x16xf32, #tpu.memory_space<vmem>>, vector<16x16xf32>
    %c0_5 = arith.constant 0 : index
    %c0_6 = arith.constant 0 : index
    %4 = vector.load %arg5[%c0_5, %c0_6] : memref<16x778xf32, #tpu.memory_space<vmem>>, vector<16x778xf32>
    %cst = arith.constant dense<0.000000e+00> : vector<16x778xf32>
    %5 = tpu.matmul %3, %4, %cst {dimension_numbers = #tpu.dot_dimension_numbers<[1], [0], [0], [1], [0, 0, 1, 1], [], []>} : vector<16x16xf32>, vector<16x778xf32>, vector<16x778xf32> -> vector<16x778xf32>
    %c0_7 = arith.constant 0 : index
    %c0_8 = arith.constant 0 : index
    %6 = vector.load %arg4[%c0_7, %c0_8] : memref<3x778xf32, #tpu.memory_space<vmem>>, vector<1x778xf32>
    %c0_9 = arith.constant 0 : index
    %c0_10 = arith.constant 0 : index
    %c0_11 = arith.constant 0 : index
    %7 = vector.load %arg2[%c0_9, %c0_10, %c0_11] : memref<3x10x778xf32, #tpu.memory_space<vmem>>, vector<1x10x778xf32>
    %8 = vector.shape_cast %7 : vector<1x10x778xf32> to vector<10x778xf32>
    %cst_12 = arith.constant dense<0.000000e+00> : vector<1x778xf32>
    %9 = tpu.matmul %0, %8, %cst_12 {dimension_numbers = #tpu.dot_dimension_numbers<[1], [0], [0], [1], [0, 0, 1, 1], [], []>} : vector<1x10xf32>, vector<10x778xf32>, vector<1x778xf32> -> vector<1x778xf32>
    %10 = arith.addf %6, %9 : vector<1x778xf32>
    %c0_13 = arith.constant 0 : index
    %c0_14 = arith.constant 0 : index
    %c0_15 = arith.constant 0 : index
    %11 = vector.load %arg3[%c0_13, %c0_14, %c0_15] : memref<3x135x778xbf16, #tpu.memory_space<vmem>>, vector<1x135x778xbf16>
    %12 = vector.shape_cast %11 : vector<1x135x778xbf16> to vector<135x778xbf16>
    %cst_16 = arith.constant dense<0.000000e+00> : vector<1x778xf32>
    %13 = tpu.matmul %2, %12, %cst_16 {dimension_numbers = #tpu.dot_dimension_numbers<[1], [0], [0], [1], [0, 0, 1, 1], [], []>} : vector<1x135xbf16>, vector<135x778xbf16>, vector<1x778xf32> -> vector<1x778xf32>
    %14 = arith.addf %10, %13 : vector<1x778xf32>
    %c1 = arith.constant 1 : index
    %c0_17 = arith.constant 0 : index
    %15 = vector.load %arg4[%c1, %c0_17] : memref<3x778xf32, #tpu.memory_space<vmem>>, vector<1x778xf32>
    %c1_18 = arith.constant 1 : index
    %c0_19 = arith.constant 0 : index
    %c0_20 = arith.constant 0 : index
    %16 = vector.load %arg2[%c1_18, %c0_19, %c0_20] : memref<3x10x778xf32, #tpu.memory_space<vmem>>, vector<1x10x778xf32>
    %17 = vector.shape_cast %16 : vector<1x10x778xf32> to vector<10x778xf32>
    %cst_21 = arith.constant dense<0.000000e+00> : vector<1x778xf32>
    %18 = tpu.matmul %0, %17, %cst_21 {dimension_numbers = #tpu.dot_dimension_numbers<[1], [0], [0], [1], [0, 0, 1, 1], [], []>} : vector<1x10xf32>, vector<10x778xf32>, vector<1x778xf32> -> vector<1x778xf32>
    %19 = arith.addf %15, %18 : vector<1x778xf32>
    %c1_22 = arith.constant 1 : index
    %c0_23 = arith.constant 0 : index
    %c0_24 = arith.constant 0 : index
    %20 = vector.load %arg3[%c1_22, %c0_23, %c0_24] : memref<3x135x778xbf16, #tpu.memory_space<vmem>>, vector<1x135x778xbf16>
    %21 = vector.shape_cast %20 : vector<1x135x778xbf16> to vector<135x778xbf16>
    %cst_25 = arith.constant dense<0.000000e+00> : vector<1x778xf32>
    %22 = tpu.matmul %2, %21, %cst_25 {dimension_numbers = #tpu.dot_dimension_numbers<[1], [0], [0], [1], [0, 0, 1, 1], [], []>} : vector<1x135xbf16>, vector<135x778xbf16>, vector<1x778xf32> -> vector<1x778xf32>
    %23 = arith.addf %19, %22 : vector<1x778xf32>
    %c2 = arith.constant 2 : index
    %c0_26 = arith.constant 0 : index
    %24 = vector.load %arg4[%c2, %c0_26] : memref<3x778xf32, #tpu.memory_space<vmem>>, vector<1x778xf32>
    %c2_27 = arith.constant 2 : index
    %c0_28 = arith.constant 0 : index
    %c0_29 = arith.constant 0 : index
    %25 = vector.load %arg2[%c2_27, %c0_28, %c0_29] : memref<3x10x778xf32, #tpu.memory_space<vmem>>, vector<1x10x778xf32>
    %26 = vector.shape_cast %25 : vector<1x10x778xf32> to vector<10x778xf32>
    %cst_30 = arith.constant dense<0.000000e+00> : vector<1x778xf32>
    %27 = tpu.matmul %0, %26, %cst_30 {dimension_numbers = #tpu.dot_dimension_numbers<[1], [0], [0], [1], [0, 0, 1, 1], [], []>} : vector<1x10xf32>, vector<10x778xf32>, vector<1x778xf32> -> vector<1x778xf32>
    %28 = arith.addf %24, %27 : vector<1x778xf32>
    %c2_31 = arith.constant 2 : index
    %c0_32 = arith.constant 0 : index
    %c0_33 = arith.constant 0 : index
    %29 = vector.load %arg3[%c2_31, %c0_32, %c0_33] : memref<3x135x778xbf16, #tpu.memory_space<vmem>>, vector<1x135x778xbf16>
    %30 = vector.shape_cast %29 : vector<1x135x778xbf16> to vector<135x778xbf16>
    %cst_34 = arith.constant dense<0.000000e+00> : vector<1x778xf32>
    %31 = tpu.matmul %2, %30, %cst_34 {dimension_numbers = #tpu.dot_dimension_numbers<[1], [0], [0], [1], [0, 0, 1, 1], [], []>} : vector<1x135xbf16>, vector<135x778xbf16>, vector<1x778xf32> -> vector<1x778xf32>
    %32 = arith.addf %28, %31 : vector<1x778xf32>
    %c0_35 = arith.constant 0 : index
    %c0_36 = arith.constant 0 : index
    %33 = vector.load %arg7[%c0_35, %c0_36] : memref<3x1xf32, #tpu.memory_space<vmem>>, vector<3x1xf32>
    %34 = vector.extract_strided_slice %5 {offsets = [0, 0], sizes = [1, 778], strides = [1, 1]} : vector<16x778xf32> to vector<1x778xf32>
    %35 = arith.mulf %34, %14 : vector<1x778xf32>
    %36 = vector.extract_strided_slice %5 {offsets = [1, 0], sizes = [1, 778], strides = [1, 1]} : vector<16x778xf32> to vector<1x778xf32>
    %37 = arith.mulf %36, %23 : vector<1x778xf32>
    %38 = arith.addf %35, %37 : vector<1x778xf32>
    %39 = vector.extract_strided_slice %5 {offsets = [2, 0], sizes = [1, 778], strides = [1, 1]} : vector<16x778xf32> to vector<1x778xf32>
    %40 = arith.mulf %39, %32 : vector<1x778xf32>
    %41 = arith.addf %38, %40 : vector<1x778xf32>
    %42 = vector.extract_strided_slice %5 {offsets = [3, 0], sizes = [1, 778], strides = [1, 1]} : vector<16x778xf32> to vector<1x778xf32>
    %43 = arith.addf %41, %42 : vector<1x778xf32>
    %44 = vector.extract_strided_slice %33 {offsets = [0, 0], sizes = [1, 1], strides = [1, 1]} : vector<3x1xf32> to vector<1x1xf32>
    %45 = vector.broadcast %44 : vector<1x1xf32> to vector<1x778xf32>
    %46 = arith.addf %43, %45 : vector<1x778xf32>
    %c0_37 = arith.constant 0 : index
    %c0_38 = arith.constant 0 : index
    %47 = vector.load %arg8[%c0_37, %c0_38] : memref<3x778xf32, #tpu.memory_space<vmem>>, vector<1x778xf32>
    tpu.vector_store %arg8[%c0_37, %c0_38], %46 {strides = array<i32>} : memref<3x778xf32, #tpu.memory_space<vmem>>, vector<1x778xf32>,
    %48 = vector.extract_strided_slice %5 {offsets = [4, 0], sizes = [1, 778], strides = [1, 1]} : vector<16x778xf32> to vector<1x778xf32>
    %49 = arith.mulf %48, %14 : vector<1x778xf32>
    %50 = vector.extract_strided_slice %5 {offsets = [5, 0], sizes = [1, 778], strides = [1, 1]} : vector<16x778xf32> to vector<1x778xf32>
    %51 = arith.mulf %50, %23 : vector<1x778xf32>
    %52 = arith.addf %49, %51 : vector<1x778xf32>
    %53 = vector.extract_strided_slice %5 {offsets = [6, 0], sizes = [1, 778], strides = [1, 1]} : vector<16x778xf32> to vector<1x778xf32>
    %54 = arith.mulf %53, %32 : vector<1x778xf32>
    %55 = arith.addf %52, %54 : vector<1x778xf32>
    %56 = vector.extract_strided_slice %5 {offsets = [7, 0], sizes = [1, 778], strides = [1, 1]} : vector<16x778xf32> to vector<1x778xf32>
    %57 = arith.addf %55, %56 : vector<1x778xf32>
    %58 = vector.extract_strided_slice %33 {offsets = [1, 0], sizes = [1, 1], strides = [1, 1]} : vector<3x1xf32> to vector<1x1xf32>
    %59 = vector.broadcast %58 : vector<1x1xf32> to vector<1x778xf32>
    %60 = arith.addf %57, %59 : vector<1x778xf32>
    %c1_39 = arith.constant 1 : index
    %c0_40 = arith.constant 0 : index
    %61 = vector.load %arg8[%c1_39, %c0_40] : memref<3x778xf32, #tpu.memory_space<vmem>>, vector<1x778xf32>
    tpu.vector_store %arg8[%c1_39, %c0_40], %60 {strides = array<i32>} : memref<3x778xf32, #tpu.memory_space<vmem>>, vector<1x778xf32>,
    %62 = vector.extract_strided_slice %5 {offsets = [8, 0], sizes = [1, 778], strides = [1, 1]} : vector<16x778xf32> to vector<1x778xf32>
    %63 = arith.mulf %62, %14 : vector<1x778xf32>
    %64 = vector.extract_strided_slice %5 {offsets = [9, 0], sizes = [1, 778], strides = [1, 1]} : vector<16x778xf32> to vector<1x778xf32>
    %65 = arith.mulf %64, %23 : vector<1x778xf32>
    %66 = arith.addf %63, %65 : vector<1x778xf32>
    %67 = vector.extract_strided_slice %5 {offsets = [10, 0], sizes = [1, 778], strides = [1, 1]} : vector<16x778xf32> to vector<1x778xf32>
    %68 = arith.mulf %67, %32 : vector<1x778xf32>
    %69 = arith.addf %66, %68 : vector<1x778xf32>
    %70 = vector.extract_strided_slice %5 {offsets = [11, 0], sizes = [1, 778], strides = [1, 1]} : vector<16x778xf32> to vector<1x778xf32>
    %71 = arith.addf %69, %70 : vector<1x778xf32>
    %72 = vector.extract_strided_slice %33 {offsets = [2, 0], sizes = [1, 1], strides = [1, 1]} : vector<3x1xf32> to vector<1x1xf32>
    %73 = vector.broadcast %72 : vector<1x1xf32> to vector<1x778xf32>
    %74 = arith.addf %71, %73 : vector<1x778xf32>
    %c2_41 = arith.constant 2 : index
    %c0_42 = arith.constant 0 : index
    %75 = vector.load %arg8[%c2_41, %c0_42] : memref<3x778xf32, #tpu.memory_space<vmem>>, vector<1x778xf32>
    tpu.vector_store %arg8[%c2_41, %c0_42], %74 {strides = array<i32>} : memref<3x778xf32, #tpu.memory_space<vmem>>, vector<1x778xf32>,
    return
  }
}

</mosaic_0001>

<bundles_post_ra>
// kernel: calibration_forward.2
= control target key start
LH: loop header
LB: loop body
LE: loop exit
PB: predicated region body
PF: predicated region fallthrough
CT: control target
= control target key end

     0   :  { %vm37_vm0 = vcmask 1041408   ;;  %vm33_vm1 = vcmask 80896   ;;  %vm214_vm2 = vcmask 1042434   ;;  %vm212_vm3 = vcmask 1040384   ;;  %s2723_s1 = inlined_call_operand.vmem [shape: f32[3,10,778], index: 1, kind: input, shape index: {}]   ;;  %s2724_s0 = inlined_call_operand.vmem [shape: f32[1,10], index: 0, kind: input, shape index: {}]   ;;  %s2725_s3 = inlined_call_operand.vmem [shape: f32[778,16], index: 3, kind: input, shape index: {}]   ;;  %s2726_s2 = inlined_call_operand.vmem [shape: f32[3,778], index: 2, kind: input, shape index: {}]   ;;  %s2727_s4 = inlined_call_operand.vmem [shape: f32[3,16], index: 4, kind: output, shape index: {}]  }
   0x1   :  { %v26_v0 = vld [vmem:[%s2723_s1 + $0x38] sm:$0x3]  ;;  %v19_v1 = vld [vmem:[%s2723_s1] sm:$0xff]  ;;  %v20_v4 = vld [vmem:[%s2723_s1 + $0x8] sm:$0xff]  ;;  %vm217_vm4 = vcmask 1044484   ;;  %vm219_vm5 = vcmask 1045508  }
   0x2   :  { %1402 = vmatpush.msk.msra.mxu2 %vm37_vm0, %v26_v0  ;;  %v1515_v2 = vld [vmem:[%s2724_s0] sm:$0x1]  ;;  %v28_v5 = vld [vmem:[%s2723_s1 + $0x48] sm:$0x3]  ;;  %v30_v6 = vld [vmem:[%s2723_s1 + $0x58] sm:$0x3] }
   0x3   :  { %v27_v3 = vld [vmem:[%s2723_s1 + $0x40] sm:$0x3]  ;;  %v21_v7 = vld [vmem:[%s2723_s1 + $0x10] sm:$0xff]  ;;  %v1547_v10 = vld [vmem:[%s2725_s3 + $0x78] sm:$0xff]  ;;  %vm221_vm6 = vcmask 1043456   ;;  %vm482_vm7 = vcmask 122880  }
   0x4   :  { %1404 = vmatpush.msk.msra.mxu1 %vm37_vm0, %v27_v3  ;;  %74 = vmatpush.msra.mxu2 %v19_v1  ;;  %v29_v8 = vld [vmem:[%s2723_s1 + $0x50] sm:$0x3]  ;;  %v23_v9 = vld [vmem:[%s2723_s1 + $0x20] sm:$0xff]  ;;  %v1552_v11 = vld [vmem:[%s2725_s3 + $0xf8] sm:$0xff] }
   0x5   :  { %1403 = vmatmul.msk.f32.vlgmr.msra.gmra.mxu2 %vm33_vm1, %v1515_v2  ;;  %v31_v12 = vld [vmem:[%s2723_s1 + $0x60] sm:$0x3]  ;;  %342 = vmatpush.msra.mxu3 %v1547_v10  ;;  %v1562_v13 = vld [vmem:[%s2725_s3 + $0x70] sm:$0xff]  ;;  %v22_v14 = vld [vmem:[%s2723_s1 + $0x18] sm:$0xff] }
   0x6   :  { %94 = vmatpush.msra.mxu1 %v20_v4  ;;  %1406 = vmatpush.msk.msrb.mxu2 %vm37_vm0, %v28_v5  ;;  %v1571_v15 = vld [vmem:[%s2725_s3 + $0xf0] sm:$0xff]  ;;  %v24_v16 = vld [vmem:[%s2723_s1 + $0x28] sm:$0xff]  ;;  %v1597_v20 = vld [vmem:[%s2725_s3 + $0x60] sm:$0xff] }
   0x7   :  { %1405 = vmatmul.msk.f32.vlgmr.msra.gmra.mxu1 %vm33_vm1, %v1515_v2  ;;  %362 = vmatpush.msra.mxu0 %v1552_v11  ;;  %v1580_v17 = vld [vmem:[%s2725_s3 + $0x68] sm:$0xff]  ;;  %v1602_v21 = vld [vmem:[%s2725_s3 + $0xe0] sm:$0xff]  ;;  %v25_v22 = vld [vmem:[%s2723_s1 + $0x30] sm:$0xff] }
   0x8   :  { %1410 = vmatpush.msk.msrb.mxu1 %vm37_vm0, %v30_v6  ;;  %114 = vmatpush.msrb.mxu2 %v21_v7  ;;  %v1587_v18 = vld [vmem:[%s2725_s3 + $0xe8] sm:$0xff]  ;;  %v1616_v23 = vld [vmem:[%s2725_s3 + $0x58] sm:$0xff]  ;;  %v1628_v25 = vld [vmem:[%s2725_s3 + $0x50] sm:$0xff] }
   0x9   :  { %343 = vmatpush.msra.mxu3 %v1562_v13  ;;  %v32_v19 = vld [vmem:[%s2723_s1 + $0x68] sm:$0x3]  ;;  %363 = vmatpush.msra.mxu0 %v1571_v15  ;;  %v1621_v24 = vld [vmem:[%s2725_s3 + $0xd8] sm:$0xff]  ;;  %v1633_v26 = vld [vmem:[%s2725_s3 + $0xd0] sm:$0xff] }
   0xa   :  { %1408 = vmatpush.msk.msra.mxu2 %vm37_vm0, %v29_v8  ;;  %154 = vmatpush.msrb.mxu1 %v23_v9  ;;  %v1640_v27 = vld [vmem:[%s2725_s3 + $0x48] sm:$0xff]  ;;  %v1652_v29 = vld [vmem:[%s2725_s3 + $0x40] sm:$0xff]  ;;  %v1668_v31 = vld [vmem:[%s2725_s3 + $0x38] sm:$0xff] }
   0xb   :  { %344 = vmatpush.msra.mxu3 %v1580_v17  ;;  %364 = vmatpush.msra.mxu0 %v1587_v18  ;;  %v1647_v28 = vld [vmem:[%s2725_s3 + $0xc8] sm:$0xff]  ;;  %v1660_v30 = vld [vmem:[%s2725_s3 + $0xc0] sm:$0xff]  ;;  %v1674_v32 = vld [vmem:[%s2725_s3 + $0xb8] sm:$0xff] }
   0xc   :  { %1412 = vmatpush.msk.msra.mxu1 %vm37_vm0, %v31_v12  ;;  %134 = vmatpush.msra.mxu2 %v22_v14  ;;  %v1680_v33 = vld [vmem:[%s2725_s3 + $0x30] sm:$0xff]  ;;  %v1696_v35 = vld [vmem:[%s2725_s3 + $0x28] sm:$0xff]  ;;  %v1708_v37 = vld [vmem:[%s2725_s3 + $0x20] sm:$0xff] }
   0xd   :  { %1407 = vmatmul.msk.f32.vlgmr.msrb.gmra.mxu2 %vm33_vm1, %v1515_v2  ;;  %345 = vmatpush.msra.mxu3 %v1597_v20  ;;  %v1686_v34 = vld [vmem:[%s2725_s3 + $0xb0] sm:$0xff]  ;;  %v1701_v36 = vld [vmem:[%s2725_s3 + $0xa8] sm:$0xff]  ;;  %v1713_v38 = vld [vmem:[%s2725_s3 + $0xa0] sm:$0xff] }
   0xe   :  { %174 = vmatpush.msra.mxu1 %v24_v16  ;;  %1414 = vmatpush.msk.msrb.mxu2 %vm37_vm0, %v32_v19  ;;  %v1720_v39 = vld [vmem:[%s2725_s3 + $0x178] sm:$0xff]  ;;  %v1742_v43 = vld [vmem:[%s2725_s3 + $0x170] sm:$0xff]  ;;  %v1764_v47 = vld [vmem:[%s2725_s3 + $0x168] sm:$0xff] }
   0xf   :  { %1411 = vmatmul.msk.f32.vlgmr.msrb.gmra.mxu1 %vm33_vm1, %v1515_v2  ;;  %365 = vmatpush.msra.mxu0 %v1602_v21  ;;  %v1725_v40 = vld [vmem:[%s2725_s3 + $0x1f8] sm:$0xff]  ;;  %v1747_v44 = vld [vmem:[%s2725_s3 + $0x1f0] sm:$0xff]  ;;  %v1771_v48 = vld [vmem:[%s2725_s3 + $0x1e8] sm:$0xff] }
  0x10   :  { %194 = vmatpush.msrb.mxu2 %v25_v22  ;;  %346 = vmatpush.msra.mxu3 %v1616_v23  ;;  %v1730_v41 = vld [vmem:[%s2725_s3 + $0x18] sm:$0xff]  ;;  %v1754_v45 = vld [vmem:[%s2725_s3 + $0x10] sm:$0xff]  ;;  %v1776_v49 = vld [vmem:[%s2725_s3 + $0x8] sm:$0xff] }
  0x11   :  { %366 = vmatpush.msra.mxu0 %v1621_v24  ;;  %382 = vmatpush.msrb.mxu1 %v1720_v39  ;;  %v1737_v42 = vld [vmem:[%s2725_s3 + $0x98] sm:$0xff]  ;;  %v1759_v46 = vld [vmem:[%s2725_s3 + $0x90] sm:$0xff]  ;;  %v1781_v50 = vld [vmem:[%s2725_s3 + $0x88] sm:$0xff] }
  0x12   :  { %347 = vmatpush.msra.mxu3 %v1628_v25  ;;  %v1792_v51 = vld [vmem:[%s2725_s3 + $0x160] sm:$0xff]  ;;  %v1816_v55 = vld [vmem:[%s2725_s3 + $0x158] sm:$0xff]  ;;  %v1838_v59 = vld [vmem:[%s2725_s3 + $0x150] sm:$0xff] }
  0x13   :  { %367 = vmatpush.msra.mxu0 %v1633_v26  ;;  %383 = vmatpush.msrb.mxu1 %v1742_v43  ;;  %v1797_v52 = vld [vmem:[%s2725_s3 + $0x1e0] sm:$0xff]  ;;  %v1821_v56 = vld [vmem:[%s2725_s3 + $0x1d8] sm:$0xff]  ;;  %v1843_v60 = vld [vmem:[%s2725_s3 + $0x1d0] sm:$0xff] }
  0x14   :  { %348 = vmatpush.msra.mxu3 %v1640_v27  ;;  %v1804_v53 = vld [vmem:[%s2725_s3] sm:$0xff]  ;;  %v1826_v57 = vld [vmem:[%s2725_s3 + $0x278] sm:$0xff]  ;;  %v1850_v61 = vld [vmem:[%s2725_s3 + $0x270] sm:$0xff] }
  0x15   :  { %1409 = vmatmul.msk.f32.vlgmr.msra.gmra.mxu2 %vm33_vm1, %v1515_v2  ;;  %368 = vmatpush.msra.mxu0 %v1647_v28  ;;  %v1809_v54 = vld [vmem:[%s2725_s3 + $0x80] sm:$0xff]  ;;  %v1833_v58 = vld [vmem:[%s2725_s3 + $0x2f8] sm:$0xff]  ;;  %2779 = vst [vmem:[#allocation2_spill] sm:$0xff] %v1850_v61  ;;  %v1855_v62 = vld [vmem:[%s2725_s3 + $0x2f0] sm:$0xff] }
  0x16   :  { %349 = vmatpush.msra.mxu3 %v1652_v29  ;;  %402 = vmatpush.msra.mxu2 %v1725_v40  ;;  %2780 = vst [vmem:[#allocation3_spill] sm:$0xff] %v1855_v62  ;;  %v1860_v63 = vld [vmem:[%s2725_s3 + $0x148] sm:$0xff]  ;;  %v1888_v4 = vld [vmem:[%s2725_s3 + $0x140] sm:$0xff]  ;;  %v1912_v8 = vld [vmem:[%s2725_s3 + $0x138] sm:$0xff] }
  0x17   :  { %1413 = vmatmul.msk.f32.vlgmr.msra.gmra.mxu1 %vm33_vm1, %v1515_v2  ;;  %369 = vmatpush.msra.mxu0 %v1660_v30  ;;  %2781 = vst [vmem:[#allocation4_spill] sm:$0xff] %v1860_v63  ;;  %v1867_v0 = vld [vmem:[%s2725_s3 + $0x1c8] sm:$0xff]  ;;  %v1893_v5 = vld [vmem:[%s2725_s3 + $0x1c0] sm:$0xff]  ;;  %v1917_v9 = vld [vmem:[%s2725_s3 + $0x1b8] sm:$0xff] }
  0x18   :  { %350 = vmatpush.msra.mxu3 %v1668_v31  ;;  %403 = vmatpush.msra.mxu2 %v1747_v44  ;;  %2782 = vst [vmem:[#allocation5_spill] sm:$0xff] %v1867_v0  ;;  %v1872_v1 = vld [vmem:[%s2725_s3 + $0x268] sm:$0xff]  ;;  %v1898_v6 = vld [vmem:[%s2725_s3 + $0x260] sm:$0xff]  ;;  %v1922_v12 = vld [vmem:[%s2725_s3 + $0x258] sm:$0xff] }
  0x19   :  { %370 = vmatpush.msra.mxu0 %v1674_v32  ;;  %384 = vmatpush.msrb.mxu1 %v1764_v47  ;;  %2783 = vst [vmem:[#allocation6_spill] sm:$0xff] %v1872_v1  ;;  %v1877_v3 = vld [vmem:[%s2725_s3 + $0x2e8] sm:$0xff]  ;;  %v1905_v7 = vld [vmem:[%s2725_s3 + $0x2e0] sm:$0xff]  ;;  %v1929_v14 = vld [vmem:[%s2725_s3 + $0x2d8] sm:$0xff] }
  0x1a   :  { %351 = vmatpush.msra.mxu3 %v1680_v33  ;;  %404 = vmatpush.msra.mxu2 %v1771_v48  ;;  %2784 = vst [vmem:[#allocation7_spill] sm:$0xff] %v1877_v3  ;;  %v1936_v16 = vld [vmem:[%s2725_s3 + $0x130] sm:$0xff] }
  0x1b   :  { %371 = vmatpush.msra.mxu0 %v1686_v34  ;;  %385 = vmatpush.msrb.mxu1 %v1792_v51  ;;  %2785 = vst [vmem:[#allocation8_spill] sm:$0xff] %v1888_v4  ;;  %v1941_v19 = vld [vmem:[%s2725_s3 + $0x1b0] sm:$0xff] }
  0x1c   :  { %352 = vmatpush.msra.mxu3 %v1696_v35  ;;  %405 = vmatpush.msra.mxu2 %v1797_v52  ;;  %2786 = vst [vmem:[#allocation9_spill] sm:$0xff] %v1893_v5  ;;  %v1946_v22 = vld [vmem:[%s2725_s3 + $0x250] sm:$0xff] }
  0x1d   :  { %1415 = vmatmul.msk.f32.vlgmr.msrb.gmra.mxu2 %vm33_vm1, %v1515_v2  ;;  %372 = vmatpush.msra.mxu0 %v1701_v36  ;;  %2787 = vst [vmem:[#allocation10_spill] sm:$0xff] %v1898_v6 }
  0x1e   :  { %353 = vmatpush.msra.mxu3 %v1708_v37  ;;  %386 = vmatpush.msrb.mxu1 %v1816_v55  ;;  %2788 = vst [vmem:[#allocation11_spill] sm:$0xff] %v1905_v7 }
  0x1f   :  { %373 = vmatpush.msra.mxu0 %v1713_v38  ;;  %406 = vmatpush.msra.mxu2 %v1821_v56  ;;  %2789 = vst [vmem:[#allocation12_spill] sm:$0xff] %v1912_v8 }
  0x20   :  { %354 = vmatpush.msra.mxu3 %v1730_v41  ;;  %387 = vmatpush.msrb.mxu1 %v1838_v59  ;;  %2790 = vst [vmem:[#allocation13_spill] sm:$0xff] %v1917_v9 }
  0x21   :  { %374 = vmatpush.msra.mxu0 %v1737_v42  ;;  %407 = vmatpush.msra.mxu2 %v1843_v60  ;;  %2791 = vst [vmem:[#allocation14_spill] sm:$0xff] %v1922_v12 }
  0x22   :  { %355 = vmatpush.msra.mxu3 %v1754_v45  ;;  %388 = vmatpush.msrb.mxu1 %v1860_v63  ;;  %2792 = vst [vmem:[#allocation15_spill] sm:$0xff] %v1929_v14 }
  0x23   :  { %375 = vmatpush.msra.mxu0 %v1759_v46  ;;  %408 = vmatpush.msra.mxu2 %v1867_v0  ;;  %2793 = vst [vmem:[#allocation16_spill] sm:$0xff] %v1936_v16 }
  0x24   :  { %356 = vmatpush.msra.mxu3 %v1776_v49  ;;  %389 = vmatpush.msrb.mxu1 %v1888_v4  ;;  %2794 = vst [vmem:[#allocation17_spill] sm:$0xff] %v1941_v19 }
  0x25   :  { %376 = vmatpush.msra.mxu0 %v1781_v50  ;;  %409 = vmatpush.msra.mxu2 %v1893_v5  ;;  %2795 = vst [vmem:[#allocation18_spill] sm:$0xff] %v1946_v22  ;;  %v2154_v5 = vld [vmem:[%s2725_s3 + $0x200] sm:$0xff] }
  0x26   :  { %357 = vmatpush.msra.mxu3 %v1804_v53  ;;  %390 = vmatpush.msrb.mxu1 %v1912_v8  ;;  %2828 = vst [vmem:[#allocation51_spill] sm:$0xff] %v2154_v5 }
  0x27   :  { %377 = vmatpush.msra.mxu0 %v1809_v54  ;;  %410 = vmatpush.msra.mxu2 %v1917_v9  ;;  %v1963_v9 = vld [vmem:[%s2725_s3 + $0x1a8] sm:$0xff] }
  0x28   :  { %422 = vmatpush.msrb.mxu3 %v1826_v57  ;;  %391 = vmatpush.msrb.mxu1 %v1936_v16  ;;  %2798 = vst [vmem:[#allocation21_spill] sm:$0xff] %v1963_v9  ;;  %v1975_v16 = vld [vmem:[%s2725_s3 + $0x2c8] sm:$0xff] }
  0x29   :  { %442 = vmatpush.msrb.mxu0 %v1833_v58  ;;  %411 = vmatpush.msra.mxu2 %v1941_v19  ;;  %v1970_v19 = vld [vmem:[%s2725_s3 + $0x248] sm:$0xff]  ;;  %2800 = vst [vmem:[#allocation23_spill] sm:$0xff] %v1975_v16 }
  0x2a   :  { %423 = vmatpush.msrb.mxu3 %v1850_v61  ;;  %2799 = vst [vmem:[#allocation22_spill] sm:$0xff] %v1970_v19 }
  0x2b   :  { %443 = vmatpush.msrb.mxu0 %v1855_v62  ;;  %412 = vmatpush.msra.mxu2 %v1963_v9  ;;  %v2083_v9 = vld [vmem:[%s2725_s3 + $0x180] sm:$0xff] }
  0x2c   :  { %424 = vmatpush.msrb.mxu3 %v1872_v1  ;;  %2818 = vst [vmem:[#allocation41_spill] sm:$0xff] %v2083_v9 }
  0x2d   :  { %444 = vmatpush.msrb.mxu0 %v1877_v3 }
  0x2e   :  { %425 = vmatpush.msrb.mxu3 %v1898_v6  ;;  %v2112_v6 = vld [vmem:[%s2725_s3 + $0x298] sm:$0xff] }
  0x2f   :  { %445 = vmatpush.msrb.mxu0 %v1905_v7  ;;  %2822 = vst [vmem:[#allocation45_spill] sm:$0xff] %v2112_v6 }
  0x30   :  { %426 = vmatpush.msrb.mxu3 %v1922_v12  ;;  %v1958_v12 = vld [vmem:[%s2725_s3 + $0x128] sm:$0xff] }
  0x31   :  { %446 = vmatpush.msrb.mxu0 %v1929_v14  ;;  %v1953_v14 = vld [vmem:[%s2725_s3 + $0x2d0] sm:$0xff]  ;;  %2797 = vst [vmem:[#allocation20_spill] sm:$0xff] %v1958_v12  ;;  %392 = vmatpush.msrb.mxu1 %v1958_v12  ;;  %v1994_v12 = vld [vmem:[%s2725_s3 + $0x240] sm:$0xff] }
  0x32   :  { %2796 = vst [vmem:[#allocation19_spill] sm:$0xff] %v1953_v14  ;;  %427 = vmatpush.msrb.mxu3 %v1946_v22  ;;  %v1989_v22 = vld [vmem:[%s2725_s3 + $0x1a0] sm:$0xff] }
  0x33   :  { %447 = vmatpush.msrb.mxu0 %v1953_v14  ;;  %v1984_v14 = vld [vmem:[%s2725_s3 + $0x120] sm:$0xff]  ;;  %2802 = vst [vmem:[#allocation25_spill] sm:$0xff] %v1989_v22  ;;  %413 = vmatpush.msra.mxu2 %v1989_v22  ;;  %v2018_v22 = vld [vmem:[%s2725_s3 + $0x238] sm:$0xff] }
  0x34   :  { %428 = vmatpush.msrb.mxu3 %v1970_v19  ;;  %2801 = vst [vmem:[#allocation24_spill] sm:$0xff] %v1984_v14  ;;  %393 = vmatpush.msrb.mxu1 %v1984_v14  ;;  %v2008_v19 = vld [vmem:[%s2725_s3 + $0x118] sm:$0xff] }
  0x35   :  { %448 = vmatpush.msrb.mxu0 %v1975_v16  ;;  %2803 = vst [vmem:[#allocation26_spill] sm:$0xff] %v1994_v12  ;;  %v2001_v16 = vld [vmem:[%s2725_s3 + $0x2c0] sm:$0xff]  ;;  %v2013_v14 = vld [vmem:[%s2725_s3 + $0x198] sm:$0xff] }
  0x36   :  { %2804 = vst [vmem:[#allocation27_spill] sm:$0xff] %v2001_v16  ;;  %429 = vmatpush.msrb.mxu3 %v1994_v12  ;;  %394 = vmatpush.msrb.mxu1 %v2008_v19  ;;  %v2032_v12 = vld [vmem:[%s2725_s3 + $0x110] sm:$0xff] }
  0x37   :  { %449 = vmatpush.msrb.mxu0 %v2001_v16  ;;  %2805 = vst [vmem:[#allocation28_spill] sm:$0xff] %v2008_v19  ;;  %414 = vmatpush.msra.mxu2 %v2013_v14  ;;  %v2025_v16 = vld [vmem:[%s2725_s3 + $0x2b8] sm:$0xff]  ;;  %v2037_v19 = vld [vmem:[%s2725_s3 + $0x190] sm:$0xff] }
  0x38   :  { %2806 = vst [vmem:[#allocation29_spill] sm:$0xff] %v2013_v14  ;;  %430 = vmatpush.msrb.mxu3 %v2018_v22  ;;  %v2042_v14 = vld [vmem:[%s2725_s3 + $0x230] sm:$0xff]  ;;  %395 = vmatpush.msrb.mxu1 %v2032_v12 }
  0x39   :  { %2807 = vst [vmem:[#allocation30_spill] sm:$0xff] %v2018_v22  ;;  %450 = vmatpush.msrb.mxu0 %v2025_v16  ;;  %415 = vmatpush.msra.mxu2 %v2037_v19  ;;  %v2056_v22 = vld [vmem:[%s2725_s3 + $0x108] sm:$0xff] }
  0x3a   :  { %2808 = vst [vmem:[#allocation31_spill] sm:$0xff] %v2025_v16  ;;  %v2049_v16 = vld [vmem:[%s2725_s3 + $0x2b0] sm:$0xff]  ;;  %431 = vmatpush.msrb.mxu3 %v2042_v14  ;;  %396 = vmatpush.msrb.mxu1 %v2056_v22 }
  0x3b   :  { %2809 = vst [vmem:[#allocation32_spill] sm:$0xff] %v2032_v12  ;;  %451 = vmatpush.msrb.mxu0 %v2049_v16  ;;  %v2061_v12 = vld [vmem:[%s2725_s3 + $0x188] sm:$0xff] }
  0x3c   :  { %2810 = vst [vmem:[#allocation33_spill] sm:$0xff] %v2037_v19  ;;  %v2066_v19 = vld [vmem:[%s2725_s3 + $0x228] sm:$0xff]  ;;  %416 = vmatpush.msra.mxu2 %v2061_v12 }
  0x3d   :  { %2811 = vst [vmem:[#allocation34_spill] sm:$0xff] %v2042_v14  ;;  %v2078_v14 = vld [vmem:[%s2725_s3 + $0x100] sm:$0xff]  ;;  %432 = vmatpush.msrb.mxu3 %v2066_v19 }
  0x3e   :  { %2812 = vst [vmem:[#allocation35_spill] sm:$0xff] %v2049_v16  ;;  %v2073_v16 = vld [vmem:[%s2725_s3 + $0x2a8] sm:$0xff]  ;;  %397 = vmatpush.msrb.mxu1 %v2078_v14  ;;  %417 = vmatpush.msra.mxu2 %v2083_v9  ;;  %v1419_v9 = vld [vmem:[%s2723_s1 + $0x70] sm:$0xff] }
  0x3f   :  { %2813 = vst [vmem:[#allocation36_spill] sm:$0xff] %v2056_v22  ;;  %452 = vmatpush.msrb.mxu0 %v2073_v16  ;;  %v2095_v22 = vld [vmem:[%s2725_s3 + $0x2a0] sm:$0xff] }
  0x40   :  { %2814 = vst [vmem:[#allocation37_spill] sm:$0xff] %v2061_v12  ;;  %v2090_v12 = vld [vmem:[%s2725_s3 + $0x220] sm:$0xff] }
  0x41   :  { %2815 = vst [vmem:[#allocation38_spill] sm:$0xff] %v2066_v19  ;;  %433 = vmatpush.msrb.mxu3 %v2090_v12  ;;  %453 = vmatpush.msrb.mxu0 %v2095_v22  ;;  %v2107_v19 = vld [vmem:[%s2725_s3 + $0x218] sm:$0xff] }
  0x42   :  { %2816 = vst [vmem:[#allocation39_spill] sm:$0xff] %v2073_v16  ;;  %v1426_v16 = vld [vmem:[%s2723_s1 + $0xa8] sm:$0x3] }
  0x43   :  { %2817 = vst [vmem:[#allocation40_spill] sm:$0xff] %v2078_v14  ;;  %1433 = vmatpush.msk.msrb.mxu2 %vm37_vm0, %v1426_v16  ;;  %434 = vmatpush.msrb.mxu3 %v2107_v19  ;;  %v2133_v16 = vld [vmem:[%s2725_s3 + $0x208] sm:$0xff] }
  0x44   :  { %2819 = vst [vmem:[#allocation42_spill] sm:$0xff] %v2090_v12  ;;  %v2124_v12 = vld [vmem:[%s2725_s3 + $0x290] sm:$0xff]  ;;  %454 = vmatpush.msrb.mxu0 %v2112_v6  ;;  %v2142_v14 = vld [vmem:[%s2725_s3 + $0x288] sm:$0xff]  ;;  %v2147_v6 = vld [vmem:[%s2725_s3 + $0x300] sm:$0xff] }
  0x45   :  { %2820 = vst [vmem:[#allocation43_spill] sm:$0xff] %v2095_v22  ;;  %v2119_v22 = vld [vmem:[%s2725_s3 + $0x210] sm:$0xff]  ;;  %537 = vmatpush.msrb.mxu2 %v1419_v9  ;;  %v2160_v9 = vld [vmem:[%s2725_s3 + $0x280] sm:$0xff] }
  0x46   :  { %2821 = vst [vmem:[#allocation44_spill] sm:$0xff] %v2107_v19  ;;  %v322_v19 = vld [vmem:[%s2725_s3 + $0x308] sm:$0x3]  ;;  %435 = vmatpush.msrb.mxu3 %v2119_v22  ;;  %455 = vmatpush.msrb.mxu0 %v2124_v12 }
  0x47   :  { %2823 = vst [vmem:[#allocation46_spill] sm:$0xff] %v2119_v22  ;;  %1416 = vmatpush.msk.msra.mxu1 %vm37_vm0, %v322_v19 }
  0x48   :  { %2824 = vst [vmem:[#allocation47_spill] sm:$0xff] %v2124_v12  ;;  %436 = vmatpush.msrb.mxu3 %v2133_v16  ;;  %456 = vmatpush.msrb.mxu0 %v2142_v14 }
  0x49   :  { %2825 = vst [vmem:[#allocation48_spill] sm:$0xff] %v2133_v16  ;;  %477 = vmatpush.msra.mxu1 %v2147_v6 }
  0x4a   :  { %2826 = vst [vmem:[#allocation49_spill] sm:$0xff] %v2142_v14  ;;  %437 = vmatpush.msrb.mxu3 %v2154_v5  ;;  %457 = vmatpush.msrb.mxu0 %v2160_v9 }
  0x4b   :  { %2827 = vst [vmem:[#allocation50_spill] sm:$0xff] %v2147_v6 }
  0x4c   :  { %2829 = vst [vmem:[#allocation52_spill] sm:$0xff] %v2160_v9 }
  0x84   :  { %v96_v8 = vpop.f32.mrf.mxu1 }
  0x85   :  { %v206_v16 = vrot.slane %v96_v8, 7 }
  0x88   :  { %v76_v7 = vpop.f32.mrf.mxu2 }
  0x89   :  { %v213_v5 = vsel %vm212_vm3, %v76_v7, %v206_v16  ;;  %v1428_v7 = vld [vmem:[%s2723_s1 + $0xb8] sm:$0x3]  ;;  %v1430_v16 = vld [vmem:[%s2723_s1 + $0xc8] sm:$0x3] }
  0x8c   :  { %v156_v12 = vpop.f32.mrf.mxu1 }
  0x8d   :  { %v209_v1 = vrot.slane %v156_v12, 4 }
  0x90   :  { %v116_v22 = vpop.f32.mrf.mxu2 }
  0x91   :  { %v207_v0 = vrot.slane %v116_v22, 6 }
  0x94   :  { %v176_v4 = vpop.f32.mrf.mxu1 }
  0x95   :  { %v210_v63 = vrot.slane %v176_v4, 3 }
  0x97   :  { %v218_v9 = vsel %vm217_vm4, %v209_v1, %v210_v63  ;;  %v1427_v63 = vld [vmem:[%s2723_s1 + $0xb0] sm:$0x3]  ;;  %v1420_v1 = vld [vmem:[%s2723_s1 + $0x78] sm:$0xff] }
  0x98   :  { %v136_v19 = vpop.f32.mrf.mxu2 }
  0x99   :  { %v208_v3 = vrot.slane %v136_v19, 5  ;;  %v18_v19 = vld [vmem:[%s2726_s2] ss:$4 sm:$0x7f] }
  0x9b   :  { %v215_v62 = vsel %vm214_vm2, %v207_v0, %v208_v3 }
  0x9c   :  { %v216_v8 = vsel %vm37_vm0, %v213_v5, %v215_v62  ;;  %v1421_v62 = vld [vmem:[%s2723_s1 + $0x80] sm:$0xff] }
  0xa0   :  { %v196_v14 = vpop.f32.mrf.mxu2 }
  0xa1   :  { %v211_v6 = vrot.slane %v196_v14, 2 }
  0xa3   :  { %v220_v4 = vsel %vm219_vm5, %v218_v9, %v211_v6  ;;  %v1429_v9 = vld [vmem:[%s2723_s1 + $0xc0] sm:$0x3] }
  0xa4   :  { %v222_v12 = vsel %vm221_vm6, %v216_v8, %v220_v4  ;;  %v2871_v8 = vld [vmem:[#allocation43_spill] sm:$0xff]  ;;  %v2872_v4 = vld [vmem:[#allocation44_spill] sm:$0xff] }
  0xa5   :  { %v224_v22 = vadd.f32 %v222_v12, %v18_v19  ;;  %v2870_v19 = vld [vmem:[#allocation42_spill] sm:$0xff]  ;;  %v2873_v12 = vld [vmem:[#allocation45_spill] sm:$0xff] }
  0xa7   :  { %v324_v0 = vperm.slane %v224_v22, 0  ;;  %v325_v3 = vperm.slane %v224_v22, 1  ;;  %v326_v61 = vperm.slane %v224_v22, 2  ;;  %v327_v14 = vperm.slane %v224_v22, 3 }
  0xa8   :  { %v329_v5 = vperm.slane %v224_v22, 5  ;;  %v330_v6 = vperm.slane %v224_v22, 6 }
  0xa9   :  { %358 = vmatmul.f32.vlgmr.msra.gmra.mxu3 %v324_v0  ;;  %378 = vmatmul.f32.vlgmr.msra.gmra.mxu0 %v325_v3  ;;  %v2875_v0 = vld [vmem:[#allocation47_spill] sm:$0xff]  ;;  %v2876_v3 = vld [vmem:[#allocation48_spill] sm:$0xff] }
  0xaa   :  { %398 = vmatmul.f32.vlgmr.msrb.gmra.mxu1 %v326_v61  ;;  %418 = vmatmul.f32.vlgmr.msra.gmra.mxu2 %v327_v14  ;;  %v328_v61 = vperm.slane %v224_v22, 4  ;;  %v2874_v22 = vld [vmem:[#allocation46_spill] sm:$0xff]  ;;  %v2877_v14 = vld [vmem:[#allocation49_spill] sm:$0xff] }
  0xab   :  { %1437 = vmatpush.msk.msra.mxu2 %vm37_vm0, %v1428_v7  ;;  %1435 = vmatpush.msk.msrb.mxu1 %vm37_vm0, %v1427_v63  ;;  %v2878_v7 = vld [vmem:[#allocation51_spill] sm:$0xff]  ;;  %v2879_v63 = vld [vmem:[#allocation52_spill] sm:$0xff] }
  0xac   :  { %800 = vmatpush.msra.mxu3 %v1547_v10  ;;  %820 = vmatpush.msra.mxu0 %v1552_v11  ;;  %v1423_v10 = vld [vmem:[%s2723_s1 + $0x90] sm:$0xff]  ;;  %v1422_v11 = vld [vmem:[%s2723_s1 + $0x88] sm:$0xff] }
  0xad   :  { %577 = vmatpush.msra.mxu2 %v1421_v62  ;;  %557 = vmatpush.msrb.mxu1 %v1420_v1 }
  0xae   :  { %801 = vmatpush.msra.mxu3 %v1562_v13  ;;  %821 = vmatpush.msra.mxu0 %v1571_v15  ;;  %v1432_v13 = vld [vmem:[%s2723_s1 + $0xd8] sm:$0x3]  ;;  %v1431_v15 = vld [vmem:[%s2723_s1 + $0xd0] sm:$0x3] }
  0xb0   :  { %802 = vmatpush.msra.mxu3 %v1580_v17  ;;  %822 = vmatpush.msra.mxu0 %v1587_v18  ;;  %v1425_v17 = vld [vmem:[%s2723_s1 + $0xa0] sm:$0xff]  ;;  %v1424_v18 = vld [vmem:[%s2723_s1 + $0x98] sm:$0xff] }
  0xb1   :  { %438 = vmatmul.f32.vlgmr.msrb.gmra.mxu3 %v328_v61  ;;  %458 = vmatmul.f32.vlgmr.msrb.gmra.mxu0 %v329_v5 }
  0xb2   :  { %1417 = vmatmul.msk.f32.vlgmr.msra.gmra.mxu1 %vm33_vm1, %v330_v6  ;;  %1434 = vmatmul.msk.f32.vlgmr.msrb.gmra.mxu2 %vm33_vm1, %v1515_v2 }
  0xb3   :  { %1441 = vmatpush.msk.msrb.mxu2 %vm37_vm0, %v1430_v16  ;;  %1439 = vmatpush.msk.msra.mxu1 %vm37_vm0, %v1429_v9 }
  0xb4   :  { %803 = vmatpush.msra.mxu3 %v1597_v20  ;;  %823 = vmatpush.msra.mxu0 %v1602_v21  ;;  %v2830_v20 = vld [vmem:[#allocation2_spill] sm:$0xff]  ;;  %v2831_v21 = vld [vmem:[#allocation3_spill] sm:$0xff] }
  0xb5   :  { %617 = vmatpush.msrb.mxu2 %v1423_v10  ;;  %597 = vmatpush.msra.mxu1 %v1422_v11 }
  0xb6   :  { %804 = vmatpush.msra.mxu3 %v1616_v23  ;;  %824 = vmatpush.msra.mxu0 %v1621_v24  ;;  %v2832_v23 = vld [vmem:[#allocation4_spill] sm:$0xff]  ;;  %v2833_v24 = vld [vmem:[#allocation5_spill] sm:$0xff] }
  0xb8   :  { %805 = vmatpush.msra.mxu3 %v1628_v25  ;;  %825 = vmatpush.msra.mxu0 %v1633_v26  ;;  %v2834_v25 = vld [vmem:[#allocation6_spill] sm:$0xff]  ;;  %v2835_v26 = vld [vmem:[#allocation7_spill] sm:$0xff] }
  0xba   :  { %1436 = vmatmul.msk.f32.vlgmr.msrb.gmra.mxu1 %vm33_vm1, %v1515_v2  ;;  %1438 = vmatmul.msk.f32.vlgmr.msra.gmra.mxu2 %vm33_vm1, %v1515_v2 }
  0xbb   :  { %1445 = vmatpush.msk.msra.mxu2 %vm37_vm0, %v1432_v13  ;;  %1443 = vmatpush.msk.msrb.mxu1 %vm37_vm0, %v1431_v15 }
  0xbc   :  { %806 = vmatpush.msra.mxu3 %v1640_v27  ;;  %826 = vmatpush.msra.mxu0 %v1647_v28  ;;  %v2836_v27 = vld [vmem:[#allocation8_spill] sm:$0xff]  ;;  %v2837_v28 = vld [vmem:[#allocation9_spill] sm:$0xff] }
  0xbd   :  { %657 = vmatpush.msra.mxu2 %v1425_v17  ;;  %637 = vmatpush.msrb.mxu1 %v1424_v18 }
  0xbe   :  { %807 = vmatpush.msra.mxu3 %v1652_v29  ;;  %827 = vmatpush.msra.mxu0 %v1660_v30  ;;  %v2838_v29 = vld [vmem:[#allocation10_spill] sm:$0xff]  ;;  %v2839_v30 = vld [vmem:[#allocation11_spill] sm:$0xff] }
  0xc0   :  { %808 = vmatpush.msra.mxu3 %v1668_v31  ;;  %828 = vmatpush.msra.mxu0 %v1674_v32  ;;  %v2840_v31 = vld [vmem:[#allocation12_spill] sm:$0xff]  ;;  %v2841_v32 = vld [vmem:[#allocation13_spill] sm:$0xff] }
  0xc2   :  { %1440 = vmatmul.msk.f32.vlgmr.msra.gmra.mxu1 %vm33_vm1, %v1515_v2  ;;  %1442 = vmatmul.msk.f32.vlgmr.msrb.gmra.mxu2 %vm33_vm1, %v1515_v2 }
  0xc3   :  { %809 = vmatpush.msra.mxu3 %v1680_v33  ;;  %829 = vmatpush.msra.mxu0 %v1686_v34  ;;  %v2842_v33 = vld [vmem:[#allocation14_spill] sm:$0xff]  ;;  %v2843_v34 = vld [vmem:[#allocation15_spill] sm:$0xff] }
  0xc4   :  { %840 = vmatpush.msra.mxu1 %v1720_v39  ;;  %860 = vmatpush.msrb.mxu2 %v1725_v40  ;;  %v2848_v39 = vld [vmem:[#allocation20_spill] sm:$0xff]  ;;  %v2849_v40 = vld [vmem:[#allocation21_spill] sm:$0xff] }
  0xc5   :  { %810 = vmatpush.msra.mxu3 %v1696_v35  ;;  %830 = vmatpush.msra.mxu0 %v1701_v36  ;;  %v2844_v35 = vld [vmem:[#allocation16_spill] sm:$0xff]  ;;  %v2845_v36 = vld [vmem:[#allocation17_spill] sm:$0xff] }
  0xc6   :  { %841 = vmatpush.msra.mxu1 %v1742_v43  ;;  %861 = vmatpush.msrb.mxu2 %v1747_v44  ;;  %v2852_v43 = vld [vmem:[#allocation24_spill] sm:$0xff]  ;;  %v2853_v44 = vld [vmem:[#allocation25_spill] sm:$0xff] }
  0xc7   :  { %811 = vmatpush.msra.mxu3 %v1708_v37  ;;  %831 = vmatpush.msra.mxu0 %v1713_v38  ;;  %v2846_v37 = vld [vmem:[#allocation18_spill] sm:$0xff]  ;;  %v2847_v38 = vld [vmem:[#allocation19_spill] sm:$0xff] }
  0xc8   :  { %842 = vmatpush.msra.mxu1 %v1764_v47  ;;  %862 = vmatpush.msrb.mxu2 %v1771_v48  ;;  %v2856_v47 = vld [vmem:[#allocation28_spill] sm:$0xff]  ;;  %v2857_v48 = vld [vmem:[#allocation29_spill] sm:$0xff] }
  0xc9   :  { %812 = vmatpush.msra.mxu3 %v1730_v41  ;;  %832 = vmatpush.msra.mxu0 %v1737_v42  ;;  %v2850_v41 = vld [vmem:[#allocation22_spill] sm:$0xff]  ;;  %v2851_v42 = vld [vmem:[#allocation23_spill] sm:$0xff] }
  0xca   :  { %1444 = vmatmul.msk.f32.vlgmr.msrb.gmra.mxu1 %vm33_vm1, %v1515_v2  ;;  %1446 = vmatmul.msk.f32.vlgmr.msra.gmra.mxu2 %vm33_vm1, %v1515_v2 }
  0xcb   :  { %813 = vmatpush.msra.mxu3 %v1754_v45  ;;  %833 = vmatpush.msra.mxu0 %v1759_v46  ;;  %v2854_v45 = vld [vmem:[#allocation26_spill] sm:$0xff]  ;;  %v2855_v46 = vld [vmem:[#allocation27_spill] sm:$0xff] }
  0xcc   :  { %843 = vmatpush.msra.mxu1 %v1792_v51  ;;  %863 = vmatpush.msrb.mxu2 %v1797_v52  ;;  %v2860_v51 = vld [vmem:[#allocation32_spill] sm:$0xff]  ;;  %v2861_v52 = vld [vmem:[#allocation33_spill] sm:$0xff] }
  0xcd   :  { %814 = vmatpush.msra.mxu3 %v1776_v49  ;;  %834 = vmatpush.msra.mxu0 %v1781_v50  ;;  %v2858_v49 = vld [vmem:[#allocation30_spill] sm:$0xff]  ;;  %v2859_v50 = vld [vmem:[#allocation31_spill] sm:$0xff] }
  0xce   :  { %844 = vmatpush.msra.mxu1 %v1816_v55  ;;  %864 = vmatpush.msrb.mxu2 %v1821_v56  ;;  %v2864_v55 = vld [vmem:[#allocation36_spill] sm:$0xff]  ;;  %v2865_v56 = vld [vmem:[#allocation37_spill] sm:$0xff] }
  0xcf   :  { %815 = vmatpush.msra.mxu3 %v1804_v53  ;;  %835 = vmatpush.msra.mxu0 %v1809_v54  ;;  %v2862_v53 = vld [vmem:[#allocation34_spill] sm:$0xff]  ;;  %v2863_v54 = vld [vmem:[#allocation35_spill] sm:$0xff] }
  0xd0   :  { %845 = vmatpush.msra.mxu1 %v1838_v59  ;;  %865 = vmatpush.msrb.mxu2 %v1843_v60  ;;  %v2868_v59 = vld [vmem:[#allocation40_spill] sm:$0xff]  ;;  %v2869_v60 = vld [vmem:[#allocation41_spill] sm:$0xff] }
  0xd1   :  { %880 = vmatpush.msrb.mxu3 %v1826_v57  ;;  %900 = vmatpush.msrb.mxu0 %v1833_v58  ;;  %v2866_v57 = vld [vmem:[#allocation38_spill] sm:$0xff]  ;;  %v2867_v58 = vld [vmem:[#allocation39_spill] sm:$0xff] }
  0xd2   :  { %846 = vmatpush.msra.mxu1 %v2832_v23  ;;  %866 = vmatpush.msrb.mxu2 %v2833_v24  ;;  %v1450_v23 = vld [vmem:[%s2723_s1 + $0xe0] sm:$0xff]  ;;  %v780_v24 = vld [vmem:[%s2725_s3 + $0x308] sm:$0x3] }
  0xd3   :  { %881 = vmatpush.msrb.mxu3 %v2830_v20  ;;  %901 = vmatpush.msrb.mxu0 %v2831_v21  ;;  %v1457_v21 = vld [vmem:[%s2723_s1 + $0x118] sm:$0x3] }
  0xd4   :  { %847 = vmatpush.msra.mxu1 %v2836_v27  ;;  %867 = vmatpush.msrb.mxu2 %v2837_v28 }
  0xd5   :  { %882 = vmatpush.msrb.mxu3 %v2834_v25  ;;  %902 = vmatpush.msrb.mxu0 %v2835_v26  ;;  %v2880_v26 = vld [vmem:[#allocation50_spill] sm:$0xff] }
  0xd6   :  { %848 = vmatpush.msra.mxu1 %v2840_v31  ;;  %868 = vmatpush.msrb.mxu2 %v2841_v32 }
  0xd7   :  { %883 = vmatpush.msrb.mxu3 %v2838_v29  ;;  %903 = vmatpush.msrb.mxu0 %v2839_v30 }
  0xd8   :  { %849 = vmatpush.msra.mxu1 %v2844_v35  ;;  %869 = vmatpush.msrb.mxu2 %v2845_v36 }
  0xd9   :  { %884 = vmatpush.msrb.mxu3 %v2842_v33  ;;  %904 = vmatpush.msrb.mxu0 %v2843_v34 }
  0xda   :  { %850 = vmatpush.msra.mxu1 %v2848_v39  ;;  %870 = vmatpush.msrb.mxu2 %v2849_v40 }
  0xdb   :  { %885 = vmatpush.msrb.mxu3 %v2846_v37  ;;  %905 = vmatpush.msrb.mxu0 %v2847_v38 }
  0xdc   :  { %851 = vmatpush.msra.mxu1 %v2852_v43  ;;  %871 = vmatpush.msrb.mxu2 %v2853_v44 }
  0xdd   :  { %886 = vmatpush.msrb.mxu3 %v2850_v41  ;;  %906 = vmatpush.msrb.mxu0 %v2851_v42  ;;  %v1418_v41 = vld [vmem:[%s2726_s2 + $0x1] ss:$4 sm:$0x7f] }
  0xde   :  { %852 = vmatpush.msra.mxu1 %v2856_v47  ;;  %872 = vmatpush.msrb.mxu2 %v2857_v48 }
  0xdf   :  { %887 = vmatpush.msrb.mxu3 %v2854_v45  ;;  %907 = vmatpush.msrb.mxu0 %v2855_v46 }
  0xe0   :  { %853 = vmatpush.msra.mxu1 %v2860_v51  ;;  %873 = vmatpush.msrb.mxu2 %v2861_v52  ;;  %v1458_v51 = vld [vmem:[%s2723_s1 + $0x120] sm:$0x3]  ;;  %v1452_v52 = vld [vmem:[%s2723_s1 + $0xf0] sm:$0xff] }
  0xe1   :  { %888 = vmatpush.msrb.mxu3 %v2858_v49  ;;  %908 = vmatpush.msrb.mxu0 %v2859_v50  ;;  %v1459_v50 = vld [vmem:[%s2723_s1 + $0x128] sm:$0x3] }
  0xe2   :  { %854 = vmatpush.msra.mxu1 %v2864_v55  ;;  %874 = vmatpush.msrb.mxu2 %v2865_v56  ;;  %v1171_v55 = vld [vmem:[%s2725_s3 + $0xf8] sm:$0xff]  ;;  %v1154_v56 = vld [vmem:[%s2725_s3 + $0x70] sm:$0xff] }
  0xe3   :  { %889 = vmatpush.msrb.mxu3 %v2862_v53  ;;  %909 = vmatpush.msrb.mxu0 %v2863_v54  ;;  %v1451_v53 = vld [vmem:[%s2723_s1 + $0xe8] sm:$0xff]  ;;  %v1155_v54 = vld [vmem:[%s2725_s3 + $0x78] sm:$0xff] }
  0xe4   :  { %855 = vmatpush.msra.mxu1 %v2868_v59  ;;  %875 = vmatpush.msrb.mxu2 %v2869_v60  ;;  %v1169_v59 = vld [vmem:[%s2725_s3 + $0xe8] sm:$0xff] }
  0xe5   :  { %890 = vmatpush.msrb.mxu3 %v2866_v57  ;;  %910 = vmatpush.msrb.mxu0 %v2867_v58  ;;  %v1170_v57 = vld [vmem:[%s2725_s3 + $0xf0] sm:$0xff]  ;;  %v1153_v58 = vld [vmem:[%s2725_s3 + $0x68] sm:$0xff] }
  0xe6   :  { %1464 = vmatpush.msk.msra.mxu2 %vm37_vm0, %v1457_v21  ;;  %1447 = vmatpush.msk.msrb.mxu1 %vm37_vm0, %v780_v24  ;;  %v1161_v21 = vld [vmem:[%s2725_s3 + $0xa8] sm:$0xff]  ;;  %v1160_v24 = vld [vmem:[%s2725_s3 + $0xa0] sm:$0xff] }
  0xe7   :  { %891 = vmatpush.msrb.mxu3 %v2870_v19  ;;  %911 = vmatpush.msrb.mxu0 %v2871_v8 }
  0xe8   :  { %994 = vmatpush.msra.mxu2 %v1450_v23  ;;  %935 = vmatpush.msrb.mxu1 %v2880_v26  ;;  %v1144_v23 = vld [vmem:[%s2725_s3 + $0x20] sm:$0xff]  ;;  %v1203_v26 = vld [vmem:[%s2725_s3 + $0x1f8] sm:$0xff] }
  0xe9   :  { %892 = vmatpush.msrb.mxu3 %v2872_v4  ;;  %912 = vmatpush.msrb.mxu0 %v2873_v12  ;;  %v1461_v4 = vld [vmem:[%s2723_s1 + $0x138] sm:$0x3]  ;;  %v1460_v12 = vld [vmem:[%s2723_s1 + $0x130] sm:$0x3] }
  0xeb   :  { %893 = vmatpush.msrb.mxu3 %v2874_v22  ;;  %913 = vmatpush.msrb.mxu0 %v2875_v0  ;;  %v1152_v22 = vld [vmem:[%s2725_s3 + $0x60] sm:$0xff] }
  0xec   :  { %v1168_v0 = vld [vmem:[%s2725_s3 + $0xe0] sm:$0xff] }
  0xed   :  { %894 = vmatpush.msrb.mxu3 %v2876_v3  ;;  %914 = vmatpush.msrb.mxu0 %v2877_v14  ;;  %v1454_v3 = vld [vmem:[%s2723_s1 + $0x100] sm:$0xff]  ;;  %v1453_v14 = vld [vmem:[%s2723_s1 + $0xf8] sm:$0xff] }
  0xef   :  { %895 = vmatpush.msrb.mxu3 %v2878_v7  ;;  %915 = vmatpush.msrb.mxu0 %v2879_v63  ;;  %v1463_v7 = vld [vmem:[%s2723_s1 + $0x148] sm:$0x3]  ;;  %v1462_v63 = vld [vmem:[%s2723_s1 + $0x140] sm:$0x3] }
 0x126   :  { %v379_v1 = vpop.f32.mrf.mxu0 }
 0x127   :  { %v399_v62 = vpop.f32.mrf.mxu1 }
 0x12c   :  { %v359_v61 = vpop.f32.mrf.mxu3 }
 0x12d   :  { %v380_v5 = vadd.f32 %v379_v1, %v359_v61  ;;  %v419_v6 = vpop.f32.mrf.mxu2  ;;  %v1455_v1 = vld [vmem:[%s2723_s1 + $0x108] sm:$0xff]  ;;  %v1151_v61 = vld [vmem:[%s2725_s3 + $0x58] sm:$0xff] }
 0x12e   :  { %v459_v17 = vpop.f32.mrf.mxu0 }
 0x12f   :  { %v400_v16 = vadd.f32 %v399_v62, %v380_v5  ;;  %v479_v9 = vpop.f32.mrf.mxu1  ;;  %v1456_v62 = vld [vmem:[%s2723_s1 + $0x110] sm:$0xff]  ;;  %v1167_v5 = vld [vmem:[%s2725_s3 + $0xd8] sm:$0xff] }
 0x131   :  { %v420_v10 = vadd.f32 %v419_v6, %v400_v16  ;;  %v1150_v6 = vld [vmem:[%s2725_s3 + $0x50] sm:$0xff] }
 0x132   :  { %v1166_v16 = vld [vmem:[%s2725_s3 + $0xd0] sm:$0xff] }
 0x134   :  { %v439_v11 = vpop.f32.mrf.mxu3 }
 0x135   :  { %v440_v13 = vadd.f32 %v439_v11, %v420_v10  ;;  %v539_v15 = vpop.f32.mrf.mxu2  ;;  %v1148_v10 = vld [vmem:[%s2725_s3 + $0x40] sm:$0xff] }
 0x136   :  { %v1164_v11 = vld [vmem:[%s2725_s3 + $0xc0] sm:$0xff] }
 0x137   :  { %v460_v18 = vadd.f32 %v459_v17, %v440_v13  ;;  %v559_v20 = vpop.f32.mrf.mxu1  ;;  %v1147_v13 = vld [vmem:[%s2725_s3 + $0x38] sm:$0xff]  ;;  %v1146_v17 = vld [vmem:[%s2725_s3 + $0x30] sm:$0xff] }
 0x138   :  { %v669_v32 = vrot.slane %v559_v20, 7  ;;  %v1145_v20 = vld [vmem:[%s2725_s3 + $0x28] sm:$0xff] }
 0x139   :  { %v480_v25 = vadd.f32 %v479_v9, %v460_v18  ;;  %v1165_v9 = vld [vmem:[%s2725_s3 + $0xc8] sm:$0xff]  ;;  %v1162_v18 = vld [vmem:[%s2725_s3 + $0xb0] sm:$0xff] }
 0x13a   :  { %v675_v39 = vsel %vm212_vm3, %v539_v15, %v669_v32  ;;  %v1163_v15 = vld [vmem:[%s2725_s3 + $0xb8] sm:$0xff]  ;;  %v1158_v32 = vld [vmem:[%s2725_s3 + $0x90] sm:$0xff] }
 0x13b   :  { %483 = vst.msk [vmem:[%s2727_s4] sm:$0x1] %vm482_vm7, %v480_v25  ;;  %v1187_v25 = vld [vmem:[%s2725_s3 + $0x178] sm:$0xff] }
 0x13d   :  { %v579_v27 = vpop.f32.mrf.mxu2 }
 0x13e   :  { %v670_v33 = vrot.slane %v579_v27, 6  ;;  %v1143_v27 = vld [vmem:[%s2725_s3 + $0x18] sm:$0xff] }
 0x13f   :  { %v599_v28 = vpop.f32.mrf.mxu1 }
 0x140   :  { %v671_v31 = vrot.slane %v599_v28, 5  ;;  %v1159_v28 = vld [vmem:[%s2725_s3 + $0x98] sm:$0xff] }
 0x142   :  { %v676_v35 = vsel %vm214_vm2, %v670_v33, %v671_v31  ;;  %v1142_v31 = vld [vmem:[%s2725_s3 + $0x10] sm:$0xff]  ;;  %v1185_v33 = vld [vmem:[%s2725_s3 + $0x168] sm:$0xff] }
 0x143   :  { %v677_v42 = vsel %vm37_vm0, %v675_v39, %v676_v35  ;;  %v1141_v35 = vld [vmem:[%s2725_s3 + $0x8] sm:$0xff]  ;;  %v1140_v39 = vld [vmem:[%s2725_s3] sm:$0xff] }
 0x145   :  { %v619_v29 = vpop.f32.mrf.mxu2 }
 0x146   :  { %v672_v36 = vrot.slane %v619_v29, 4  ;;  %v1186_v29 = vld [vmem:[%s2725_s3 + $0x170] sm:$0xff] }
 0x147   :  { %v639_v30 = vpop.f32.mrf.mxu1 }
 0x148   :  { %v673_v34 = vrot.slane %v639_v30, 3  ;;  %v1202_v30 = vld [vmem:[%s2725_s3 + $0x1f0] sm:$0xff] }
 0x14a   :  { %v678_v40 = vsel %vm217_vm4, %v672_v36, %v673_v34  ;;  %v1201_v34 = vld [vmem:[%s2725_s3 + $0x1e8] sm:$0xff] }
 0x14b   :  { %v1157_v36 = vld [vmem:[%s2725_s3 + $0x88] sm:$0xff] }
 0x14d   :  { %v659_v37 = vpop.f32.mrf.mxu2 }
 0x14e   :  { %v674_v38 = vrot.slane %v659_v37, 2  ;;  %v1184_v37 = vld [vmem:[%s2725_s3 + $0x160] sm:$0xff] }
 0x150   :  { %v679_v43 = vsel %vm219_vm5, %v678_v40, %v674_v38  ;;  %v1200_v38 = vld [vmem:[%s2725_s3 + $0x1e0] sm:$0xff] }
 0x151   :  { %v680_v44 = vsel %vm221_vm6, %v677_v42, %v679_v43  ;;  %v1156_v40 = vld [vmem:[%s2725_s3 + $0x80] sm:$0xff]  ;;  %v1199_v42 = vld [vmem:[%s2725_s3 + $0x1d8] sm:$0xff] }
 0x152   :  { %v682_v45 = vadd.f32 %v1418_v41, %v680_v44  ;;  %v1183_v41 = vld [vmem:[%s2725_s3 + $0x158] sm:$0xff] }
 0x153   :  { %v1219_v43 = vld [vmem:[%s2725_s3 + $0x278] sm:$0xff] }
 0x154   :  { %v782_v46 = vperm.slane %v682_v45, 0  ;;  %v783_v47 = vperm.slane %v682_v45, 1  ;;  %v784_v48 = vperm.slane %v682_v45, 2  ;;  %v785_v49 = vperm.slane %v682_v45, 3  ;;  %v1235_v44 = vld [vmem:[%s2725_s3 + $0x2f8] sm:$0xff] }
 0x155   :  { %v786_v60 = vperm.slane %v682_v45, 4  ;;  %v787_v19 = vperm.slane %v682_v45, 5  ;;  %v788_v8 = vperm.slane %v682_v45, 6  ;;  %v1182_v45 = vld [vmem:[%s2725_s3 + $0x150] sm:$0xff] }
 0x156   :  { %816 = vmatmul.f32.vlgmr.msra.gmra.mxu3 %v782_v46  ;;  %836 = vmatmul.f32.vlgmr.msra.gmra.mxu0 %v783_v47  ;;  %v1198_v46 = vld [vmem:[%s2725_s3 + $0x1d0] sm:$0xff] }
 0x157   :  { %856 = vmatmul.f32.vlgmr.msra.gmra.mxu1 %v784_v48  ;;  %876 = vmatmul.f32.vlgmr.msrb.gmra.mxu2 %v785_v49  ;;  %v1218_v47 = vld [vmem:[%s2725_s3 + $0x270] sm:$0xff]  ;;  %v1181_v49 = vld [vmem:[%s2725_s3 + $0x148] sm:$0xff] }
 0x158   :  { %1468 = vmatpush.msk.msrb.mxu2 %vm37_vm0, %v1459_v50  ;;  %1466 = vmatpush.msk.msra.mxu1 %vm37_vm0, %v1458_v51  ;;  %v1234_v48 = vld [vmem:[%s2725_s3 + $0x2f0] sm:$0xff]  ;;  %v1197_v50 = vld [vmem:[%s2725_s3 + $0x1c8] sm:$0xff] }
 0x159   :  { %1257 = vmatpush.msra.mxu3 %v1155_v54  ;;  %1277 = vmatpush.msra.mxu0 %v1171_v55  ;;  %v1217_v51 = vld [vmem:[%s2725_s3 + $0x268] sm:$0xff]  ;;  %v1196_v54 = vld [vmem:[%s2725_s3 + $0x1c0] sm:$0xff] }
 0x15a   :  { %1034 = vmatpush.msrb.mxu2 %v1452_v52  ;;  %1014 = vmatpush.msra.mxu1 %v1451_v53  ;;  %v1233_v52 = vld [vmem:[%s2725_s3 + $0x2e8] sm:$0xff]  ;;  %v1180_v53 = vld [vmem:[%s2725_s3 + $0x140] sm:$0xff] }
 0x15b   :  { %1258 = vmatpush.msra.mxu3 %v1154_v56  ;;  %1278 = vmatpush.msra.mxu0 %v1170_v57  ;;  %v1216_v55 = vld [vmem:[%s2725_s3 + $0x260] sm:$0xff]  ;;  %v1179_v57 = vld [vmem:[%s2725_s3 + $0x138] sm:$0xff] }
 0x15c   :  { %v1232_v56 = vld [vmem:[%s2725_s3 + $0x2e0] sm:$0xff] }
 0x15d   :  { %1259 = vmatpush.msra.mxu3 %v1153_v58  ;;  %1279 = vmatpush.msra.mxu0 %v1169_v59  ;;  %v1195_v58 = vld [vmem:[%s2725_s3 + $0x1b8] sm:$0xff] }
 0x15e   :  { %896 = vmatmul.f32.vlgmr.msrb.gmra.mxu3 %v786_v60  ;;  %916 = vmatmul.f32.vlgmr.msrb.gmra.mxu0 %v787_v19  ;;  %v1215_v59 = vld [vmem:[%s2725_s3 + $0x258] sm:$0xff] }
 0x15f   :  { %1448 = vmatmul.msk.f32.vlgmr.msrb.gmra.mxu1 %vm33_vm1, %v788_v8  ;;  %1465 = vmatmul.msk.f32.vlgmr.msra.gmra.mxu2 %vm33_vm1, %v1515_v2  ;;  %v1231_v19 = vld [vmem:[%s2725_s3 + $0x2d8] sm:$0xff]  ;;  %v1178_v8 = vld [vmem:[%s2725_s3 + $0x130] sm:$0xff] }
 0x160   :  { %1472 = vmatpush.msk.msra.mxu2 %vm37_vm0, %v1461_v4  ;;  %1470 = vmatpush.msk.msrb.mxu1 %vm37_vm0, %v1460_v12  ;;  %v1194_v4 = vld [vmem:[%s2725_s3 + $0x1b0] sm:$0xff] }
 0x161   :  { %1260 = vmatpush.msra.mxu3 %v1152_v22  ;;  %1280 = vmatpush.msra.mxu0 %v1168_v0  ;;  %v1214_v12 = vld [vmem:[%s2725_s3 + $0x250] sm:$0xff]  ;;  %v1177_v0 = vld [vmem:[%s2725_s3 + $0x128] sm:$0xff] }
 0x162   :  { %1074 = vmatpush.msra.mxu2 %v1454_v3  ;;  %1054 = vmatpush.msrb.mxu1 %v1453_v14  ;;  %v1230_v22 = vld [vmem:[%s2725_s3 + $0x2d0] sm:$0xff]  ;;  %v1193_v3 = vld [vmem:[%s2725_s3 + $0x1a8] sm:$0xff] }
 0x163   :  { %1261 = vmatpush.msra.mxu3 %v1151_v61  ;;  %1281 = vmatpush.msra.mxu0 %v1167_v5  ;;  %v1213_v14 = vld [vmem:[%s2725_s3 + $0x248] sm:$0xff]  ;;  %v1192_v61 = vld [vmem:[%s2725_s3 + $0x1a0] sm:$0xff] }
 0x164   :  { %v1212_v5 = vld [vmem:[%s2725_s3 + $0x240] sm:$0xff] }
 0x165   :  { %1262 = vmatpush.msra.mxu3 %v1150_v6  ;;  %1282 = vmatpush.msra.mxu0 %v1166_v16 }
 0x167   :  { %1467 = vmatmul.msk.f32.vlgmr.msra.gmra.mxu1 %vm33_vm1, %v1515_v2  ;;  %1469 = vmatmul.msk.f32.vlgmr.msrb.gmra.mxu2 %vm33_vm1, %v1515_v2 }
 0x168   :  { %1476 = vmatpush.msk.msrb.mxu2 %vm37_vm0, %v1463_v7  ;;  %1474 = vmatpush.msk.msra.mxu1 %vm37_vm0, %v1462_v63  ;;  %v1229_v7 = vld [vmem:[%s2725_s3 + $0x2c8] sm:$0xff] }
 0x169   :  { %1283 = vmatpush.msra.mxu0 %v1165_v9  ;;  %v1175_v9 = vld [vmem:[%s2725_s3 + $0x118] sm:$0xff] }
 0x16a   :  { %1114 = vmatpush.msrb.mxu2 %v1456_v62  ;;  %1094 = vmatpush.msra.mxu1 %v1455_v1  ;;  %v1176_v1 = vld [vmem:[%s2725_s3 + $0x120] sm:$0xff] }
 0x16b   :  { %1284 = vmatpush.msra.mxu0 %v1164_v11  ;;  %v1211_v11 = vld [vmem:[%s2725_s3 + $0x238] sm:$0xff] }
 0x16d   :  { %1285 = vmatpush.msra.mxu0 %v1163_v15 }
 0x16f   :  { %1471 = vmatmul.msk.f32.vlgmr.msrb.gmra.mxu1 %vm33_vm1, %v1515_v2  ;;  %1473 = vmatmul.msk.f32.vlgmr.msra.gmra.mxu2 %vm33_vm1, %v1515_v2 }
 0x170   :  { %1286 = vmatpush.msra.mxu0 %v1162_v18  ;;  %1297 = vmatpush.msrb.mxu1 %v1187_v25  ;;  %v1174_v18 = vld [vmem:[%s2725_s3 + $0x110] sm:$0xff]  ;;  %v1189_v25 = vld [vmem:[%s2725_s3 + $0x188] sm:$0xff] }
 0x171   :  { %1317 = vmatpush.msra.mxu2 %v1203_v26  ;;  %v1209_v26 = vld [vmem:[%s2725_s3 + $0x228] sm:$0xff] }
 0x172   :  { %1287 = vmatpush.msra.mxu0 %v1161_v21  ;;  %1298 = vmatpush.msrb.mxu1 %v1186_v29  ;;  %v1210_v21 = vld [vmem:[%s2725_s3 + $0x230] sm:$0xff]  ;;  %v1172_v29 = vld [vmem:[%s2725_s3 + $0x100] sm:$0xff] }
 0x173   :  { %1318 = vmatpush.msra.mxu2 %v1202_v30  ;;  %v1188_v30 = vld [vmem:[%s2725_s3 + $0x180] sm:$0xff] }
 0x174   :  { %1288 = vmatpush.msra.mxu0 %v1160_v24  ;;  %1299 = vmatpush.msrb.mxu1 %v1185_v33  ;;  %v1173_v24 = vld [vmem:[%s2725_s3 + $0x108] sm:$0xff]  ;;  %v1224_v33 = vld [vmem:[%s2725_s3 + $0x2a0] sm:$0xff] }
 0x175   :  { %1319 = vmatpush.msra.mxu2 %v1201_v34 }
 0x176   :  { %1289 = vmatpush.msra.mxu0 %v1159_v28  ;;  %1300 = vmatpush.msrb.mxu1 %v1184_v37  ;;  %v1225_v28 = vld [vmem:[%s2725_s3 + $0x2a8] sm:$0xff] }
 0x177   :  { %1475 = vmatmul.msk.f32.vlgmr.msra.gmra.mxu1 %vm33_vm1, %v1515_v2  ;;  %1477 = vmatmul.msk.f32.vlgmr.msrb.gmra.mxu2 %vm33_vm1, %v1515_v2  ;;  %v1149_v2 = vld [vmem:[%s2725_s3 + $0x48] sm:$0xff] }
 0x178   :  { %1263 = vmatpush.msra.mxu3 %v1149_v2  ;;  %1290 = vmatpush.msra.mxu0 %v1158_v32  ;;  %v1228_v2 = vld [vmem:[%s2725_s3 + $0x2c0] sm:$0xff] }
 0x179   :  { %1320 = vmatpush.msra.mxu2 %v1200_v38  ;;  %1301 = vmatpush.msrb.mxu1 %v1183_v41  ;;  %v1208_v32 = vld [vmem:[%s2725_s3 + $0x220] sm:$0xff]  ;;  %v1206_v41 = vld [vmem:[%s2725_s3 + $0x210] sm:$0xff] }
 0x17a   :  { %1264 = vmatpush.msra.mxu3 %v1148_v10  ;;  %1291 = vmatpush.msra.mxu0 %v1157_v36  ;;  %v1191_v10 = vld [vmem:[%s2725_s3 + $0x198] sm:$0xff] }
 0x17b   :  { %1321 = vmatpush.msra.mxu2 %v1199_v42  ;;  %1302 = vmatpush.msrb.mxu1 %v1182_v45  ;;  %v1222_v42 = vld [vmem:[%s2725_s3 + $0x290] sm:$0xff]  ;;  %v1221_v45 = vld [vmem:[%s2725_s3 + $0x288] sm:$0xff] }
 0x17c   :  { %1265 = vmatpush.msra.mxu3 %v1147_v13  ;;  %1292 = vmatpush.msra.mxu0 %v1156_v40  ;;  %v1223_v40 = vld [vmem:[%s2725_s3 + $0x298] sm:$0xff] }
 0x17d   :  { %1322 = vmatpush.msra.mxu2 %v1198_v46  ;;  %1303 = vmatpush.msrb.mxu1 %v1181_v49  ;;  %v1237_v46 = vld [vmem:[%s2725_s3 + $0x308] sm:$0x3]  ;;  %v1220_v49 = vld [vmem:[%s2725_s3 + $0x280] sm:$0xff] }
 0x17e   :  { %1266 = vmatpush.msra.mxu3 %v1146_v17  ;;  %1357 = vmatpush.msrb.mxu0 %v1235_v44  ;;  %v1227_v17 = vld [vmem:[%s2725_s3 + $0x2b8] sm:$0xff]  ;;  %v1205_v44 = vld [vmem:[%s2725_s3 + $0x208] sm:$0xff] }
 0x17f   :  { %1323 = vmatpush.msra.mxu2 %v1197_v50  ;;  %1304 = vmatpush.msrb.mxu1 %v1180_v53 }
 0x180   :  { %1267 = vmatpush.msra.mxu3 %v1145_v20  ;;  %1358 = vmatpush.msrb.mxu0 %v1234_v48  ;;  %v1190_v20 = vld [vmem:[%s2725_s3 + $0x190] sm:$0xff]  ;;  %v1204_v48 = vld [vmem:[%s2725_s3 + $0x200] sm:$0xff] }
 0x181   :  { %1324 = vmatpush.msra.mxu2 %v1196_v54  ;;  %1305 = vmatpush.msrb.mxu1 %v1179_v57 }
 0x182   :  { %1268 = vmatpush.msra.mxu3 %v1144_v23  ;;  %1359 = vmatpush.msrb.mxu0 %v1233_v52  ;;  %v1226_v23 = vld [vmem:[%s2725_s3 + $0x2b0] sm:$0xff] }
 0x183   :  { %1325 = vmatpush.msra.mxu2 %v1195_v58  ;;  %1306 = vmatpush.msrb.mxu1 %v1178_v8 }
 0x184   :  { %1269 = vmatpush.msra.mxu3 %v1143_v27  ;;  %1360 = vmatpush.msrb.mxu0 %v1232_v56 }
 0x185   :  { %1326 = vmatpush.msra.mxu2 %v1194_v4  ;;  %1307 = vmatpush.msrb.mxu1 %v1177_v0 }
 0x186   :  { %1270 = vmatpush.msra.mxu3 %v1142_v31  ;;  %1361 = vmatpush.msrb.mxu0 %v1231_v19 }
 0x187   :  { %1327 = vmatpush.msra.mxu2 %v1193_v3  ;;  %1308 = vmatpush.msrb.mxu1 %v1176_v1 }
 0x188   :  { %1271 = vmatpush.msra.mxu3 %v1141_v35  ;;  %1362 = vmatpush.msrb.mxu0 %v1230_v22 }
 0x189   :  { %1328 = vmatpush.msra.mxu2 %v1192_v61  ;;  %1309 = vmatpush.msrb.mxu1 %v1175_v9 }
 0x18a   :  { %1272 = vmatpush.msra.mxu3 %v1140_v39  ;;  %1363 = vmatpush.msrb.mxu0 %v1229_v7  ;;  %v1207_v39 = vld [vmem:[%s2725_s3 + $0x218] sm:$0xff] }
 0x18b   :  { %1329 = vmatpush.msra.mxu2 %v1191_v10  ;;  %1310 = vmatpush.msrb.mxu1 %v1174_v18 }
 0x18c   :  { %1337 = vmatpush.msrb.mxu3 %v1219_v43  ;;  %1364 = vmatpush.msrb.mxu0 %v1228_v2 }
 0x18d   :  { %1330 = vmatpush.msra.mxu2 %v1190_v20  ;;  %1311 = vmatpush.msrb.mxu1 %v1173_v24 }
 0x18e   :  { %1338 = vmatpush.msrb.mxu3 %v1218_v47  ;;  %1365 = vmatpush.msrb.mxu0 %v1227_v17  ;;  %v1236_v47 = vld [vmem:[%s2725_s3 + $0x300] sm:$0xff] }
 0x18f   :  { %1331 = vmatpush.msra.mxu2 %v1189_v25  ;;  %1312 = vmatpush.msrb.mxu1 %v1172_v29 }
 0x190   :  { %1339 = vmatpush.msrb.mxu3 %v1217_v51  ;;  %1366 = vmatpush.msrb.mxu0 %v1226_v23 }
 0x191   :  { %1332 = vmatpush.msra.mxu2 %v1188_v30  ;;  %1478 = vmatpush.msk.msra.mxu1 %vm37_vm0, %v1237_v46 }
 0x192   :  { %1340 = vmatpush.msrb.mxu3 %v1216_v55  ;;  %1367 = vmatpush.msrb.mxu0 %v1225_v28 }
 0x193   :  { %1392 = vmatpush.msra.mxu1 %v1236_v47 }
 0x194   :  { %1341 = vmatpush.msrb.mxu3 %v1215_v59  ;;  %1368 = vmatpush.msrb.mxu0 %v1224_v33 }
 0x196   :  { %1342 = vmatpush.msrb.mxu3 %v1214_v12  ;;  %1369 = vmatpush.msrb.mxu0 %v1223_v40  ;;  %v1449_v12 = vld [vmem:[%s2726_s2 + $0x2] ss:$4 sm:$0x7f] }
 0x198   :  { %1343 = vmatpush.msrb.mxu3 %v1213_v14  ;;  %1370 = vmatpush.msrb.mxu0 %v1222_v42 }
 0x19a   :  { %1344 = vmatpush.msrb.mxu3 %v1212_v5  ;;  %1371 = vmatpush.msrb.mxu0 %v1221_v45 }
 0x19c   :  { %1345 = vmatpush.msrb.mxu3 %v1211_v11  ;;  %1372 = vmatpush.msrb.mxu0 %v1220_v49 }
 0x19e   :  { %1346 = vmatpush.msrb.mxu3 %v1210_v21 }
 0x1a0   :  { %1347 = vmatpush.msrb.mxu3 %v1209_v26 }
 0x1a2   :  { %1348 = vmatpush.msrb.mxu3 %v1208_v32 }
 0x1a4   :  { %1349 = vmatpush.msrb.mxu3 %v1207_v39 }
 0x1a6   :  { %1350 = vmatpush.msrb.mxu3 %v1206_v41 }
 0x1a8   :  { %1351 = vmatpush.msrb.mxu3 %v1205_v44 }
 0x1aa   :  { %1352 = vmatpush.msrb.mxu3 %v1204_v48 }
 0x1d3   :  { %v837_v63 = vpop.f32.mrf.mxu0 }
 0x1d4   :  { %v857_v60 = vpop.f32.mrf.mxu1 }
 0x1d9   :  { %v817_v62 = vpop.f32.mrf.mxu3 }
 0x1da   :  { %v838_v6 = vadd.f32 %v837_v63, %v817_v62  ;;  %v877_v16 = vpop.f32.mrf.mxu2 }
 0x1db   :  { %v917_v36 = vpop.f32.mrf.mxu0 }
 0x1dc   :  { %v858_v13 = vadd.f32 %v857_v60, %v838_v6  ;;  %v937_v15 = vpop.f32.mrf.mxu1 }
 0x1de   :  { %v878_v27 = vadd.f32 %v877_v16, %v858_v13 }
 0x1e1   :  { %v897_v31 = vpop.f32.mrf.mxu3 }
 0x1e2   :  { %v898_v34 = vadd.f32 %v897_v31, %v878_v27  ;;  %v996_v35 = vpop.f32.mrf.mxu2 }
 0x1e4   :  { %v918_v37 = vadd.f32 %v917_v36, %v898_v34  ;;  %v1016_v38 = vpop.f32.mrf.mxu1 }
 0x1e5   :  { %v1126_v55 = vrot.slane %v1016_v38, 7 }
 0x1e6   :  { %v938_v43 = vadd.f32 %v937_v15, %v918_v37 }
 0x1e7   :  { %v1132_v8 = vsel %vm212_vm3, %v996_v35, %v1126_v55 }
 0x1e8   :  { %940 = vst.msk [vmem:[%s2727_s4 + $0x1] sm:$0x1] %vm482_vm7, %v938_v43 }
 0x1ea   :  { %v1036_v50 = vpop.f32.mrf.mxu2 }
 0x1eb   :  { %v1127_v56 = vrot.slane %v1036_v50, 6 }
 0x1ec   :  { %v1056_v51 = vpop.f32.mrf.mxu1 }
 0x1ed   :  { %v1128_v54 = vrot.slane %v1056_v51, 5 }
 0x1ef   :  { %v1133_v58 = vsel %vm214_vm2, %v1127_v56, %v1128_v54 }
 0x1f0   :  { %v1134_v22 = vsel %vm37_vm0, %v1132_v8, %v1133_v58 }
 0x1f2   :  { %v1076_v52 = vpop.f32.mrf.mxu2 }
 0x1f3   :  { %v1129_v59 = vrot.slane %v1076_v52, 4 }
 0x1f4   :  { %v1096_v53 = vpop.f32.mrf.mxu1 }
 0x1f5   :  { %v1130_v57 = vrot.slane %v1096_v53, 3 }
 0x1f7   :  { %v1135_v4 = vsel %vm217_vm4, %v1129_v59, %v1130_v57 }
 0x1fa   :  { %v1116_v60 = vpop.f32.mrf.mxu2 }
 0x1fb   :  { %v1131_v19 = vrot.slane %v1116_v60, 2 }
 0x1fd   :  { %v1136_v0 = vsel %vm219_vm5, %v1135_v4, %v1131_v19 }
 0x1fe   :  { %v1137_v3 = vsel %vm221_vm6, %v1134_v22, %v1136_v0 }
 0x1ff   :  { %v1139_v14 = vadd.f32 %v1449_v12, %v1137_v3 }
 0x201   :  { %v1239_v7 = vperm.slane %v1139_v14, 0  ;;  %v1240_v63 = vperm.slane %v1139_v14, 1  ;;  %v1241_v62 = vperm.slane %v1139_v14, 2  ;;  %v1242_v1 = vperm.slane %v1139_v14, 3 }
 0x202   :  { %v1243_v61 = vperm.slane %v1139_v14, 4  ;;  %v1244_v5 = vperm.slane %v1139_v14, 5  ;;  %v1245_v6 = vperm.slane %v1139_v14, 6 }
 0x203   :  { %1273 = vmatmul.f32.vlgmr.msra.gmra.mxu3 %v1239_v7  ;;  %1293 = vmatmul.f32.vlgmr.msra.gmra.mxu0 %v1240_v63 }
 0x204   :  { %1313 = vmatmul.f32.vlgmr.msrb.gmra.mxu1 %v1241_v62  ;;  %1333 = vmatmul.f32.vlgmr.msra.gmra.mxu2 %v1242_v1 }
 0x20b   :  { %1353 = vmatmul.f32.vlgmr.msrb.gmra.mxu3 %v1243_v61  ;;  %1373 = vmatmul.f32.vlgmr.msrb.gmra.mxu0 %v1244_v5 }
 0x20c   :  { %1479 = vmatmul.msk.f32.vlgmr.msra.gmra.mxu1 %vm33_vm1, %v1245_v6 }
 0x280   :  { %v1294_v16 = vpop.f32.mrf.mxu0 }
 0x281   :  { %v1314_v10 = vpop.f32.mrf.mxu1 }
 0x286   :  { %v1274_v2 = vpop.f32.mrf.mxu3 }
 0x287   :  { %v1295_v9 = vadd.f32 %v1294_v16, %v1274_v2  ;;  %v1334_v13 = vpop.f32.mrf.mxu2 }
 0x288   :  { %v1374_v20 = vpop.f32.mrf.mxu0 }
 0x289   :  { %v1315_v11 = vadd.f32 %v1314_v10, %v1295_v9  ;;  %v1394_v23 = vpop.f32.mrf.mxu1 }
 0x28b   :  { %v1335_v15 = vadd.f32 %v1334_v13, %v1315_v11 }
 0x28e   :  { %v1354_v17 = vpop.f32.mrf.mxu3 }
 0x28f   :  { %v1355_v18 = vadd.f32 %v1354_v17, %v1335_v15 }
 0x291   :  { %v1375_v21 = vadd.f32 %v1374_v20, %v1355_v18 }
 0x293   :  { %v1395_v24 = vadd.f32 %v1394_v23, %v1375_v21 }
 0x295   :  { %1397 = vst.msk [vmem:[%s2727_s4 + $0x2] sm:$0x1] %vm482_vm7, %v1395_v24 }

// kernel: calibration_forward.3
= control target key start
LH: loop header
LB: loop body
LE: loop exit
PB: predicated region body
PF: predicated region fallthrough
CT: control target
= control target key end

     0   :  { %13 = vsyncpa [#allocation3], 0  ;;  %s4833_s0 = inlined_call_operand.vmem [shape: f32[1,10], index: 0, kind: input, shape index: {}]   ;;  %s4834_s1 = inlined_call_operand.vmem [shape: f32[1,135], index: 1, kind: input, shape index: {}]   ;;  %s4835_s2 = inlined_call_operand.vmem [shape: f32[3,10,778], index: 2, kind: input, shape index: {}]   ;;  %s4836_s3 = inlined_call_operand.hbm [shape: bf16[3,135,778], index: 3, kind: input, shape index: {}]   ;;  %s4837_s4 = inlined_call_operand.vmem [shape: f32[3,778], index: 4, kind: input, shape index: {}]   ;;  %s4838_s5 = inlined_call_operand.vmem [shape: f32[16,778], index: 5, kind: input, shape index: {}]   ;;  %s4839_s6 = inlined_call_operand.vmem [shape: f32[16,16], index: 6, kind: input, shape index: {}]   ;;  %s4840_s7 = inlined_call_operand.vmem [shape: f32[3,1], index: 7, kind: input, shape index: {}]   ;;  %s4841_s8 = inlined_call_operand.hbm [shape: f32[3,778], index: 8, kind: output, shape index: {}]  }
   0x1   :  { %14 = vsyncpa [#allocation4], 0  ;;  %s25_s29 = sshll.u32 %s4836_s3, 4  ;;  %s4024_s30 = smov [#allocation2]   ;;  %s26_s29 = int_to_ptr.hbm [resolvable:$true] %s25_s29 }
   0x2   :  { %s27_s9 = sshll.u32 %s4024_s30, 4  ;;  %s4025_s10 = smov 448   ;;  %s28_s9 = int_to_ptr.vmem [resolvable:$true] %s27_s9 }
   0x3   :  { %s4026_s11 = smov 28  }
   0x4   :  { %33 = dma.hbm_to_vmem [thread:$0]  %s26_s29, 22848, %s28_s9, [#allocation3], %s4025_s10, %s4025_s10, %s4026_s11  }
   0x5   :  { %4020 = dma.done.wait [#allocation3], 22848  }
   0x6   :  { %4021 = vsyncadd [#allocation3], 4294944448  ;;  %v65_v0 = vld [vmem:[%s4838_s5 + $0x38] sm:$0xff]  ;;  %v67_v1 = vld [vmem:[%s4838_s5 + $0x48] sm:$0xff]  ;;  %vm72_vm0 = vcmask 130048   ;;  %vm259_vm1 = vcmask 1041408  }
   0x7   :  { %v68_v2 = vld [vmem:[%s4838_s5 + $0x50] sm:$0xff]  ;;  %93 = vmatpush.msra.mxu0 %v65_v0  ;;  %139 = vmatpush.msra.mxu2 %v67_v1  ;;  %v58_v3 = vld [vmem:[%s4838_s5] sm:$0xff]  ;;  %v61_v5 = vld [vmem:[%s4838_s5 + $0x18] sm:$0xff]  ;;  %vm825_vm2 = vcmask 1042432   ;;  %vm443_vm3 = vcmask 1043456   ;;  %v4027_v27 = vmov 65535  }
   0x8   :  { %v60_v4 = vld [vmem:[%s4838_s5 + $0x10] sm:$0xff]  ;;  %162 = vmatpush.msra.mxu3 %v68_v2  ;;  %v4099_v6 = vld [vmem:[%s4839_s6] sm:$0xff]  ;;  %v69_v7 = vld [vmem:[%s4838_s5 + $0x58] sm:$0xff]  ;;  %v826_v28 = vsel %vm825_vm2, 4294967295, %v4027_v27  ;;  %vm255_vm4 = vcmask 80896   ;;  %vm821_vm5 = vcmask 56320  }
   0x9   :  { %94 = vmatpush.msra.mxu0 %v58_v3  ;;  %140 = vmatpush.msra.mxu2 %v60_v4  ;;  %v71_v8 = vld [vmem:[%s4838_s5 + $0x68] sm:$0xff]  ;;  %v248_v9 = vld [vmem:[%s4835_s2 + $0x38] sm:$0x3]  ;;  %v62_v10 = vld [vmem:[%s4838_s5 + $0x20] sm:$0xff]  ;;  %v4174_v32 = vsel %vm443_vm3, %v826_v28, 0  ;;  %vm434_vm6 = vcmask 1040384  }
   0xa   :  { %163 = vmatpush.msra.mxu3 %v61_v5  ;;  %3017 = vmatmul.msk.f32.vlgmr.msra.gmra.mxu0 %vm72_vm0, %v4099_v6  ;;  %v64_v11 = vld [vmem:[%s4838_s5 + $0x30] sm:$0xff]  ;;  %v241_v12 = vld [vmem:[%s4835_s2] sm:$0xff]  ;;  %v252_v14 = vld [vmem:[%s4835_s2 + $0x58] sm:$0x3]  ;;  %vm436_vm7 = vcmask 1042434   ;;  %vm439_vm8 = vcmask 1044484  }
   0xb   :  { %3021 = vmatmul.msk.f32.vlgmr.msra.gmra.mxu2 %vm72_vm0, %v4099_v6  ;;  %3023 = vmatmul.msk.f32.vlgmr.msra.gmra.mxu3 %vm72_vm0, %v4099_v6  ;;  %v66_v13 = vld [vmem:[%s4838_s5 + $0x40] sm:$0xff]  ;;  %v59_v16 = vld [vmem:[%s4838_s5 + $0x8] sm:$0xff]  ;;  %v243_v24 = vld [vmem:[%s4835_s2 + $0x10] sm:$0xff]  ;;  %vm441_vm9 = vcmask 1045508   ;;  %s3007_s16 = sshll.u32 %s4841_s8, 4  ;;  %s3008_s16 = int_to_ptr.hbm [resolvable:$true] %s3007_s16 }
   0xc   :  { %185 = vmatpush.msrb.mxu0 %v69_v7  ;;  %231 = vmatpush.msrb.mxu2 %v71_v8  ;;  %v249_v15 = vld [vmem:[%s4835_s2 + $0x40] sm:$0x3]  ;;  %v250_v17 = vld [vmem:[%s4835_s2 + $0x48] sm:$0x3]  ;;  %v3243_v25 = vld [vmem:[#allocation2 + $0x188] sm:$0xf] }
   0xd   :  { %3031 = vmatpush.msk.msrb.mxu3 %vm259_vm1, %v248_v9  ;;  %116 = vmatpush.msra.mxu1 %v66_v13  ;;  %v70_v18 = vld [vmem:[%s4838_s5 + $0x60] sm:$0xff]  ;;  %v4147_v19 = vld [vmem:[%s4839_s6 + $0x8] sm:$0xff]  ;;  %v3215_v33 = vld [vmem:[#allocation2 + $0x150] sm:$0xf] }
   0xe   :  { %186 = vmatpush.msrb.mxu0 %v62_v10  ;;  %232 = vmatpush.msrb.mxu2 %v64_v11  ;;  %v242_v20 = vld [vmem:[%s4835_s2 + $0x8] sm:$0xff]  ;;  %v245_v22 = vld [vmem:[%s4835_s2 + $0x20] sm:$0xff]  ;;  %v3841_v34 = vld [vmem:[#allocation2 + $0x168] sm:$0xf0] }
   0xf   :  { %296 = vmatpush.msrb.mxu3 %v241_v12  ;;  %v4153_v21 = vld [vmem:[#allocation2 + $0x1c0] sm:$0xff]  ;;  %117 = vmatpush.msra.mxu1 %v59_v16  ;;  %v4181_v35 = vld [vmem:[%s4833_s0] sm:$0x1]  ;;  %v251_v37 = vld [vmem:[%s4835_s2 + $0x50] sm:$0x3]  ;;  %v3216_v38 = vor.u32 %v3841_v34, %v3215_v33 }
  0x10   :  { %3039 = vmatpush.msk.msra.mxu2 %vm259_vm1, %v252_v14  ;;  %v695_v23 = vunpack.c.l.b16 %v4153_v21  ;;  %3035 = vmatpush.msk.msra.mxu0 %vm259_vm1, %v250_v17  ;;  %v3848_v26 = vld [vmem:[#allocation2 + $0x1a0] sm:$0xf0]  ;;  %v254_v39 = vld [vmem:[%s4835_s2 + $0x68] sm:$0x3]  ;;  %v3187_v40 = vld [vmem:[#allocation2 + $0x118] sm:$0xf]  ;;  %v696_v48 = vunpack.c.h.b16 %v4153_v21 }
  0x11   :  { %3033 = vmatpush.msk.msra.mxu3 %vm259_vm1, %v249_v15  ;;  %208 = vmatpush.msrb.mxu1 %v70_v18  ;;  %v63_v29 = vld [vmem:[%s4838_s5 + $0x28] sm:$0xff]  ;;  %v3244_v30 = vor.u32 %v3848_v26, %v3243_v25  ;;  %v3834_v41 = vld [vmem:[#allocation2 + $0x130] sm:$0xf0]  ;;  %v247_v43 = vld [vmem:[%s4835_s2 + $0x30] sm:$0xff] }
  0x12   :  { %3018 = vmatmul.msk.f32.gmra.mxu0 %vm72_vm0, %v4147_v19  ;;  %376 = vmatpush.msra.mxu2 %v245_v22  ;;  %v758_v31 = vpack.c.b16 %v695_v23, %v695_v23  ;;  %v244_v42 = vld [vmem:[%s4835_s2 + $0x18] sm:$0xff]  ;;  %v3188_v44 = vor.u32 %v3834_v41, %v3187_v40  ;;  %v3159_v45 = vld [vmem:[#allocation2 + $0xe0] sm:$0xf]  ;;  %v3827_v46 = vld [vmem:[#allocation2 + $0xf8] sm:$0xf0]  ;;  %v759_v57 = vpack.c.b16 %v696_v48, %v696_v48 }
  0x13   :  { %316 = vmatpush.msra.mxu3 %v242_v20  ;;  %3022 = vmatmul.msk.f32.gmra.mxu2 %vm72_vm0, %v4147_v19  ;;  %v253_v47 = vld [vmem:[%s4835_s2 + $0x60] sm:$0x3]  ;;  %v3160_v49 = vor.u32 %v3827_v46, %v3159_v45  ;;  %v3131_v50 = vld [vmem:[#allocation2 + $0xa8] sm:$0xf]  ;;  %v3820_v51 = vld [vmem:[#allocation2 + $0xc0] sm:$0xf0] }
  0x14   :  { %3024 = vmatmul.msk.f32.gmra.mxu3 %vm72_vm0, %v4147_v19  ;;  %336 = vmatpush.msra.mxu0 %v243_v24  ;;  %v829_v36 = vand.u32 %v4174_v32, %v758_v31  ;;  %v246_v52 = vld [vmem:[%s4835_s2 + $0x28] sm:$0xff]  ;;  %v3845_v53 = vld [vmem:[#allocation2 + $0x18c] sm:$0xf]  ;;  %v3245_v54 = vld [vmem:[#allocation2 + $0x1a4] sm:$0xf0]  ;;  %v3132_v58 = vor.u32 %v3820_v51, %v3131_v50  ;;  %v832_v5 = vand.u32 %v4174_v32, %v759_v57 }
  0x15   :  { %3019 = vmatmul.msk.f32.vlgmr.msra.gmra.mxu1 %vm72_vm0, %v4099_v6  ;;  %v3251_v55 = vld [vmem:[#allocation2 + $0x190] sm:$0xf]  ;;  %v3849_v56 = vld [vmem:[#allocation2 + $0x1a8] sm:$0xf0]  ;;  %v3248_v62 = vor.u32 %v3845_v53, %v3245_v54  ;;  %v3838_v0 = vld [vmem:[#allocation2 + $0x154] sm:$0xf] }
  0x16   :  { %209 = vmatpush.msrb.mxu1 %v63_v29  ;;  %v512_v59 = vld [vmem:[#allocation2 + $0x1c8] sm:$0xff]  ;;  %v3103_v60 = vld [vmem:[#allocation2 + $0x70] sm:$0xf]  ;;  %v3252_v63 = vor.u32 %v3849_v56, %v3251_v55  ;;  %v4225_v1 = vld [vmem:[%s4834_s1] sm:$0x3] }
  0x17   :  { %v3813_v61 = vld [vmem:[#allocation2 + $0x88] sm:$0xf0]  ;;  %v3217_v2 = vld [vmem:[#allocation2 + $0x16c] sm:$0xf0]  ;;  %v3223_v3 = vld [vmem:[#allocation2 + $0x158] sm:$0xf]  ;;  %v697_v7 = vunpack.c.l.b16 %v512_v59  ;;  %v698_v11 = vunpack.c.h.b16 %v512_v59 }
  0x18   :  { %849 = vmatpush.bf16.msra.mxu1 %v3244_v30  ;;  %v3842_v4 = vld [vmem:[#allocation2 + $0x170] sm:$0xf0]  ;;  %v3104_v8 = vor.u32 %v3813_v61, %v3103_v60  ;;  %v51_v10 = vperm.slane %v4225_v1, 1  ;;  %v3220_v12 = vor.u32 %v3838_v0, %v3217_v2  ;;  %v3831_v14 = vld [vmem:[#allocation2 + $0x11c] sm:$0xf] }
  0x19   :  { %v3806_v9 = vld [vmem:[#allocation2 + $0x50] sm:$0xf0]  ;;  %v3224_v13 = vor.u32 %v3842_v4, %v3223_v3  ;;  %v3189_v15 = vld [vmem:[#allocation2 + $0x134] sm:$0xf0]  ;;  %v3195_v16 = vld [vmem:[#allocation2 + $0x120] sm:$0xf]  ;;  %v760_v18 = vpack.c.b16 %v697_v7, %v697_v7  ;;  %v761_v23 = vpack.c.b16 %v698_v11, %v698_v11 }
  0x1a   :  { %3025 = vmatmul.msk.f32.vlgmr.msrb.gmra.mxu0 %vm72_vm0, %v4099_v6  ;;  %v3835_v17 = vld [vmem:[#allocation2 + $0x138] sm:$0xf0]  ;;  %v3047_v21 = vld [vmem:[#allocation2] sm:$0xf]  ;;  %v4237_v24 = vpack.c.bf16 %v51_v10, %v51_v10  ;;  %v3192_v25 = vor.u32 %v3831_v14, %v3189_v15  ;;  %v3824_v27 = vld [vmem:[#allocation2 + $0xe4] sm:$0xf] }
  0x1b   :  { %3029 = vmatmul.msk.f32.vlgmr.msrb.gmra.mxu2 %vm72_vm0, %v4099_v6  ;;  %3043 = vmatpush.msk.msrb.mxu0 %vm259_vm1, %v254_v39  ;;  %v3799_v22 = vld [vmem:[#allocation2 + $0x18] sm:$0xf0]  ;;  %v3196_v26 = vor.u32 %v3835_v17, %v3195_v16  ;;  %v3161_v28 = vld [vmem:[#allocation2 + $0xfc] sm:$0xf0]  ;;  %v3167_v29 = vld [vmem:[#allocation2 + $0xe8] sm:$0xf]  ;;  %v835_v31 = vand.u32 %v4174_v32, %v760_v18  ;;  %v838_v34 = vand.u32 %v4174_v32, %v761_v23 }
  0x1c   :  { %3032 = vmatmul.msk.f32.vlgmr.msrb.gmra.mxu3 %vm255_vm4, %v4181_v35  ;;  %869 = vmatpush.bf16.msrb.mxu2 %v829_v36  ;;  %v3828_v30 = vld [vmem:[#allocation2 + $0x100] sm:$0xf0]  ;;  %v3048_v33 = vor.u32 %v3799_v22, %v3047_v21  ;;  %v3847_v36 = vld [vmem:[#allocation2 + $0x19c] sm:$0xf]  ;;  %v3817_v40 = vld [vmem:[#allocation2 + $0xac] sm:$0xf] }
  0x1d   :  { %3037 = vmatpush.msk.msrb.mxu3 %vm259_vm1, %v251_v37  ;;  %850 = vmatpush.bf16.msra.mxu1 %v3216_v38  ;;  %v3261_v37 = vld [vmem:[#allocation2 + $0x1b4] sm:$0xf0]  ;;  %v3164_v38 = vor.u32 %v3824_v27, %v3161_v28  ;;  %v3168_v39 = vor.u32 %v3828_v30, %v3167_v29  ;;  %v3846_v41 = vld [vmem:[#allocation2 + $0x194] sm:$0xf]  ;;  %v3821_v45 = vld [vmem:[#allocation2 + $0xc8] sm:$0xf0] }
  0x1e   :  { %3020 = vmatmul.msk.f32.gmra.mxu1 %vm72_vm0, %v4147_v19  ;;  %416 = vmatpush.msrb.mxu0 %v247_v43  ;;  %v3133_v43 = vld [vmem:[#allocation2 + $0xc4] sm:$0xf0]  ;;  %v3233_v50 = vld [vmem:[#allocation2 + $0x17c] sm:$0xf0]  ;;  %v3810_v53 = vld [vmem:[#allocation2 + $0x74] sm:$0xf] }
  0x1f   :  { %356 = vmatpush.msrb.mxu3 %v244_v42  ;;  %v3253_v42 = vld [vmem:[#allocation2 + $0x1ac] sm:$0xf0]  ;;  %v3136_v51 = vor.u32 %v3817_v40, %v3133_v43  ;;  %v3839_v54 = vld [vmem:[#allocation2 + $0x15c] sm:$0xf]  ;;  %v3225_v55 = vld [vmem:[#allocation2 + $0x174] sm:$0xf0] }
  0x20   :  { %v3256_v48 = vor.u32 %v3846_v41, %v3253_v42  ;;  %v3105_v56 = vld [vmem:[#allocation2 + $0x8c] sm:$0xf0]  ;;  %v3111_v57 = vld [vmem:[#allocation2 + $0x78] sm:$0xf]  ;;  %v3228_v61 = vor.u32 %v3839_v54, %v3225_v55  ;;  %v3803_v2 = vld [vmem:[#allocation2 + $0x3c] sm:$0xf] }
  0x21   :  { %851 = vmatpush.bf16.msra.mxu1 %v3188_v44  ;;  %v3139_v44 = vld [vmem:[#allocation2 + $0xb0] sm:$0xf]  ;;  %v3108_v0 = vor.u32 %v3810_v53, %v3105_v56  ;;  %v3832_v3 = vld [vmem:[#allocation2 + $0x124] sm:$0xf]  ;;  %v3197_v4 = vld [vmem:[#allocation2 + $0x13c] sm:$0xf0] }
  0x22   :  { %3026 = vmatmul.msk.f32.gmra.mxu0 %vm72_vm0, %v4147_v19  ;;  %v513_v60 = vld [vmem:[#allocation2 + $0x1d0] sm:$0xff]  ;;  %v3083_v7 = vld [vmem:[#allocation2 + $0x40] sm:$0xf]  ;;  %v3200_v10 = vor.u32 %v3832_v3, %v3197_v4  ;;  %v3796_v15 = vld [vmem:[#allocation2 + $0x4] sm:$0xf] }
  0x23   :  { %3030 = vmatmul.msk.f32.gmra.mxu2 %vm72_vm0, %v4147_v19  ;;  %v3826_v11 = vld [vmem:[#allocation2 + $0xf4] sm:$0xf]  ;;  %v3825_v16 = vld [vmem:[#allocation2 + $0xec] sm:$0xf]  ;;  %v3169_v17 = vld [vmem:[#allocation2 + $0x104] sm:$0xf0]  ;;  %v700_v27 = vunpack.c.h.b16 %v513_v60 }
  0x24   :  { %3034 = vmatmul.msk.f32.vlgmr.msra.gmra.mxu3 %vm255_vm4, %v4181_v35  ;;  %v3049_v18 = vld [vmem:[#allocation2 + $0x1c] sm:$0xf0]  ;;  %v3800_v21 = vld [vmem:[#allocation2 + $0x20] sm:$0xf0]  ;;  %v3259_v23 = vld [vmem:[#allocation2 + $0x198] sm:$0xf]  ;;  %v3172_v28 = vor.u32 %v3825_v16, %v3169_v17 }
  0x25   :  { %3041 = vmatpush.msk.msra.mxu3 %vm259_vm1, %v253_v47  ;;  %852 = vmatpush.bf16.msra.mxu1 %v3160_v49  ;;  %v3264_v47 = vor.u32 %v3847_v36, %v3261_v37  ;;  %v3840_v49 = vld [vmem:[#allocation2 + $0x164] sm:$0xf]  ;;  %v3052_v29 = vor.u32 %v3796_v15, %v3049_v18  ;;  %v3819_v36 = vld [vmem:[#allocation2 + $0xbc] sm:$0xf]  ;;  %v3149_v37 = vld [vmem:[#allocation2 + $0xd4] sm:$0xf0] }
  0x26   :  { %3027 = vmatmul.msk.f32.vlgmr.msrb.gmra.mxu1 %vm72_vm0, %v4099_v6  ;;  %v3075_v6 = vld [vmem:[#allocation2 + $0x38] sm:$0xf]  ;;  %v3236_v59 = vor.u32 %v3840_v49, %v3233_v50  ;;  %v3843_v40 = vld [vmem:[#allocation2 + $0x178] sm:$0xf0]  ;;  %v3152_v43 = vor.u32 %v3819_v36, %v3149_v37  ;;  %v3203_v50 = vld [vmem:[#allocation2 + $0x128] sm:$0xf] }
  0x27   :  { %396 = vmatpush.msra.mxu3 %v246_v52  ;;  %v3076_v20 = vor.u32 %v3806_v9, %v3075_v6  ;;  %v3140_v52 = vor.u32 %v3821_v45, %v3139_v44  ;;  %v699_v6 = vunpack.c.l.b16 %v513_v60  ;;  %v3811_v42 = vld [vmem:[#allocation2 + $0x7c] sm:$0xf]  ;;  %v3113_v45 = vld [vmem:[#allocation2 + $0x94] sm:$0xf0]  ;;  %v3804_v53 = vld [vmem:[#allocation2 + $0x44] sm:$0xf] }
  0x28   :  { %v3085_v56 = vld [vmem:[#allocation2 + $0x5c] sm:$0xf0]  ;;  %v3829_v60 = vld [vmem:[#allocation2 + $0x108] sm:$0xf0]  ;;  %v3798_v3 = vld [vmem:[#allocation2 + $0x14] sm:$0xf] }
  0x29   :  { %853 = vmatpush.bf16.msra.mxu1 %v3132_v58  ;;  %v3814_v58 = vld [vmem:[#allocation2 + $0x90] sm:$0xf0]  ;;  %v762_v22 = vpack.c.b16 %v699_v6, %v699_v6  ;;  %v3065_v4 = vld [vmem:[#allocation2 + $0x2c] sm:$0xf0]  ;;  %v3844_v15 = vld [vmem:[#allocation2 + $0x180] sm:$0xf0] }
  0x2a   :  { %3036 = vmatmul.msk.f32.vlgmr.msra.gmra.mxu0 %vm255_vm4, %v4181_v35  ;;  %v514_v16 = vld [vmem:[#allocation2 + $0x1d8] sm:$0xf]  ;;  %v3285_v36 = vld [vmem:[%s4835_s2 + $0xb0] sm:$0x3]  ;;  %v3278_v37 = vld [vmem:[%s4835_s2 + $0x78] sm:$0xff] }
  0x2b   :  { %3040 = vmatmul.msk.f32.vlgmr.msra.gmra.mxu2 %vm255_vm4, %v4181_v35  ;;  %895 = vmatpush.bf16.msra.mxu0 %v832_v5  ;;  %v3077_v5 = vld [vmem:[#allocation2 + $0x54] sm:$0xf0] }
  0x2c   :  { %3038 = vmatmul.msk.f32.vlgmr.msrb.gmra.mxu3 %vm255_vm4, %v4181_v35  ;;  %901 = vmatpush.bf16.msra.mxu2 %v3252_v63  ;;  %v3205_v63 = vld [vmem:[#allocation2 + $0x144] sm:$0xf0] }
  0x2d   :  { %875 = vmatpush.bf16.msrb.mxu3 %v3248_v62  ;;  %854 = vmatpush.bf16.msra.mxu1 %v3104_v8  ;;  %v3833_v62 = vld [vmem:[#allocation2 + $0x12c] sm:$0xf]  ;;  %v3807_v8 = vld [vmem:[#allocation2 + $0x58] sm:$0xf0] }
  0x2e   :  { %3028 = vmatmul.msk.f32.gmra.mxu1 %vm72_vm0, %v4147_v19  ;;  %v50_v19 = vperm.slane %v4225_v1, 0  ;;  %v3112_v1 = vor.u32 %v3814_v58, %v3111_v57  ;;  %v3208_v9 = vor.u32 %v3833_v62, %v3205_v63  ;;  %v3084_v14 = vor.u32 %v3807_v8, %v3083_v7  ;;  %v3805_v57 = vld [vmem:[#allocation2 + $0x4c] sm:$0xf]  ;;  %v3093_v58 = vld [vmem:[#allocation2 + $0x64] sm:$0xf0] }
  0x2f   :  { %v3797_v62 = vld [vmem:[#allocation2 + $0xc] sm:$0xf]  ;;  %v3057_v63 = vld [vmem:[#allocation2 + $0x24] sm:$0xf0]  ;;  %v3267_v7 = vld [vmem:[#allocation2 + $0x1a0] sm:$0xf] }
  0x30   :  { %902 = vmatpush.bf16.msra.mxu2 %v3224_v13  ;;  %v4248_v46 = vpack.c.bf16 %v50_v19, %v50_v19  ;;  %v3080_v13 = vor.u32 %v3803_v2, %v3077_v5  ;;  %v3141_v19 = vld [vmem:[#allocation2 + $0xcc] sm:$0xf0]  ;;  %v3147_v2 = vld [vmem:[#allocation2 + $0xb8] sm:$0xf]  ;;  %v3822_v5 = vld [vmem:[#allocation2 + $0xd0] sm:$0xf0]  ;;  %v3060_v6 = vor.u32 %v3797_v62, %v3057_v63 }
  0x31   :  { %876 = vmatpush.bf16.msrb.mxu3 %v3220_v12  ;;  %855 = vmatpush.bf16.msra.mxu1 %v3076_v20  ;;  %v3177_v12 = vld [vmem:[#allocation2 + $0x10c] sm:$0xf0]  ;;  %v3055_v20 = vld [vmem:[#allocation2 + $0x8] sm:$0xf]  ;;  %v3851_v8 = vld [vmem:[#allocation2 + $0x1b8] sm:$0xf0] }
  0x32   :  { %3044 = vmatmul.msk.f32.vlgmr.msrb.gmra.mxu0 %vm255_vm4, %v4181_v35  ;;  %v3056_v30 = vor.u32 %v3800_v21, %v3055_v20  ;;  %v3091_v20 = vld [vmem:[#allocation2 + $0x48] sm:$0xf]  ;;  %v3284_v21 = vld [vmem:[%s4835_s2 + $0xa8] sm:$0x3]  ;;  %v3802_v62 = vld [vmem:[#allocation2 + $0x30] sm:$0xf0] }
  0x33   :  { %3269 = vmatmul.msk.bf16.vlgmr.msrb.gmra.mxu2 %vm821_vm5, %v4237_v24  ;;  %921 = vmatpush.bf16.msrb.mxu0 %v835_v31  ;;  %v3818_v31 = vld [vmem:[#allocation2 + $0xb4] sm:$0xf]  ;;  %v3511_v63 = vld [vmem:[#allocation2 + $0x36c] sm:$0xf] }
  0x34   :  { %3042 = vmatmul.msk.f32.vlgmr.msra.gmra.mxu3 %vm255_vm4, %v4181_v35  ;;  %903 = vmatpush.bf16.msra.mxu2 %v3196_v26  ;;  %v3180_v26 = vor.u32 %v3826_v11, %v3177_v12  ;;  %v3144_v41 = vor.u32 %v3818_v31, %v3141_v19  ;;  %v3268_v11 = vor.u32 %v3851_v8, %v3267_v7  ;;  %v3119_v12 = vld [vmem:[#allocation2 + $0x80] sm:$0xf]  ;;  %v3801_v31 = vld [vmem:[#allocation2 + $0x28] sm:$0xf0]  ;;  %v3830_v19 = vld [vmem:[#allocation2 + $0x110] sm:$0xf0] }
  0x35   :  { %877 = vmatpush.bf16.msrb.mxu3 %v3192_v25  ;;  %856 = vmatpush.bf16.msra.mxu1 %v3048_v33  ;;  %v3850_v25 = vld [vmem:[#allocation2 + $0x1b0] sm:$0xf0]  ;;  %v3898_v8 = vld [vmem:[#allocation2 + $0x34c] sm:$0xf0] }
  0x36   :  { %v3260_v33 = vor.u32 %v3850_v25, %v3259_v23  ;;  %v3211_v23 = vld [vmem:[#allocation2 + $0x130] sm:$0xf]  ;;  %v3837_v25 = vld [vmem:[#allocation2 + $0x148] sm:$0xf0]  ;;  %v3483_v7 = vld [vmem:[#allocation2 + $0x334] sm:$0xf] }
  0x38   :  { %904 = vmatpush.bf16.msra.mxu2 %v3168_v39  ;;  %857 = vmatmul.bf16.vlgmr.msra.gmra.mxu1 %v4248_v46  ;;  %v3231_v39 = vld [vmem:[#allocation2 + $0x160] sm:$0xf] }
  0x39   :  { %947 = vmatpush.bf16.msrb.mxu1 %v838_v34  ;;  %878 = vmatpush.bf16.msrb.mxu3 %v3164_v38  ;;  %v841_v34 = vand.u32 %v4174_v32, %v762_v22  ;;  %v763_v38 = vpack.c.b16 %v700_v27, %v700_v27  ;;  %v3232_v44 = vor.u32 %v3843_v40, %v3231_v39  ;;  %v3808_v22 = vld [vmem:[#allocation2 + $0x60] sm:$0xf0]  ;;  %v3277_v27 = vld [vmem:[%s4835_s2 + $0x70] sm:$0xff] }
  0x3a   :  { %3270 = vmatmul.msk.bf16.vlgmr.msra.gmra.mxu0 %vm821_vm5, %v4237_v24 }
  0x3b   :  { %927 = vmatpush.bf16.msra.mxu0 %v3256_v48  ;;  %v3121_v48 = vld [vmem:[#allocation2 + $0x9c] sm:$0xf0]  ;;  %v844_v49 = vand.u32 %v4174_v32, %v763_v38 }
  0x3c   :  { %905 = vmatpush.bf16.msra.mxu2 %v3140_v52  ;;  %v3116_v52 = vor.u32 %v3811_v42, %v3113_v45  ;;  %v3823_v42 = vld [vmem:[#allocation2 + $0xd8] sm:$0xf0]  ;;  %v3127_v45 = vld [vmem:[#allocation2 + $0x88] sm:$0xf] }
  0x3d   :  { %979 = vmatpush.bf16.msra.mxu1 %v3264_v47  ;;  %879 = vmatpush.bf16.msrb.mxu3 %v3136_v51  ;;  %v3812_v47 = vld [vmem:[#allocation2 + $0x84] sm:$0xf] }
  0x3e   :  { %v3836_v51 = vld [vmem:[#allocation2 + $0x140] sm:$0xf0]  ;;  %v3124_v54 = vor.u32 %v3812_v47, %v3121_v48 }
  0x3f   :  { %928 = vmatpush.bf16.msra.mxu0 %v3228_v61  ;;  %v3204_v55 = vor.u32 %v3836_v51, %v3203_v50  ;;  %v3088_v61 = vor.u32 %v3804_v53, %v3085_v56  ;;  %v3816_v48 = vld [vmem:[#allocation2 + $0xa0] sm:$0xf0]  ;;  %v3288_v50 = vld [vmem:[%s4835_s2 + $0xc8] sm:$0x3]  ;;  %v3281_v53 = vld [vmem:[%s4835_s2 + $0x90] sm:$0xff] }
  0x40   :  { %906 = vmatpush.bf16.msra.mxu2 %v3112_v1 }
  0x41   :  { %980 = vmatpush.bf16.msra.mxu1 %v3236_v59  ;;  %880 = vmatpush.bf16.msrb.mxu3 %v3108_v0  ;;  %v3175_v59 = vld [vmem:[#allocation2 + $0xf0] sm:$0xf]  ;;  %v3096_v0 = vor.u32 %v3805_v57, %v3093_v58  ;;  %v3809_v58 = vld [vmem:[#allocation2 + $0x68] sm:$0xf0] }
  0x42   :  { %v3176_v1 = vor.u32 %v3829_v60, %v3175_v59  ;;  %v3099_v57 = vld [vmem:[#allocation2 + $0x50] sm:$0xf]  ;;  %v3279_v59 = vld [vmem:[%s4835_s2 + $0x80] sm:$0xff] }
  0x43   :  { %929 = vmatpush.bf16.msra.mxu0 %v3200_v10  ;;  %v3148_v10 = vor.u32 %v3822_v5, %v3147_v2  ;;  %v3100_v60 = vor.u32 %v3809_v58, %v3099_v57  ;;  %v3904_v2 = vld [vmem:[#allocation2 + $0x37c] sm:$0xf0]  ;;  %v3343_v58 = vld [vmem:[#allocation2 + $0x21c] sm:$0xf] }
  0x44   :  { %907 = vmatpush.bf16.msra.mxu2 %v3084_v14  ;;  %v3239_v14 = vld [vmem:[#allocation2 + $0x168] sm:$0xf] }
  0x45   :  { %981 = vmatpush.bf16.msra.mxu1 %v3208_v9  ;;  %881 = vmatpush.bf16.msrb.mxu3 %v3080_v13  ;;  %v3068_v9 = vor.u32 %v3798_v3, %v3065_v4  ;;  %v3815_v13 = vld [vmem:[#allocation2 + $0x98] sm:$0xf0]  ;;  %v3240_v18 = vor.u32 %v3844_v15, %v3239_v14  ;;  %v3891_v14 = vld [vmem:[#allocation2 + $0x314] sm:$0xf0]  ;;  %v3447_v15 = vld [vmem:[#allocation2 + $0x2f4] sm:$0xf] }
  0x46   :  { %v3120_v17 = vor.u32 %v3815_v13, %v3119_v12  ;;  %v3290_v12 = vld [vmem:[%s4835_s2 + $0xd8] sm:$0x3]  ;;  %v3455_v13 = vld [vmem:[#allocation2 + $0x2fc] sm:$0xf] }
  0x47   :  { %930 = vmatpush.bf16.msra.mxu0 %v3172_v28  ;;  %v3092_v28 = vor.u32 %v3808_v22, %v3091_v20  ;;  %v3456_v20 = vor.u32 %v3891_v14, %v3455_v13  ;;  %v3427_v22 = vld [vmem:[#allocation2 + $0x2c4] sm:$0xf]  ;;  %v3513_v13 = vld [vmem:[#allocation2 + $0x388] sm:$0xf0]  ;;  %v3873_v14 = vld [vmem:[#allocation2 + $0x288] sm:$0xf] }
  0x48   :  { %908 = vmatpush.bf16.msra.mxu2 %v3056_v30  ;;  %3272 = vmatmul.msk.bf16.vlgmr.msrb.gmra.mxu1 %vm821_vm5, %v4237_v24  ;;  %v3063_v30 = vld [vmem:[#allocation2 + $0x10] sm:$0xf] }
  0x49   :  { %982 = vmatpush.bf16.msra.mxu1 %v3180_v26  ;;  %882 = vmatpush.bf16.msrb.mxu3 %v3052_v29  ;;  %v701_v26 = vunpack.c.l.b16 %v514_v16  ;;  %v3212_v29 = vor.u32 %v3837_v25, %v3211_v23  ;;  %v3064_v38 = vor.u32 %v3801_v31, %v3063_v30  ;;  %v3890_v16 = vld [vmem:[#allocation2 + $0x30c] sm:$0xf0]  ;;  %v3884_v23 = vld [vmem:[#allocation2 + $0x2dc] sm:$0xf0] }
  0x4a   :  { %3271 = vmatmul.msk.bf16.vlgmr.msrb.gmra.mxu0 %vm821_vm5, %v4237_v24  ;;  %v3282_v25 = vld [vmem:[%s4835_s2 + $0x98] sm:$0xff]  ;;  %v3428_v31 = vor.u32 %v3884_v23, %v3427_v22 }
  0x4b   :  { %909 = vmatmul.bf16.vlgmr.msra.gmra.mxu2 %v4248_v46  ;;  %931 = vmatpush.bf16.msra.mxu0 %v3144_v41  ;;  %v3155_v41 = vld [vmem:[#allocation2 + $0xc0] sm:$0xf] }
  0x4c   :  { %973 = vmatpush.bf16.msrb.mxu2 %v841_v34  ;;  %883 = vmatmul.bf16.vlgmr.msrb.gmra.mxu3 %v4248_v46  ;;  %v764_v34 = vpack.c.b16 %v701_v26, %v701_v26  ;;  %v3419_v26 = vld [vmem:[#allocation2 + $0x2bc] sm:$0xf] }
  0x4d   :  { %953 = vmatpush.bf16.msra.mxu3 %v3260_v33  ;;  %983 = vmatpush.bf16.msra.mxu1 %v3152_v43  ;;  %v3183_v33 = vld [vmem:[#allocation2 + $0xf8] sm:$0xf]  ;;  %v4280_v43 = vld [vmem:[#allocation2 + $0x39c] sm:$0xff] }
  0x4e   :  { %v3184_v39 = vor.u32 %v3830_v19, %v3183_v33  ;;  %v847_v40 = vand.u32 %v4174_v32, %v764_v34  ;;  %v1500_v47 = vunpack.c.l.b16 %v4280_v43  ;;  %v1501_v30 = vunpack.c.h.b16 %v4280_v43  ;;  %v3399_v19 = vld [vmem:[#allocation2 + $0x28c] sm:$0xf]  ;;  %v3877_v34 = vld [vmem:[#allocation2 + $0x2a4] sm:$0xf0]  ;;  %v3371_v43 = vld [vmem:[#allocation2 + $0x254] sm:$0xf] }
  0x4f   :  { %932 = vmatpush.bf16.msra.mxu0 %v3116_v52  ;;  %v3280_v52 = vld [vmem:[%s4835_s2 + $0x88] sm:$0xff] }
  0x50   :  { %999 = vmatpush.bf16.msra.mxu2 %v844_v49  ;;  %v3287_v49 = vld [vmem:[%s4835_s2 + $0xc0] sm:$0x3]  ;;  %v1563_v51 = vpack.c.b16 %v1500_v47, %v1500_v47  ;;  %v3870_v47 = vld [vmem:[#allocation2 + $0x26c] sm:$0xf0] }
  0x51   :  { %954 = vmatpush.bf16.msra.mxu3 %v3232_v44  ;;  %984 = vmatpush.bf16.msra.mxu1 %v3124_v54  ;;  %v3156_v44 = vor.u32 %v3823_v42, %v3155_v41  ;;  %v3128_v54 = vor.u32 %v3816_v48, %v3127_v45  ;;  %v1564_v41 = vpack.c.b16 %v1501_v30, %v1501_v30  ;;  %v4334_v45 = vld [vmem:[#allocation2 + $0x3a4] sm:$0xff]  ;;  %v3363_v48 = vld [vmem:[#allocation2 + $0x24c] sm:$0xf]  ;;  %v3895_v30 = vld [vmem:[#allocation2 + $0x338] sm:$0xf] }
  0x52   :  { %v1627_v56 = vand.u32 %v1563_v51, %v4174_v32  ;;  %v3400_v42 = vor.u32 %v3877_v34, %v3399_v19  ;;  %v4338_v51 = vld [vmem:[#allocation2 + $0x3ac] sm:$0xff] }
  0x53   :  { %933 = vmatpush.bf16.msra.mxu0 %v3088_v61  ;;  %v3071_v61 = vld [vmem:[#allocation2 + $0x18] sm:$0xf]  ;;  %v3365_v19 = vld [vmem:[#allocation2 + $0x268] sm:$0xf0] }
  0x54   :  { %v3072_v3 = vor.u32 %v3802_v62, %v3071_v61  ;;  %v3335_v62 = vld [vmem:[#allocation2 + $0x214] sm:$0xf] }
  0x55   :  { %955 = vmatpush.bf16.msra.mxu3 %v3204_v55  ;;  %985 = vmatpush.bf16.msra.mxu1 %v3096_v0  ;;  %v3286_v55 = vld [vmem:[%s4835_s2 + $0xb8] sm:$0x3]  ;;  %v3905_v0 = vld [vmem:[#allocation2 + $0x384] sm:$0xf0] }
  0x56   :  { %v3512_v4 = vor.u32 %v3905_v0, %v3511_v63  ;;  %v3862_v63 = vld [vmem:[#allocation2 + $0x22c] sm:$0xf0] }
  0x57   :  { %934 = vmatpush.bf16.msra.mxu0 %v3060_v6  ;;  %v3475_v6 = vld [vmem:[#allocation2 + $0x32c] sm:$0xf] }
  0x59   :  { %956 = vmatpush.bf16.msra.mxu3 %v3176_v1  ;;  %986 = vmatpush.bf16.msra.mxu1 %v3068_v9  ;;  %v3503_v1 = vld [vmem:[#allocation2 + $0x364] sm:$0xf]  ;;  %v3897_v9 = vld [vmem:[#allocation2 + $0x344] sm:$0xf0] }
  0x5a   :  { %935 = vmatmul.bf16.vlgmr.msra.gmra.mxu0 %v4248_v46  ;;  %v3504_v5 = vor.u32 %v3904_v2, %v3503_v1  ;;  %v3880_v1 = vld [vmem:[#allocation2 + $0x2c0] sm:$0xf]  ;;  %v3421_v2 = vld [vmem:[#allocation2 + $0x2d8] sm:$0xf0] }
  0x5b   :  { %1005 = vmatpush.bf16.msrb.mxu0 %v3268_v11  ;;  %3273 = vmatmul.msk.bf16.vlgmr.msrb.gmra.mxu2 %vm821_vm5, %v4237_v24  ;;  %v3476_v11 = vor.u32 %v3897_v9, %v3475_v6  ;;  %v3307_v9 = vld [vmem:[#allocation2 + $0x1dc] sm:$0xf] }
  0x5c   :  { %987 = vmatmul.bf16.vlgmr.msra.gmra.mxu1 %v4248_v46  ;;  %3291 = vmatpush.msk.msrb.mxu2 %vm259_vm1, %v3284_v21  ;;  %v3448_v21 = vor.u32 %v3890_v16, %v3447_v15  ;;  %v3393_v15 = vld [vmem:[#allocation2 + $0x2a0] sm:$0xf0] }
  0x5d   :  { %957 = vmatpush.bf16.msra.mxu3 %v3148_v10  ;;  %3293 = vmatpush.msk.msrb.mxu1 %vm259_vm1, %v3285_v36  ;;  %v3484_v10 = vor.u32 %v3898_v8, %v3483_v7  ;;  %v3391_v36 = vld [vmem:[#allocation2 + $0x284] sm:$0xf]  ;;  %v3856_v8 = vld [vmem:[#allocation2 + $0x1fc] sm:$0xf0] }
  0x5e   :  { %1105 = vmatpush.msrb.mxu2 %v3277_v27  ;;  %v3883_v27 = vld [vmem:[#allocation2 + $0x2d4] sm:$0xf0]  ;;  %v3315_v7 = vld [vmem:[#allocation2 + $0x1e4] sm:$0xf] }
  0x5f   :  { %1006 = vmatpush.bf16.msrb.mxu0 %v3240_v18  ;;  %1125 = vmatpush.msrb.mxu1 %v3278_v37  ;;  %v3289_v18 = vld [vmem:[%s4835_s2 + $0xd0] sm:$0x3]  ;;  %v3420_v33 = vor.u32 %v3883_v27, %v3419_v26  ;;  %v3876_v37 = vld [vmem:[#allocation2 + $0x29c] sm:$0xf0]  ;;  %v3907_v26 = vld [vmem:[#allocation2 + $0x394] sm:$0xf0] }
  0x61   :  { %958 = vmatpush.bf16.msra.mxu3 %v3120_v17  ;;  %3299 = vmatpush.msk.msra.mxu1 %vm259_vm1, %v3288_v50  ;;  %v3283_v17 = vld [vmem:[%s4835_s2 + $0xa0] sm:$0xff] }
  0x63   :  { %1007 = vmatpush.bf16.msrb.mxu0 %v3212_v29  ;;  %1185 = vmatpush.msra.mxu1 %v3281_v53  ;;  %v3505_v29 = vld [vmem:[#allocation2 + $0x380] sm:$0xf0]  ;;  %v3449_v53 = vld [vmem:[#allocation2 + $0x310] sm:$0xf0] }
  0x65   :  { %959 = vmatpush.bf16.msra.mxu3 %v3092_v28  ;;  %v3901_v28 = vld [vmem:[#allocation2 + $0x368] sm:$0xf] }
  0x67   :  { %1008 = vmatpush.bf16.msrb.mxu0 %v3184_v39  ;;  %v3894_v39 = vld [vmem:[#allocation2 + $0x330] sm:$0xf] }
  0x69   :  { %960 = vmatpush.bf16.msra.mxu3 %v3064_v38  ;;  %v3508_v38 = vor.u32 %v3901_v28, %v3505_v29  ;;  %v3396_v29 = vor.u32 %v3873_v14, %v3393_v15  ;;  %v3879_v14 = vld [vmem:[#allocation2 + $0x2b4] sm:$0xf0] }
  0x6b   :  { %1009 = vmatpush.bf16.msrb.mxu0 %v3156_v44  ;;  %3274 = vmatmul.msk.bf16.vlgmr.msra.gmra.mxu2 %vm821_vm5, %v4237_v24  ;;  %v3392_v44 = vor.u32 %v3876_v37, %v3391_v36 }
  0x6c   :  { %961 = vmatmul.bf16.vlgmr.msra.gmra.mxu3 %v4248_v46  ;;  %3295 = vmatpush.msk.msra.mxu2 %vm259_vm1, %v3286_v55  ;;  %v1502_v55 = vunpack.c.l.b16 %v4334_v45 }
  0x6d   :  { %1025 = vmatpush.bf16.msrb.mxu3 %v847_v40  ;;  %3294 = vmatmul.msk.f32.vlgmr.msrb.gmra.mxu1 %vm255_vm4, %v4181_v35  ;;  %v3477_v40 = vld [vmem:[#allocation2 + $0x348] sm:$0xf0] }
  0x6e   :  { %1667 = vmatpush.bf16.msrb.mxu1 %v1627_v56  ;;  %1145 = vmatpush.msra.mxu2 %v3279_v59  ;;  %v3480_v50 = vor.u32 %v3894_v39, %v3477_v40  ;;  %v3372_v56 = vor.u32 %v3870_v47, %v3371_v43  ;;  %v3863_v59 = vld [vmem:[#allocation2 + $0x234] sm:$0xf0]  ;;  %v3900_v39 = vld [vmem:[#allocation2 + $0x35c] sm:$0xf0] }
  0x6f   :  { %1010 = vmatpush.bf16.msrb.mxu0 %v3128_v54  ;;  %v1630_v54 = vand.u32 %v1564_v41, %v4174_v32 }
  0x71   :  { %3297 = vmatpush.msk.msra.mxu3 %vm259_vm1, %v3287_v49  ;;  %v3869_v49 = vld [vmem:[#allocation2 + $0x264] sm:$0xf0] }
  0x72   :  { %v3364_v57 = vor.u32 %v3869_v49, %v3363_v48 }
  0x73   :  { %1165 = vmatpush.msra.mxu3 %v3280_v52  ;;  %1011 = vmatpush.bf16.msrb.mxu0 %v3100_v60  ;;  %v3887_v52 = vld [vmem:[#allocation2 + $0x2f8] sm:$0xf]  ;;  %v1504_v60 = vunpack.c.l.b16 %v4338_v51 }
  0x74   :  { %v3452_v0 = vor.u32 %v3887_v52, %v3449_v53  ;;  %v3893_v52 = vld [vmem:[#allocation2 + $0x324] sm:$0xf0] }
  0x75   :  { %3300 = vmatmul.msk.f32.vlgmr.msra.gmra.mxu1 %vm255_vm4, %v4181_v35  ;;  %v1567_v6 = vpack.c.b16 %v1504_v60, %v1504_v60  ;;  %v3519_v60 = vld [vmem:[#allocation2 + $0x374] sm:$0xf] }
  0x76   :  { %1699 = vmatpush.bf16.msra.mxu1 %v3512_v4  ;;  %v3344_v4 = vor.u32 %v3863_v59, %v3343_v58  ;;  %v3852_v58 = vld [vmem:[#allocation2 + $0x1e0] sm:$0xf]  ;;  %v3309_v59 = vld [vmem:[#allocation2 + $0x1f8] sm:$0xf0] }
  0x77   :  { %1012 = vmatpush.bf16.msrb.mxu0 %v3072_v3  ;;  %v1565_v3 = vpack.c.b16 %v1502_v55, %v1502_v55  ;;  %v1639_v23 = vand.u32 %v1567_v6, %v4174_v32  ;;  %v3491_v6 = vld [vmem:[#allocation2 + $0x33c] sm:$0xf] }
  0x79   :  { %v1633_v16 = vand.u32 %v1565_v3, %v4174_v32 }
  0x7a   :  { %1013 = vmatmul.bf16.vlgmr.msrb.gmra.mxu0 %v4248_v46  ;;  %1700 = vmatpush.bf16.msra.mxu1 %v3484_v10  ;;  %v3855_v10 = vld [vmem:[#allocation2 + $0x1f4] sm:$0xf0] }
  0x7b   :  { %1647 = vmatpush.bf16.msra.mxu0 %v3504_v5  ;;  %3292 = vmatmul.msk.f32.vlgmr.msrb.gmra.mxu2 %vm255_vm4, %v4181_v35  ;;  %v3336_v5 = vor.u32 %v3862_v63, %v3335_v62  ;;  %v3906_v63 = vld [vmem:[#allocation2 + $0x38c] sm:$0xf0] }
  0x7c   :  { %3275 = vmatmul.msk.bf16.vlgmr.msrb.gmra.mxu3 %vm821_vm5, %v4237_v24  ;;  %3301 = vmatpush.msk.msrb.mxu2 %vm259_vm1, %v3289_v18  ;;  %v1503_v18 = vunpack.c.h.b16 %v4334_v45  ;;  %v3337_v45 = vld [vmem:[#allocation2 + $0x230] sm:$0xf0] }
  0x7d   :  { %3303 = vmatpush.msk.msrb.mxu3 %vm259_vm1, %v3290_v12  ;;  %3529 = vmatmul.msk.bf16.vlgmr.msrb.gmra.mxu1 %vm821_vm5, %v4237_v24  ;;  %v3902_v12 = vld [vmem:[#allocation2 + $0x370] sm:$0xf] }
  0x7e   :  { %1701 = vmatpush.bf16.msra.mxu1 %v3456_v20  ;;  %1205 = vmatpush.msrb.mxu2 %v3282_v25  ;;  %v3527_v25 = vld [vmem:[#allocation2 + $0x37c] sm:$0xf]  ;;  %v3516_v28 = vor.u32 %v3902_v12, %v3513_v13  ;;  %v1566_v34 = vpack.c.b16 %v1503_v18, %v1503_v18  ;;  %v3373_v18 = vld [vmem:[#allocation2 + $0x270] sm:$0xf0] }
  0x7f   :  { %1648 = vmatpush.bf16.msra.mxu0 %v3476_v11  ;;  %1225 = vmatpush.msrb.mxu3 %v3283_v17  ;;  %v3424_v11 = vor.u32 %v3880_v1, %v3421_v2  ;;  %v3316_v17 = vor.u32 %v3856_v8, %v3315_v7  ;;  %v3528_v36 = vor.u32 %v3907_v26, %v3527_v25  ;;  %v3886_v1 = vld [vmem:[#allocation2 + $0x2ec] sm:$0xf0]  ;;  %v3401_v7 = vld [vmem:[#allocation2 + $0x2a8] sm:$0xf0]  ;;  %v3415_v13 = vld [vmem:[#allocation2 + $0x29c] sm:$0xf] }
  0x80   :  { %v1636_v43 = vand.u32 %v1566_v34, %v4174_v32  ;;  %v3520_v8 = vor.u32 %v3906_v63, %v3519_v60  ;;  %v3416_v25 = vor.u32 %v3879_v14, %v3415_v13  ;;  %v3892_v26 = vld [vmem:[#allocation2 + $0x31c] sm:$0xf0]  ;;  %v3407_v60 = vld [vmem:[#allocation2 + $0x294] sm:$0xf]  ;;  %v3889_v63 = vld [vmem:[#allocation2 + $0x308] sm:$0xf] }
  0x81   :  { %v3860_v34 = vld [vmem:[#allocation2 + $0x220] sm:$0xf]  ;;  %v3871_v13 = vld [vmem:[#allocation2 + $0x274] sm:$0xf0] }
  0x82   :  { %1702 = vmatpush.bf16.msra.mxu1 %v3428_v31  ;;  %v3485_v31 = vld [vmem:[#allocation2 + $0x350] sm:$0xf0] }
  0x83   :  { %1649 = vmatpush.bf16.msra.mxu0 %v3448_v21  ;;  %3296 = vmatmul.msk.f32.vlgmr.msra.gmra.mxu2 %vm255_vm4, %v4181_v35  ;;  %v3308_v21 = vor.u32 %v3855_v10, %v3307_v9  ;;  %v3488_v40 = vor.u32 %v3895_v30, %v3485_v31 }
  0x84   :  { %1673 = vmatpush.bf16.msra.mxu2 %v3508_v38  ;;  %v3499_v38 = vld [vmem:[#allocation2 + $0x344] sm:$0xf] }
  0x85   :  { %v3500_v47 = vor.u32 %v3900_v39, %v3499_v38  ;;  %v1505_v38 = vunpack.c.h.b16 %v4338_v51  ;;  %v3853_v51 = vld [vmem:[#allocation2 + $0x1e8] sm:$0xf] }
  0x86   :  { %1703 = vmatpush.bf16.msra.mxu1 %v3400_v42  ;;  %v3457_v42 = vld [vmem:[#allocation2 + $0x318] sm:$0xf0] }
  0x87   :  { %1650 = vmatpush.bf16.msra.mxu0 %v3420_v33  ;;  %v4343_v61 = vpop.f32.mrf.mxu0  ;;  %v3866_v33 = vld [vmem:[#allocation2 + $0x250] sm:$0xf] }
  0x88   :  { %1674 = vmatpush.bf16.msra.mxu2 %v3480_v50  ;;  %v3368_v41 = vor.u32 %v3866_v33, %v3365_v19  ;;  %v3471_v50 = vld [vmem:[#allocation2 + $0x30c] sm:$0xf]  ;;  %v3387_v33 = vld [vmem:[#allocation2 + $0x264] sm:$0xf]  ;;  %v3872_v19 = vld [vmem:[#allocation2 + $0x27c] sm:$0xf0] }
  0x89   :  { %v3472_v62 = vor.u32 %v3893_v52, %v3471_v50 }
  0x8a   :  { %1704 = vmatpush.bf16.msra.mxu1 %v3372_v56  ;;  %v3881_v56 = vld [vmem:[#allocation2 + $0x2c8] sm:$0xf] }
  0x8b   :  { %1651 = vmatpush.bf16.msra.mxu0 %v3392_v44  ;;  %3302 = vmatmul.msk.f32.vlgmr.msrb.gmra.mxu2 %vm255_vm4, %v4181_v35  ;;  %v3859_v44 = vld [vmem:[#allocation2 + $0x218] sm:$0xf] }
  0x8c   :  { %3298 = vmatmul.msk.f32.vlgmr.msra.gmra.mxu3 %vm255_vm4, %v4181_v35  ;;  %1675 = vmatpush.bf16.msra.mxu2 %v3452_v0  ;;  %v3340_v55 = vor.u32 %v3859_v44, %v3337_v45  ;;  %v3443_v0 = vld [vmem:[#allocation2 + $0x2d4] sm:$0xf]  ;;  %v3896_v44 = vld [vmem:[#allocation2 + $0x340] sm:$0xf]  ;;  %v3493_v45 = vld [vmem:[#allocation2 + $0x358] sm:$0xf0] }
  0x8d   :  { %1693 = vmatpush.bf16.msra.mxu3 %v1630_v54  ;;  %v3444_v9 = vor.u32 %v3886_v1, %v3443_v0  ;;  %v3465_v0 = vld [vmem:[#allocation2 + $0x320] sm:$0xf0] }
  0x8e   :  { %1705 = vmatpush.bf16.msra.mxu1 %v3344_v4  ;;  %v4351_v20 = vpop.f32.mrf.mxu3  ;;  %v4353_v22 = vpop.f32.mrf.mxu2  ;;  %v3312_v4 = vor.u32 %v3852_v58, %v3309_v59  ;;  %v3496_v59 = vor.u32 %v3896_v44, %v3493_v45 }
  0x8f   :  { %1652 = vmatpush.bf16.msra.mxu0 %v3364_v57  ;;  %v4356_v27 = vpop.f32.mrf.mxu0  ;;  %v3429_v57 = vld [vmem:[#allocation2 + $0x2e0] sm:$0xf0] }
  0x90   :  { %1676 = vmatpush.bf16.msra.mxu2 %v3424_v11  ;;  %v3432_v2 = vor.u32 %v3881_v56, %v3429_v57  ;;  %v3899_v11 = vld [vmem:[#allocation2 + $0x354] sm:$0xf0]  ;;  %v3317_v56 = vld [vmem:[#allocation2 + $0x200] sm:$0xf0]  ;;  %v1568_v57 = vpack.c.b16 %v1505_v38, %v1505_v38 }
  0x91   :  { %v3351_v38 = vld [vmem:[#allocation2 + $0x224] sm:$0xf] }
  0x92   :  { %1706 = vmatpush.bf16.msra.mxu1 %v3316_v17  ;;  %v4360_v37 = vpop.f32.mrf.mxu1  ;;  %v3867_v17 = vld [vmem:[#allocation2 + $0x258] sm:$0xf] }
  0x93   :  { %1653 = vmatpush.bf16.msra.mxu0 %v3336_v5  ;;  %v3874_v5 = vld [vmem:[#allocation2 + $0x290] sm:$0xf]  ;;  %v3376_v30 = vor.u32 %v3867_v17, %v3373_v18  ;;  %v3437_v18 = vld [vmem:[#allocation2 + $0x2e8] sm:$0xf0] }
  0x94   :  { %3304 = vmatmul.msk.f32.vlgmr.msrb.gmra.mxu3 %vm255_vm4, %v4181_v35  ;;  %1677 = vmatpush.bf16.msra.mxu2 %v3396_v29  ;;  %v3888_v35 = vld [vmem:[#allocation2 + $0x300] sm:$0xf]  ;;  %v3521_v29 = vld [vmem:[#allocation2 + $0x390] sm:$0xf0]  ;;  %v3882_v17 = vld [vmem:[#allocation2 + $0x2d0] sm:$0xf] }
  0x95   :  { %1719 = vmatpush.bf16.msrb.mxu3 %v1633_v16  ;;  %1707 = vmatmul.bf16.vlgmr.msra.gmra.mxu1 %v4248_v46  ;;  %v3460_v54 = vor.u32 %v3888_v35, %v3457_v42  ;;  %v3404_v16 = vor.u32 %v3874_v5, %v3401_v7  ;;  %v3885_v42 = vld [vmem:[#allocation2 + $0x2e4] sm:$0xf0]  ;;  %v3858_v5 = vld [vmem:[#allocation2 + $0x20c] sm:$0xf0]  ;;  %v1642_v7 = vand.u32 %v1568_v57, %v4174_v32 }
  0x96   :  { %1771 = vmatpush.bf16.msrb.mxu1 %v1639_v23  ;;  %v4367_v49 = vpop.f32.mrf.mxu2  ;;  %v3463_v23 = vld [vmem:[#allocation2 + $0x304] sm:$0xf] }
  0x97   :  { %1654 = vmatpush.bf16.msra.mxu0 %v3308_v21  ;;  %v4365_v48 = vpop.f32.mrf.mxu3  ;;  %v4369_v53 = vpop.f32.mrf.mxu0  ;;  %v3492_v21 = vor.u32 %v3899_v11, %v3491_v6  ;;  %v3464_v39 = vor.u32 %v3892_v26, %v3463_v23  ;;  %v3379_v11 = vld [vmem:[#allocation2 + $0x25c] sm:$0xf] }
  0x98   :  { %1678 = vmatpush.bf16.msra.mxu2 %v3368_v41  ;;  %v3435_v41 = vld [vmem:[#allocation2 + $0x2cc] sm:$0xf] }
  0x99   :  { %v3436_v58 = vor.u32 %v3885_v42, %v3435_v41  ;;  %v3875_v41 = vld [vmem:[#allocation2 + $0x298] sm:$0xf] }
  0x9a   :  { %1655 = vmatmul.bf16.vlgmr.msra.gmra.mxu0 %v4248_v46  ;;  %1803 = vmatpush.bf16.msra.mxu1 %v3528_v36  ;;  %v3345_v36 = vld [vmem:[#allocation2 + $0x238] sm:$0xf0] }
  0x9b   :  { %1725 = vmatpush.bf16.msrb.mxu0 %v3516_v28  ;;  %v4373_v3 = vpop.f32.mrf.mxu1  ;;  %v3903_v28 = vld [vmem:[#allocation2 + $0x378] sm:$0xf]  ;;  %v3348_v52 = vor.u32 %v3860_v34, %v3345_v36  ;;  %v3440_v36 = vor.u32 %v3882_v17, %v3437_v18 }
  0x9c   :  { %3530 = vmatmul.msk.bf16.vlgmr.msra.gmra.mxu3 %vm821_vm5, %v4237_v24  ;;  %1679 = vmatpush.bf16.msra.mxu2 %v3340_v55  ;;  %v3865_v55 = vld [vmem:[#allocation2 + $0x244] sm:$0xf0] }
  0x9d   :  { %1745 = vmatpush.bf16.msra.mxu3 %v1636_v43 }
  0x9e   :  { %1804 = vmatpush.bf16.msra.mxu1 %v3500_v47  ;;  %v4377_v12 = vpop.f32.mrf.mxu2  ;;  %v3388_v47 = vor.u32 %v3872_v19, %v3387_v33  ;;  %v3544_v33 = vld [vmem:[%s4835_s2 + $0x118] sm:$0x3] }
  0x9f   :  { %1726 = vmatpush.bf16.msrb.mxu0 %v3488_v40  ;;  %v4375_v10 = vpop.f32.mrf.mxu3  ;;  %v4379_v15 = vpop.f32.mrf.mxu0  ;;  %v3524_v40 = vor.u32 %v3903_v28, %v3521_v29  ;;  %v1319_v29 = vld [vmem:[#allocation2 + $0x3b4] sm:$0xf] }
  0xa0   :  { %1680 = vmatpush.bf16.msra.mxu2 %v3312_v4  ;;  %v3331_v4 = vld [vmem:[#allocation2 + $0x1f4] sm:$0xf]  ;;  %v1506_v42 = vunpack.c.l.b16 %v1319_v29 }
  0xa1   :  { %v3332_v23 = vor.u32 %v3858_v5, %v3331_v4  ;;  %v3543_v4 = vld [vmem:[%s4835_s2 + $0x110] sm:$0xff]  ;;  %v4423_v5 = vld [vmem:[#allocation2 + $0x578] sm:$0xff] }
  0xa2   :  { %1805 = vmatpush.bf16.msra.mxu1 %v3472_v62  ;;  %v3878_v62 = vld [vmem:[#allocation2 + $0x2ac] sm:$0xf0]  ;;  %v1569_v57 = vpack.c.b16 %v1506_v42, %v1506_v42  ;;  %v4463_v42 = vld [vmem:[%s4833_s0] sm:$0x1] }
  0xa3   :  { %1727 = vmatpush.bf16.msrb.mxu0 %v3460_v54  ;;  %1681 = vmatmul.bf16.vlgmr.msra.gmra.mxu2 %v4248_v46  ;;  %v4382_v31 = vpop.f32.mrf.mxu1  ;;  %v3359_v54 = vld [vmem:[#allocation2 + $0x22c] sm:$0xf]  ;;  %v3408_v6 = vor.u32 %v3878_v62, %v3407_v60 }
  0xa4   :  { %1751 = vmatpush.bf16.msrb.mxu2 %v3520_v8  ;;  %v3360_v1 = vor.u32 %v3865_v55, %v3359_v54  ;;  %v3868_v55 = vld [vmem:[#allocation2 + $0x260] sm:$0xf] }
  0xa5   :  { %3533 = vmatmul.msk.bf16.vlgmr.msrb.gmra.mxu1 %vm821_vm5, %v4237_v24 }
  0xa6   :  { %1806 = vmatpush.bf16.msra.mxu1 %v3444_v9  ;;  %v4387_v43 = vpop.f32.mrf.mxu2  ;;  %v3468_v9 = vor.u32 %v3889_v63, %v3465_v0 }
  0xa7   :  { %1728 = vmatpush.bf16.msrb.mxu0 %v3432_v2  ;;  %v318_v35 = vpop.f32.mrf.mxu3  ;;  %v338_v50 = vpop.f32.mrf.mxu0  ;;  %v3320_v2 = vor.u32 %v3853_v51, %v3317_v56  ;;  %v3381_v51 = vld [vmem:[#allocation2 + $0x278] sm:$0xf0] }
  0xa8   :  { %1752 = vmatpush.bf16.msrb.mxu2 %v3492_v21  ;;  %v428_v8 = vrot.slane %v318_v35, 7  ;;  %v3409_v35 = vld [vmem:[#allocation2 + $0x2b0] sm:$0xf0] }
  0xaa   :  { %1807 = vmatpush.bf16.msra.mxu1 %v3416_v25  ;;  %v429_v25 = vrot.slane %v338_v50, 6  ;;  %v435_v19 = vsel %vm434_vm6, %v4375_v10, %v428_v8  ;;  %v3537_v10 = vld [vmem:[%s4835_s2 + $0xe0] sm:$0xff]  ;;  %v3323_v50 = vld [vmem:[#allocation2 + $0x1ec] sm:$0xf]  ;;  %v3861_v8 = vld [vmem:[#allocation2 + $0x228] sm:$0xf] }
  0xab   :  { %1729 = vmatpush.bf16.msrb.mxu0 %v3404_v16  ;;  %v4392_v14 = vpop.f32.mrf.mxu1 }
  0xac   :  { %3531 = vmatmul.msk.bf16.vlgmr.msrb.gmra.mxu3 %vm821_vm5, %v4237_v24  ;;  %1753 = vmatpush.bf16.msrb.mxu2 %v3464_v39 }
  0xad   :  { %1777 = vmatpush.bf16.msrb.mxu3 %v3524_v40  ;;  %v3864_v40 = vld [vmem:[#allocation2 + $0x23c] sm:$0xf0] }
  0xae   :  { %1808 = vmatpush.bf16.msra.mxu1 %v3388_v47  ;;  %v378_v21 = vpop.f32.mrf.mxu2  ;;  %v3352_v45 = vor.u32 %v3864_v40, %v3351_v38  ;;  %v3412_v47 = vor.u32 %v3875_v41, %v3409_v35  ;;  %v3545_v40 = vld [vmem:[%s4835_s2 + $0x120] sm:$0x3]  ;;  %v3538_v35 = vld [vmem:[%s4835_s2 + $0xe8] sm:$0xff] }
  0xaf   :  { %1730 = vmatpush.bf16.msrb.mxu0 %v3376_v30  ;;  %v358_v16 = vpop.f32.mrf.mxu3  ;;  %v418_v28 = vpop.f32.mrf.mxu0  ;;  %v3380_v30 = vor.u32 %v3871_v13, %v3379_v11  ;;  %v431_v44 = vrot.slane %v378_v21, 4  ;;  %v2299_v11 = vunpack.c.h.b16 %v4423_v5 }
  0xb0   :  { %1754 = vmatpush.bf16.msrb.mxu2 %v3436_v58  ;;  %v430_v26 = vrot.slane %v358_v16, 5  ;;  %v3550_v58 = vld [vmem:[%s4835_s2 + $0x148] sm:$0x3]  ;;  %v433_v63 = vrot.slane %v418_v28, 2  ;;  %v3547_v28 = vld [vmem:[%s4835_s2 + $0x130] sm:$0x3] }
  0xb1   :  { %1778 = vmatpush.bf16.msrb.mxu3 %v3496_v59  ;;  %v4431_v16 = vld [vmem:[#allocation2 + $0x580] sm:$0xff]  ;;  %v2362_v17 = vpack.c.b16 %v2299_v11, %v2299_v11 }
  0xb2   :  { %1809 = vmatpush.bf16.msra.mxu1 %v3360_v1  ;;  %v437_v34 = vsel %vm436_vm7, %v429_v25, %v430_v26  ;;  %v2300_v18 = vunpack.c.l.b16 %v4431_v16  ;;  %v3325_v25 = vld [vmem:[#allocation2 + $0x208] sm:$0xf0] }
  0xb3   :  { %1731 = vmatpush.bf16.msrb.mxu0 %v3348_v52  ;;  %v438_v39 = vsel %vm259_vm1, %v435_v19, %v437_v34  ;;  %v3857_v52 = vld [vmem:[#allocation2 + $0x204] sm:$0xf0]  ;;  %v2428_v29 = vand.u32 %v2362_v17, %v4174_v32  ;;  %v3540_v34 = vld [vmem:[%s4835_s2 + $0xf8] sm:$0xff] }
  0xb4   :  { %1755 = vmatpush.bf16.msrb.mxu2 %v3408_v6  ;;  %v3324_v1 = vor.u32 %v3857_v52, %v3323_v50  ;;  %v3353_v6 = vld [vmem:[#allocation2 + $0x240] sm:$0xf0]  ;;  %v2363_v19 = vpack.c.b16 %v2300_v18, %v2300_v18  ;;  %v3773_v50 = vld [vmem:[#allocation2 + $0x564] sm:$0xf0]  ;;  %v3541_v52 = vld [vmem:[%s4835_s2 + $0x100] sm:$0xff] }
  0xb5   :  { %1779 = vmatpush.bf16.msrb.mxu3 %v3468_v9  ;;  %v4414_v62 = vpop.f32.mrf.mxu1  ;;  %v1645_v9 = vand.u32 %v1569_v57, %v4174_v32  ;;  %v3356_v21 = vor.u32 %v3861_v8, %v3353_v6  ;;  %v3951_v57 = vld [vmem:[#allocation2 + $0x514] sm:$0xf]  ;;  %v3944_v18 = vld [vmem:[#allocation2 + $0x4dc] sm:$0xf] }
  0xb6   :  { %1810 = vmatpush.bf16.msra.mxu1 %v3332_v23  ;;  %v4406_v56 = vpop.f32.mrf.mxu2  ;;  %v3854_v23 = vld [vmem:[#allocation2 + $0x1f0] sm:$0xf]  ;;  %v2431_v41 = vand.u32 %v2363_v19, %v4174_v32  ;;  %v3937_v19 = vld [vmem:[#allocation2 + $0x4a4] sm:$0xf] }
  0xb7   :  { %1732 = vmatpush.bf16.msrb.mxu0 %v3320_v2  ;;  %v398_v54 = vpop.f32.mrf.mxu3  ;;  %v4412_v60 = vpop.f32.mrf.mxu0  ;;  %v3384_v2 = vor.u32 %v3868_v55, %v3381_v51  ;;  %v3328_v38 = vor.u32 %v3854_v23, %v3325_v25  ;;  %v3960_v55 = vld [vmem:[#allocation2 + $0x558] sm:$0xf0]  ;;  %v3946_v25 = vld [vmem:[#allocation2 + $0x4e8] sm:$0xf0] }
  0xb8   :  { %1756 = vmatpush.bf16.msrb.mxu2 %v3380_v30  ;;  %v432_v59 = vrot.slane %v398_v54, 3  ;;  %v3763_v54 = vld [vmem:[#allocation2 + $0x540] sm:$0xf] }
  0xb9   :  { %1780 = vmatpush.bf16.msrb.mxu3 %v3440_v36  ;;  %1811 = vmatmul.bf16.vlgmr.msra.gmra.mxu1 %v4248_v46  ;;  %v3546_v36 = vld [vmem:[%s4835_s2 + $0x128] sm:$0x3] }
  0xba   :  { %1733 = vmatmul.bf16.vlgmr.msrb.gmra.mxu0 %v4248_v46  ;;  %3563 = vmatpush.msk.msrb.mxu1 %vm259_vm1, %v3550_v58  ;;  %v440_v0 = vsel %vm439_vm8, %v431_v44, %v432_v59  ;;  %v3548_v44 = vld [vmem:[%s4835_s2 + $0x138] sm:$0x3]  ;;  %v3764_v59 = vor.u32 %v3960_v55, %v3763_v54  ;;  %v3930_v54 = vld [vmem:[#allocation2 + $0x46c] sm:$0xf]  ;;  %v3661_v55 = vld [vmem:[#allocation2 + $0x484] sm:$0xf0] }
  0xbb   :  { %1797 = vmatpush.bf16.msra.mxu0 %v1642_v7  ;;  %v442_v7 = vsel %vm441_vm9, %v440_v0, %v433_v63  ;;  %v3745_v58 = vld [vmem:[#allocation2 + $0x52c] sm:$0xf0]  ;;  %v2298_v63 = vunpack.c.l.b16 %v4423_v5  ;;  %v3549_v5 = vld [vmem:[%s4835_s2 + $0x140] sm:$0x3] }
  0xbc   :  { %3532 = vmatmul.msk.bf16.vlgmr.msra.gmra.mxu3 %vm821_vm5, %v4237_v24  ;;  %1757 = vmatpush.bf16.msrb.mxu2 %v3352_v45  ;;  %v4429_v13 = vsel %vm443_vm3, %v438_v39, %v442_v7  ;;  %v3539_v39 = vld [vmem:[%s4835_s2 + $0xf0] sm:$0xff]  ;;  %v872_v7 = vadd.f32 %v4406_v56, %v4414_v62  ;;  %v3748_v17 = vor.u32 %v3951_v57, %v3745_v58  ;;  %v3651_v58 = vld [vmem:[#allocation2 + $0x460] sm:$0xf] }
  0xbd   :  { %1781 = vmatpush.bf16.msrb.mxu3 %v3412_v47  ;;  %2023 = vmatpush.msrb.mxu1 %v3543_v4  ;;  %v3958_v47 = vld [vmem:[#allocation2 + $0x54c] sm:$0xf]  ;;  %v3953_v4 = vld [vmem:[#allocation2 + $0x520] sm:$0xf0]  ;;  %v2361_v62 = vpack.c.b16 %v2298_v63, %v2298_v63  ;;  %v3932_v63 = vld [vmem:[#allocation2 + $0x478] sm:$0xf0] }
  0xbe   :  { %v873_v26 = vpop.f32.mrf.mxu2  ;;  %v3776_v51 = vor.u32 %v3958_v47, %v3773_v50 }
  0xbf   :  { %3551 = vmatpush.msk.msrb.mxu0 %vm259_vm1, %v3544_v33  ;;  %v899_v30 = vpop.f32.mrf.mxu0  ;;  %v860_v33 = vpop.f32.mrf.mxu1  ;;  %2491 = vmatpush.bf16.msra.mxu1 %v2428_v29  ;;  %v3542_v26 = vld [vmem:[%s4835_s2 + $0x108] sm:$0xff] }
  0xc0   :  { %1758 = vmatpush.bf16.msrb.mxu2 %v3324_v1  ;;  %v3957_v29 = vld [vmem:[#allocation2 + $0x544] sm:$0xf]  ;;  %v3765_v33 = vld [vmem:[#allocation2 + $0x55c] sm:$0xf0] }
  0xc1   :  { %1903 = vmatpush.msrb.mxu0 %v3537_v10  ;;  %1782 = vmatpush.bf16.msrb.mxu3 %v3384_v2  ;;  %v3735_v2 = vld [vmem:[#allocation2 + $0x508] sm:$0xf] }
  0xc2   :  { %v3736_v56 = vor.u32 %v3953_v4, %v3735_v2 }
  0xc3   :  { %1759 = vmatmul.bf16.vlgmr.msrb.gmra.mxu2 %v4248_v46 }
  0xc4   :  { %1823 = vmatpush.bf16.msra.mxu2 %v1645_v9 }
  0xc5   :  { %1783 = vmatpush.bf16.msrb.mxu3 %v3356_v21  ;;  %v3717_v21 = vld [vmem:[#allocation2 + $0x4f4] sm:$0xf0] }
  0xc6   :  { %v3720_v30 = vor.u32 %v3944_v18, %v3717_v21  ;;  %v3652_v18 = vor.u32 %v3932_v63, %v3651_v58  ;;  %v3567_v63 = vld [vmem:[#allocation2 + $0x3b8] sm:$0xf] }
  0xc7   :  { %v923_v10 = vpop.f32.mrf.mxu0  ;;  %v4470_v45 = vpop.f32.mrf.mxu1 }
  0xc8   :  { %3557 = vmatpush.msk.msrb.mxu2 %vm259_vm1, %v3547_v28 }
  0xc9   :  { %1784 = vmatpush.bf16.msrb.mxu3 %v3328_v38  ;;  %3564 = vmatmul.msk.f32.vlgmr.msrb.gmra.mxu1 %vm255_vm4, %v4463_v42  ;;  %v2425_v38 = vand.u32 %v2361_v62, %v4174_v32 }
  0xca   :  { %3534 = vmatmul.msk.bf16.vlgmr.msra.gmra.mxu0 %vm821_vm5, %v4237_v24  ;;  %1963 = vmatpush.msrb.mxu2 %v3540_v34  ;;  %v3689_v34 = vld [vmem:[#allocation2 + $0x4bc] sm:$0xf0] }
  0xcb   :  { %3555 = vmatpush.msk.msra.mxu0 %vm259_vm1, %v3546_v36  ;;  %2517 = vmatpush.bf16.msrb.mxu1 %v2431_v41  ;;  %v3679_v41 = vld [vmem:[#allocation2 + $0x498] sm:$0xf]  ;;  %v3692_v47 = vor.u32 %v3937_v19, %v3689_v34  ;;  %v3916_v19 = vld [vmem:[#allocation2 + $0x3fc] sm:$0xf] }
  0xcc   :  { %1785 = vmatmul.bf16.vlgmr.msrb.gmra.mxu3 %v4248_v46  ;;  %v3605_v34 = vld [vmem:[#allocation2 + $0x414] sm:$0xf0] }
  0xcd   :  { %1943 = vmatpush.msra.mxu0 %v3539_v39  ;;  %3553 = vmatpush.msk.msra.mxu3 %vm259_vm1, %v3545_v40 }
  0xce   :  { %v910_v1 = vpop.f32.mrf.mxu2 }
  0xcf   :  { %1923 = vmatpush.msra.mxu3 %v3538_v35  ;;  %v884_v0 = vpop.f32.mrf.mxu3  ;;  %v4483_v6 = vadd.f32 %v923_v10, %v910_v1  ;;  %v925_v9 = vpop.f32.mrf.mxu0  ;;  %v3939_v35 = vld [vmem:[#allocation2 + $0x4b0] sm:$0xf0]  ;;  %v3768_v10 = vor.u32 %v3957_v29, %v3765_v33  ;;  %v3961_v1 = vld [vmem:[#allocation2 + $0x560] sm:$0xf0]  ;;  %v3936_v29 = vld [vmem:[#allocation2 + $0x49c] sm:$0xf] }
  0xd0   :  { %v898_v8 = vadd.f32 %v4412_v60, %v884_v0  ;;  %v951_v11 = vpop.f32.mrf.mxu1  ;;  %v3707_v60 = vld [vmem:[#allocation2 + $0x4d0] sm:$0xf]  ;;  %v3680_v57 = vor.u32 %v3939_v35, %v3679_v41  ;;  %v3771_v0 = vld [vmem:[#allocation2 + $0x548] sm:$0xf]  ;;  %v3664_v9 = vor.u32 %v3930_v54, %v3661_v55  ;;  %v3918_v41 = vld [vmem:[#allocation2 + $0x408] sm:$0xf0] }
  0xd1   :  { %3559 = vmatpush.msk.msrb.mxu3 %vm259_vm1, %v3548_v44  ;;  %3790 = vmatmul.msk.bf16.vlgmr.msra.gmra.mxu1 %vm821_vm5, %v4237_v24  ;;  %v3708_v36 = vor.u32 %v3946_v25, %v3707_v60  ;;  %v3950_v44 = vld [vmem:[#allocation2 + $0x50c] sm:$0xf]  ;;  %v1039_v2 = vrot.slane %v4483_v6, 6  ;;  %v3923_v11 = vld [vmem:[#allocation2 + $0x434] sm:$0xf]  ;;  %v3772_v21 = vor.u32 %v3961_v1, %v3771_v0 }
  0xd2   :  { %2523 = vmatpush.bf16.msra.mxu1 %v3776_v51  ;;  %v1038_v23 = vrot.slane %v898_v8, 7  ;;  %v3943_v8 = vld [vmem:[#allocation2 + $0x4d4] sm:$0xf]  ;;  %v3925_v6 = vld [vmem:[#allocation2 + $0x440] sm:$0xf0] }
  0xd3   :  { %1983 = vmatpush.msrb.mxu3 %v3541_v52  ;;  %3535 = vmatmul.msk.bf16.vlgmr.msra.gmra.mxu2 %vm821_vm5, %v4237_v24  ;;  %v3737_v52 = vld [vmem:[#allocation2 + $0x524] sm:$0xf0]  ;;  %v3743_v60 = vld [vmem:[#allocation2 + $0x510] sm:$0xf]  ;;  %v3954_v25 = vld [vmem:[#allocation2 + $0x528] sm:$0xf0] }
  0xd4   :  { %2445 = vmatpush.bf16.msra.mxu2 %v3764_v59  ;;  %v1044_v28 = vsel %vm434_vm6, %v872_v7, %v1038_v23  ;;  %v3740_v7 = vor.u32 %v3950_v44, %v3737_v52  ;;  %v3623_v23 = vld [vmem:[#allocation2 + $0x428] sm:$0xf]  ;;  %v3715_v35 = vld [vmem:[#allocation2 + $0x4d8] sm:$0xf]  ;;  %v2301_v44 = vunpack.c.h.b16 %v4431_v16  ;;  %v3608_v52 = vor.u32 %v3916_v19, %v3605_v34  ;;  %v3653_v54 = vld [vmem:[#allocation2 + $0x47c] sm:$0xf0] }
  0xd5   :  { %v3909_v55 = vld [vmem:[#allocation2 + $0x3c4] sm:$0xf]  ;;  %v3787_v0 = vld [vmem:[#allocation2 + $0x558] sm:$0xf]  ;;  %v3915_v34 = vld [vmem:[#allocation2 + $0x3f4] sm:$0xf] }
  0xd6   :  { %2524 = vmatpush.bf16.msra.mxu1 %v3748_v17  ;;  %v912_v39 = vpop.f32.mrf.mxu2  ;;  %v3633_v17 = vld [vmem:[#allocation2 + $0x44c] sm:$0xf0]  ;;  %v2364_v16 = vpack.c.b16 %v2301_v44, %v2301_v44 }
  0xd7   :  { %v886_v40 = vpop.f32.mrf.mxu3  ;;  %v936_v50 = vpop.f32.mrf.mxu0  ;;  %v3595_v39 = vld [vmem:[#allocation2 + $0x3f0] sm:$0xf] }
  0xd8   :  { %2446 = vmatpush.bf16.msra.mxu2 %v3736_v56  ;;  %v950_v51 = vadd.f32 %v4470_v45, %v936_v50  ;;  %v3709_v45 = vld [vmem:[#allocation2 + $0x4ec] sm:$0xf0]  ;;  %v3929_v50 = vld [vmem:[#allocation2 + $0x464] sm:$0xf] }
  0xd9   :  { %v4501_v59 = vpop.f32.mrf.mxu1 }
  0xda   :  { %3552 = vmatmul.msk.f32.vlgmr.msrb.gmra.mxu0 %vm255_vm4, %v4463_v42  ;;  %2525 = vmatpush.bf16.msra.mxu1 %v3720_v30  ;;  %v1040_v4 = vrot.slane %v950_v51, 5  ;;  %v3636_v30 = vor.u32 %v3923_v11, %v3633_v17  ;;  %v3577_v51 = vld [vmem:[#allocation2 + $0x3dc] sm:$0xf0]  ;;  %v3625_v11 = vld [vmem:[#allocation2 + $0x444] sm:$0xf0] }
  0xdb   :  { %3561 = vmatpush.msk.msrb.mxu0 %vm259_vm1, %v3549_v5 }
  0xdc   :  { %3554 = vmatmul.msk.f32.vlgmr.msra.gmra.mxu3 %vm255_vm4, %v4463_v42  ;;  %2447 = vmatpush.bf16.msra.mxu2 %v3708_v36  ;;  %v1045_v5 = vsel %vm436_vm7, %v1039_v2, %v1040_v4  ;;  %v3624_v36 = vor.u32 %v3925_v6, %v3623_v23  ;;  %v3911_v2 = vld [vmem:[#allocation2 + $0x3d0] sm:$0xf0]  ;;  %v3687_v4 = vld [vmem:[#allocation2 + $0x4a0] sm:$0xf]  ;;  %v3956_v6 = vld [vmem:[#allocation2 + $0x538] sm:$0xf0] }
  0xdd   :  { %2003 = vmatpush.msrb.mxu0 %v3542_v26  ;;  %2465 = vmatpush.bf16.msra.mxu3 %v2425_v38  ;;  %v4508_v56 = vsel %vm259_vm1, %v1044_v28, %v1045_v5  ;;  %v3712_v26 = vor.u32 %v3943_v8, %v3709_v45  ;;  %v3681_v28 = vld [vmem:[#allocation2 + $0x4b4] sm:$0xf0]  ;;  %v3744_v38 = vor.u32 %v3954_v25, %v3743_v60  ;;  %v3922_v45 = vld [vmem:[#allocation2 + $0x42c] sm:$0xf]  ;;  %v3759_v23 = vld [vmem:[#allocation2 + $0x520] sm:$0xf] }
  0xde   :  { %2526 = vmatpush.bf16.msra.mxu1 %v3692_v47  ;;  %v4510_v62 = vpop.f32.mrf.mxu2  ;;  %v3684_v47 = vor.u32 %v3936_v29, %v3681_v28  ;;  %v3656_v8 = vor.u32 %v3929_v50, %v3653_v54  ;;  %v3568_v5 = vor.u32 %v3911_v2, %v3567_v63  ;;  %v3933_v25 = vld [vmem:[#allocation2 + $0x480] sm:$0xf0]  ;;  %v3959_v29 = vld [vmem:[#allocation2 + $0x554] sm:$0xf]  ;;  %v3952_v50 = vld [vmem:[#allocation2 + $0x51c] sm:$0xf] }
  0xdf   :  { %v938_v33 = vpop.f32.mrf.mxu0  ;;  %v3962_v63 = vld [vmem:[#allocation2 + $0x568] sm:$0xf0] }
  0xe0   :  { %2448 = vmatpush.bf16.msra.mxu2 %v3680_v57  ;;  %v3596_v57 = vor.u32 %v3918_v41, %v3595_v39  ;;  %v3628_v33 = vor.u32 %v3922_v45, %v3625_v11  ;;  %v3945_v11 = vld [vmem:[#allocation2 + $0x4e4] sm:$0xf] }
  0xe1   :  { %3791 = vmatmul.msk.bf16.vlgmr.msrb.gmra.mxu1 %vm821_vm5, %v4237_v24  ;;  %v990_v40 = vpop.f32.mrf.mxu1 }
  0xe2   :  { %3556 = vmatmul.msk.f32.vlgmr.msra.gmra.mxu0 %vm255_vm4, %v4463_v42  ;;  %2527 = vmatpush.bf16.msra.mxu1 %v3664_v9  ;;  %v3580_v9 = vor.u32 %v3909_v55, %v3577_v51  ;;  %v3631_v40 = vld [vmem:[#allocation2 + $0x430] sm:$0xf]  ;;  %v3908_v55 = vld [vmem:[#allocation2 + $0x3bc] sm:$0xf]  ;;  %v3569_v51 = vld [vmem:[#allocation2 + $0x3d4] sm:$0xf0] }
  0xe3   :  { %2471 = vmatpush.bf16.msra.mxu0 %v3768_v10  ;;  %3558 = vmatmul.msk.f32.vlgmr.msrb.gmra.mxu2 %vm255_vm4, %v4463_v42  ;;  %v3947_v10 = vld [vmem:[#allocation2 + $0x4f0] sm:$0xf0] }
  0xe4   :  { %3560 = vmatmul.msk.f32.vlgmr.msrb.gmra.mxu3 %vm255_vm4, %v4463_v42  ;;  %2449 = vmatpush.bf16.msra.mxu2 %v3652_v18  ;;  %v3716_v58 = vor.u32 %v3947_v10, %v3715_v35  ;;  %v3731_v35 = vld [vmem:[#allocation2 + $0x4e8] sm:$0xf]  ;;  %v3949_v10 = vld [vmem:[#allocation2 + $0x500] sm:$0xf0] }
  0xe5   :  { %2497 = vmatpush.bf16.msrb.mxu3 %v3772_v21  ;;  %v3659_v21 = vld [vmem:[#allocation2 + $0x468] sm:$0xf] }
  0xe6   :  { %2528 = vmatpush.bf16.msra.mxu1 %v3636_v30  ;;  %v977_v1 = vpop.f32.mrf.mxu2  ;;  %v3781_v30 = vld [vmem:[#allocation2 + $0x56c] sm:$0xf0]  ;;  %v3660_v39 = vor.u32 %v3933_v25, %v3659_v21  ;;  %v3572_v21 = vor.u32 %v3908_v55, %v3569_v51  ;;  %v3955_v25 = vld [vmem:[#allocation2 + $0x530] sm:$0xf0] }
  0xe7   :  { %2472 = vmatpush.bf16.msra.mxu0 %v3740_v7  ;;  %v3940_v7 = vld [vmem:[#allocation2 + $0x4b8] sm:$0xf0]  ;;  %v3784_v41 = vor.u32 %v3959_v29, %v3781_v30  ;;  %v3931_v51 = vld [vmem:[#allocation2 + $0x474] sm:$0xf] }
  0xe8   :  { %2450 = vmatpush.bf16.msra.mxu2 %v3624_v36  ;;  %v3688_v18 = vor.u32 %v3940_v7, %v3687_v4  ;;  %v3597_v36 = vld [vmem:[#allocation2 + $0x40c] sm:$0xf0] }
  0xe9   :  { %2498 = vmatpush.bf16.msrb.mxu3 %v3744_v38  ;;  %v3760_v38 = vor.u32 %v3956_v6, %v3759_v23  ;;  %v3600_v54 = vor.u32 %v3915_v34, %v3597_v36  ;;  %v3751_v6 = vld [vmem:[#allocation2 + $0x518] sm:$0xf]  ;;  %v3935_v34 = vld [vmem:[#allocation2 + $0x490] sm:$0xf0] }
  0xea   :  { %3562 = vmatmul.msk.f32.vlgmr.msrb.gmra.mxu0 %vm255_vm4, %v4463_v42  ;;  %v3963_v42 = vld [vmem:[#allocation2 + $0x570] sm:$0xf0]  ;;  %2529 = vmatpush.bf16.msra.mxu1 %v3608_v52  ;;  %v4523_v60 = vpop.f32.mrf.mxu1  ;;  %v3753_v52 = vld [vmem:[#allocation2 + $0x534] sm:$0xf0] }
  0xeb   :  { %2473 = vmatpush.bf16.msra.mxu0 %v3712_v26  ;;  %v3788_v17 = vor.u32 %v3963_v42, %v3787_v0  ;;  %v2434_v26 = vand.u32 %v2364_v16, %v4174_v32  ;;  %v3603_v0 = vld [vmem:[#allocation2 + $0x3f8] sm:$0xf]  ;;  %v3732_v42 = vor.u32 %v3949_v10, %v3731_v35  ;;  %v3756_v7 = vor.u32 %v3952_v50, %v3753_v52  ;;  %v3703_v16 = vld [vmem:[#allocation2 + $0x4b0] sm:$0xf]  ;;  %v3723_v50 = vld [vmem:[#allocation2 + $0x4e0] sm:$0xf] }
  0xec   :  { %3789 = vmatmul.msk.bf16.vlgmr.msra.gmra.mxu3 %vm821_vm5, %v4237_v24  ;;  %2451 = vmatpush.bf16.msra.mxu2 %v3596_v57  ;;  %v2116_v57 = vld [vmem:[#allocation2 + $0x588] sm:$0xff]  ;;  %v3752_v10 = vor.u32 %v3955_v25, %v3751_v6 }
  0xed   :  { %2499 = vmatpush.bf16.msrb.mxu3 %v3716_v58  ;;  %v3779_v58 = vld [vmem:[#allocation2 + $0x550] sm:$0xf]  ;;  %v2302_v45 = vunpack.c.l.b16 %v2116_v57  ;;  %v2303_v35 = vunpack.c.h.b16 %v2116_v57  ;;  %v3619_v25 = vld [vmem:[#allocation2 + $0x408] sm:$0xf] }
  0xee   :  { %2530 = vmatpush.bf16.msra.mxu1 %v3580_v9  ;;  %v1001_v44 = vpop.f32.mrf.mxu2  ;;  %v3919_v9 = vld [vmem:[#allocation2 + $0x410] sm:$0xf0]  ;;  %v3780_v23 = vor.u32 %v3962_v63, %v3779_v58  ;;  %v3669_v58 = vld [vmem:[#allocation2 + $0x48c] sm:$0xf0] }
  0xef   :  { %2474 = vmatpush.bf16.msra.mxu0 %v3684_v47  ;;  %v962_v28 = vpop.f32.mrf.mxu3  ;;  %v3926_v47 = vld [vmem:[#allocation2 + $0x448] sm:$0xf0]  ;;  %v3604_v29 = vor.u32 %v3919_v9, %v3603_v0  ;;  %v2366_v57 = vpack.c.b16 %v2303_v35, %v2303_v35  ;;  %v1237_v0 = vrot.slane %v4523_v60, 7  ;;  %v3672_v9 = vor.u32 %v3931_v51, %v3669_v58  ;;  %v3924_v60 = vld [vmem:[#allocation2 + $0x43c] sm:$0xf] }
  0xf0   :  { %v976_v19 = vadd.f32 %v4510_v62, %v962_v28  ;;  %2452 = vmatpush.bf16.msra.mxu2 %v3568_v5  ;;  %v1002_v62 = vadd.f32 %v1001_v44, %v4501_v59  ;;  %v3632_v4 = vor.u32 %v3926_v47, %v3631_v40  ;;  %v3942_v59 = vld [vmem:[#allocation2 + $0x4c8] sm:$0xf0]  ;;  %v3575_v28 = vld [vmem:[#allocation2 + $0x3c0] sm:$0xf]  ;;  %v3591_v35 = vld [vmem:[#allocation2 + $0x3d0] sm:$0xf] }
  0xf1   :  { %2500 = vmatpush.bf16.msrb.mxu3 %v3688_v18  ;;  %2531 = vmatmul.bf16.vlgmr.msra.gmra.mxu1 %v4248_v46  ;;  %v3938_v40 = vld [vmem:[#allocation2 + $0x4ac] sm:$0xf]  ;;  %v2117_v58 = vld [vmem:[#allocation2 + $0x590] sm:$0xf] }
  0xf2   :  { %2601 = vmatpush.bf16.msrb.mxu1 %v3788_v17  ;;  %v1041_v1 = vrot.slane %v976_v19, 4  ;;  %v1042_v2 = vrot.slane %v1002_v62, 3  ;;  %v3725_v17 = vld [vmem:[#allocation2 + $0x4fc] sm:$0xf0]  ;;  %v3675_v19 = vld [vmem:[#allocation2 + $0x478] sm:$0xf] }
  0xf3   :  { %2475 = vmatpush.bf16.msra.mxu0 %v3656_v8  ;;  %2453 = vmatmul.bf16.vlgmr.msra.gmra.mxu2 %v4248_v46  ;;  %v4530_v8 = vpop.f32.mrf.mxu1  ;;  %v3676_v44 = vor.u32 %v3935_v34, %v3675_v19  ;;  %v3667_v19 = vld [vmem:[#allocation2 + $0x470] sm:$0xf] }
  0xf4   :  { %2543 = vmatpush.bf16.msrb.mxu2 %v2434_v26  ;;  %v4533_v5 = vsel %vm439_vm8, %v1041_v1, %v1042_v2  ;;  %v3704_v26 = vor.u32 %v3942_v59, %v3703_v16  ;;  %v3928_v1 = vld [vmem:[#allocation2 + $0x458] sm:$0xf0]  ;;  %v3695_v16 = vld [vmem:[#allocation2 + $0x4a8] sm:$0xf]  ;;  %v3941_v59 = vld [vmem:[#allocation2 + $0x4c0] sm:$0xf0] }
  0xf5   :  { %2501 = vmatpush.bf16.msrb.mxu3 %v3660_v39  ;;  %v2365_v39 = vpack.c.b16 %v2302_v45, %v2302_v45  ;;  %v240_v2 = vld [vmem:[%s4837_s4] ss:$4 sm:$0x7f] }
  0xf6   :  { %2602 = vmatpush.bf16.msrb.mxu1 %v3760_v38  ;;  %v1003_v36 = vpop.f32.mrf.mxu2  ;;  %v3912_v38 = vld [vmem:[#allocation2 + $0x3d8] sm:$0xf0] }
  0xf7   :  { %2476 = vmatpush.bf16.msra.mxu0 %v3628_v33  ;;  %v964_v18 = vpop.f32.mrf.mxu3  ;;  %v1014_v30 = vpop.f32.mrf.mxu0  ;;  %v3728_v33 = vor.u32 %v3945_v11, %v3725_v17  ;;  %v3576_v47 = vor.u32 %v3912_v38, %v3575_v28  ;;  %v2437_v55 = vand.u32 %v2365_v39, %v4174_v32  ;;  %v3917_v39 = vld [vmem:[#allocation2 + $0x404] sm:$0xf] }
  0xf8   :  { %2575 = vmatpush.bf16.msra.mxu2 %v3784_v41  ;;  %v3697_v41 = vld [vmem:[#allocation2 + $0x4c4] sm:$0xf0]  ;;  %v3641_v18 = vld [vmem:[#allocation2 + $0x454] sm:$0xf0] }
  0xf9   :  { %2502 = vmatpush.bf16.msrb.mxu3 %v3632_v4  ;;  %v3700_v52 = vor.u32 %v3938_v40, %v3697_v41  ;;  %v3644_v34 = vor.u32 %v3924_v60, %v3641_v18 }
  0xfa   :  { %2603 = vmatpush.bf16.msrb.mxu1 %v3732_v42  ;;  %v3647_v42 = vld [vmem:[#allocation2 + $0x440] sm:$0xf] }
  0xfb   :  { %2477 = vmatpush.bf16.msra.mxu0 %v3600_v54  ;;  %v4535_v62 = vpop.f32.mrf.mxu1  ;;  %v3948_v54 = vld [vmem:[#allocation2 + $0x4f8] sm:$0xf0] }
  0xfc   :  { %2576 = vmatpush.bf16.msra.mxu2 %v3756_v7  ;;  %v3724_v7 = vor.u32 %v3948_v54, %v3723_v50  ;;  %v3910_v54 = vld [vmem:[#allocation2 + $0x3cc] sm:$0xf] }
  0xfd   :  { %2503 = vmatpush.bf16.msrb.mxu3 %v3604_v29  ;;  %v446_v29 = vadd.f32 %v4429_v13, %v240_v2  ;;  %v3934_v13 = vld [vmem:[#allocation2 + $0x488] sm:$0xf0]  ;;  %v2304_v2 = vunpack.c.l.b16 %v2117_v58 }
  0xfe   :  { %2604 = vmatpush.bf16.msrb.mxu1 %v3704_v26  ;;  %v1107_v17 = vpop.f32.mrf.mxu2  ;;  %v3921_v26 = vld [vmem:[#allocation2 + $0x420] sm:$0xf0] }
  0xff   :  { %2478 = vmatpush.bf16.msra.mxu0 %v3572_v21  ;;  %v1027_v63 = vpop.f32.mrf.mxu3  ;;  %v1016_v45 = vpop.f32.mrf.mxu0  ;;  %v2440_v21 = vand.u32 %v2366_v57, %v4174_v32  ;;  %v1243_v6 = vsel %vm434_vm6, %v1107_v17, %v1237_v0  ;;  %v3620_v40 = vor.u32 %v3921_v26, %v3619_v25  ;;  %v3913_v17 = vld [vmem:[#allocation2 + $0x3e0] sm:$0xf0]  ;;  %v2367_v60 = vpack.c.b16 %v2304_v2, %v2304_v2 }
 0x100   :  { %2577 = vmatpush.bf16.msra.mxu2 %v3728_v33  ;;  %v1028_v4 = vadd.f32 %v1027_v63, %v1014_v30  ;;  %v3696_v33 = vor.u32 %v3941_v59, %v3695_v16  ;;  %v1240_v16 = vrot.slane %v4530_v8, 4 }
 0x101   :  { %2504 = vmatpush.bf16.msrb.mxu3 %v3576_v47  ;;  %v2443_v26 = vand.u32 %v2367_v60, %v4174_v32 }
 0x102   :  { %2479 = vmatmul.bf16.vlgmr.msra.gmra.mxu0 %v4248_v46  ;;  %2605 = vmatpush.bf16.msrb.mxu1 %v3676_v44  ;;  %v1043_v11 = vrot.slane %v1028_v4, 2  ;;  %v3668_v44 = vor.u32 %v3934_v13, %v3667_v19 }
 0x103   :  { %2549 = vmatpush.bf16.msrb.mxu0 %v3780_v23  ;;  %v3648_v23 = vor.u32 %v3928_v1, %v3647_v42  ;;  %3792 = vmatmul.msk.bf16.vlgmr.msrb.gmra.mxu2 %vm821_vm5, %v4237_v24  ;;  %v1671_v36 = vpop.f32.mrf.mxu1  ;;  %v3611_v42 = vld [vmem:[#allocation2 + $0x400] sm:$0xf]  ;;  %v3920_v1 = vld [vmem:[#allocation2 + $0x418] sm:$0xf0] }
 0x104   :  { %2578 = vmatpush.bf16.msra.mxu2 %v3700_v52  ;;  %v1048_v30 = vsel %vm441_vm9, %v4533_v5, %v1043_v11  ;;  %2505 = vmatmul.bf16.vlgmr.msrb.gmra.mxu3 %v4248_v46  ;;  %v3613_v5 = vld [vmem:[#allocation2 + $0x41c] sm:$0xf0]  ;;  %v3927_v52 = vld [vmem:[#allocation2 + $0x450] sm:$0xf0]  ;;  %v3612_v59 = vor.u32 %v3920_v1, %v3611_v42  ;;  %v3583_v11 = vld [vmem:[#allocation2 + $0x3c8] sm:$0xf] }
 0x105   :  { %2569 = vmatpush.bf16.msra.mxu3 %v2437_v55  ;;  %v1049_v28 = vsel %vm443_vm3, %v4508_v56, %v1048_v30  ;;  %v3639_v56 = vld [vmem:[#allocation2 + $0x438] sm:$0xf]  ;;  %v3616_v47 = vor.u32 %v3917_v39, %v3613_v5  ;;  %v3585_v55 = vld [vmem:[#allocation2 + $0x3e4] sm:$0xf0]  ;;  %v4028_v39 = vmov 0  }
 0x106   :  { %v4553_v38 = vadd.f32 %v1049_v28, %v446_v29  ;;  %2606 = vmatpush.bf16.msrb.mxu1 %v3648_v23  ;;  %v1147_v50 = vpop.f32.mrf.mxu2  ;;  %v3640_v57 = vor.u32 %v3927_v52, %v3639_v56  ;;  %v3588_v63 = vor.u32 %v3910_v54, %v3585_v55  ;;  %v3584_v23 = vor.u32 %v3913_v17, %v3583_v11 }
 0x107   :  { %2550 = vmatpush.bf16.msrb.mxu0 %v3752_v10  ;;  %v1029_v41 = vpop.f32.mrf.mxu3  ;;  %v3914_v10 = vld [vmem:[#allocation2 + $0x3e8] sm:$0xf0]  ;;  %v1238_v0 = vrot.slane %v1147_v50, 6  ;;  %3970 = vset.pattern.permute.xlu0 %v4028_v39 }
 0x108   :  { %2579 = vmatpush.bf16.msra.mxu2 %v3672_v9  ;;  %v3592_v51 = vor.u32 %v3914_v10, %v3591_v35 }
 0x109   :  { %2595 = vmatpush.bf16.msrb.mxu3 %v2440_v21 }
 0x10a   :  { %2607 = vmatpush.bf16.msrb.mxu1 %v3620_v40 }
 0x10b   :  { %2551 = vmatpush.bf16.msrb.mxu0 %v3724_v7 }
 0x10c   :  { %2580 = vmatpush.bf16.msra.mxu2 %v3644_v34 }
 0x10e   :  { %2608 = vmatpush.bf16.msrb.mxu1 %v3592_v51  ;;  %v1207_v45 = vpop.f32.mrf.mxu2 }
 0x10f   :  { %2552 = vmatpush.bf16.msrb.mxu0 %v3696_v33  ;;  %v1167_v4 = vpop.f32.mrf.mxu3  ;;  %v1241_v21 = vrot.slane %v1207_v45, 3 }
 0x110   :  { %2581 = vmatpush.bf16.msra.mxu2 %v3616_v47  ;;  %v1239_v7 = vrot.slane %v1167_v4, 5 }
 0x111   :  { %2609 = vmatmul.bf16.vlgmr.msrb.gmra.mxu1 %v4248_v46  ;;  %v1246_v8 = vsel %vm439_vm8, %v1240_v16, %v1241_v21 }
 0x112   :  { %v1244_v9 = vsel %vm436_vm7, %v1238_v0, %v1239_v7  ;;  %v1708_v25 = vpop.f32.mrf.mxu1 }
 0x113   :  { %2553 = vmatpush.bf16.msrb.mxu0 %v3668_v44  ;;  %v1245_v18 = vsel %vm259_vm1, %v1243_v6, %v1244_v9 }
 0x114   :  { %2582 = vmatpush.bf16.msra.mxu2 %v3588_v63  ;;  %3793 = vmatmul.msk.bf16.vlgmr.msra.gmra.mxu3 %vm821_vm5, %v4237_v24 }
 0x117   :  { %2554 = vmatpush.bf16.msrb.mxu0 %v3640_v57  ;;  %2583 = vmatmul.bf16.vlgmr.msra.gmra.mxu2 %v4248_v46  ;;  %v1656_v29 = vpop.f32.mrf.mxu0  ;;  %v1227_v30 = vpop.f32.mrf.mxu3 }
 0x118   :  { %v1670_v28 = vadd.f32 %v4535_v62, %v1656_v29  ;;  %v1242_v33 = vrot.slane %v1227_v30, 2  ;;  %v2648_v62 = vld [vmem:[%s4840_s7] sm:$0x7]  ;;  %v2652_v29 = vperm.slane %v4553_v38, 2  ;;  %v2653_v30 = vperm.slane %v4553_v38, 3 }
 0x119   :  { %2801 = vperm.xlu0 %3970, %v2648_v62  }
 0x11a   :  { %v1247_v6 = vsel %vm441_vm9, %v1246_v8, %v1242_v33  ;;  %v1710_v34 = vpop.f32.mrf.mxu1 }
 0x11b   :  { %2555 = vmatpush.bf16.msrb.mxu0 %v3612_v59  ;;  %v4567_v19 = vsel %vm443_vm3, %v1245_v18, %v1247_v6  ;;  %v2655_v34 = vperm.slane %v4553_v38, 5 }
 0x11f   :  { %2556 = vmatpush.bf16.msrb.mxu0 %v3584_v23  ;;  %v1658_v36 = vpop.f32.mrf.mxu0  ;;  %v1695_v13 = vpop.f32.mrf.mxu3 }
 0x120   :  { %v2650_v36 = vperm.slane %v4553_v38, 0 }
 0x122   :  { %2557 = vmatmul.bf16.vlgmr.msrb.gmra.mxu0 %v4248_v46  ;;  %v1773_v32 = vpop.f32.mrf.mxu1 }
 0x123   :  { %2621 = vmatpush.bf16.msra.mxu0 %v2443_v26  ;;  %v2651_v26 = vperm.slane %v4553_v38, 1 }
 0x124   :  { %3794 = vmatmul.msk.bf16.vlgmr.msrb.gmra.mxu3 %vm821_vm5, %v4237_v24 }
 0x126   :  { %v1682_v40 = vpop.f32.mrf.mxu2 }
 0x127   :  { %v1697_v5 = vpop.f32.mrf.mxu3  ;;  %v1696_v41 = vadd.f32 %v1695_v13, %v1682_v40  ;;  %v3276_v13 = vld [vmem:[%s4837_s4 + $0x1] ss:$4 sm:$0x7f]  ;;  %v2666_v40 = vmul.f32 %v2652_v29, %v4353_v22 }
 0x128   :  { %v2665_v5 = vmul.f32 %v2651_v26, %v4360_v37 }
 0x129   :  { %v1836_v46 = vrot.slane %v1696_v41, 7  ;;  %v2667_v41 = vmul.f32 %v2653_v30, %v4351_v20 }
 0x12a   :  { %v1775_v35 = vpop.f32.mrf.mxu1 }
 0x12b   :  { %v1842_v10 = vsel %vm434_vm6, %v1670_v28, %v1836_v46  ;;  %v2654_v28 = vperm.slane %v4553_v38, 4  ;;  %v1250_v35 = vadd.f32 %v3276_v13, %v4567_v19  ;;  %v4617_v19 = vmul.f32 %v2653_v30, %v4365_v48 }
 0x12d   :  { %v2668_v46 = vmul.f32 %v2654_v28, %v4369_v53 }
 0x12e   :  { %v1684_v47 = vpop.f32.mrf.mxu2 }
 0x12f   :  { %v1721_v44 = vpop.f32.mrf.mxu3 }
 0x130   :  { %v1722_v56 = vadd.f32 %v1721_v44, %v1708_v25  ;;  %v2669_v44 = vmul.f32 %v2655_v34, %v4382_v31 }
 0x132   :  { %3795 = vmatmul.msk.bf16.vlgmr.msra.gmra.mxu0 %vm821_vm5, %v4237_v24  ;;  %v1837_v63 = vrot.slane %v1722_v56, 6  ;;  %v2664_v56 = vmul.f32 %v2650_v36, %v4343_v61 }
 0x136   :  { %v1812_v54 = vpop.f32.mrf.mxu1 }
 0x137   :  { %v1734_v50 = vpop.f32.mrf.mxu0  ;;  %v1723_v52 = vpop.f32.mrf.mxu3 }
 0x138   :  { %v4611_v52 = vmul.f32 %v2651_v26, %v4373_v3 }
 0x13e   :  { %v1814_v58 = vpop.f32.mrf.mxu1 }
 0x13f   :  { %v1736_v55 = vpop.f32.mrf.mxu0  ;;  %v1747_v51 = vpop.f32.mrf.mxu3 }
 0x140   :  { %v1748_v57 = vadd.f32 %v1747_v51, %v1734_v50  ;;  %v4608_v50 = vmul.f32 %v2650_v36, %v4356_v27  ;;  %v4614_v55 = vmul.f32 %v2652_v29, %v4367_v49  ;;  %v4620_v51 = vmul.f32 %v2654_v28, %v4379_v15 }
 0x142   :  { %v1838_v0 = vrot.slane %v1748_v57, 5 }
 0x144   :  { %v1843_v1 = vsel %vm436_vm7, %v1837_v63, %v1838_v0 }
 0x145   :  { %v1844_v24 = vsel %vm259_vm1, %v1842_v10, %v1843_v1 }
 0x146   :  { %v1760_v2 = vpop.f32.mrf.mxu2  ;;  %v4580_v16 = vpop.f32.mrf.mxu1 }
 0x147   :  { %v1799_v42 = vpop.f32.mrf.mxu0  ;;  %v1749_v4 = vpop.f32.mrf.mxu3  ;;  %v1774_v7 = vadd.f32 %v1773_v32, %v1760_v2  ;;  %v2656_v32 = vperm.slane %v4553_v38, 6  ;;  %v2040_v57 = vrot.slane %v4580_v16, 2 }
 0x149   :  { %v1839_v60 = vrot.slane %v1774_v7, 4  ;;  %v2670_v47 = vmul.f32 %v2656_v32, %v4377_v12  ;;  %v4628_v1 = vmul.f32 %v2656_v32, %v4387_v43 }
 0x14e   :  { %v1762_v9 = vpop.f32.mrf.mxu2  ;;  %v4582_v17 = vpop.f32.mrf.mxu1 }
 0x14f   :  { %v1801_v59 = vpop.f32.mrf.mxu0  ;;  %v1786_v45 = vpop.f32.mrf.mxu3 }
 0x150   :  { %v1800_v11 = vadd.f32 %v1799_v42, %v1786_v45  ;;  %v4625_v42 = vmul.f32 %v2655_v34, %v4392_v14 }
 0x152   :  { %v1840_v18 = vrot.slane %v1800_v11, 3 }
 0x154   :  { %v1845_v8 = vsel %vm439_vm8, %v1839_v60, %v1840_v18 }
 0x156   :  { %v1825_v23 = vpop.f32.mrf.mxu2  ;;  %v2495_v6 = vpop.f32.mrf.mxu1 }
 0x157   :  { %v1905_v21 = vpop.f32.mrf.mxu0  ;;  %v1788_v25 = vpop.f32.mrf.mxu3  ;;  %v1826_v33 = vadd.f32 %v1825_v23, %v1812_v54 }
 0x159   :  { %v1841_v62 = vrot.slane %v1826_v33, 2 }
 0x15b   :  { %v1846_v10 = vsel %vm441_vm9, %v1845_v8, %v1841_v62 }
 0x15c   :  { %v1847_v38 = vsel %vm443_vm3, %v1844_v24, %v1846_v10 }
 0x15d   :  { %v1849_v54 = vadd.f32 %v1847_v38, %v1250_v35 }
 0x15e   :  { %v1827_v63 = vpop.f32.mrf.mxu2  ;;  %v4630_v2 = vpop.f32.mrf.mxu1 }
 0x15f   :  { %v4595_v39 = vpop.f32.mrf.mxu0  ;;  %v1925_v0 = vpop.f32.mrf.mxu3  ;;  %v2673_v4 = vperm.slane %v1849_v54, 1  ;;  %v2674_v7 = vperm.slane %v1849_v54, 2  ;;  %v2675_v59 = vperm.slane %v1849_v54, 3  ;;  %v2676_v9 = vperm.slane %v1849_v54, 4 }
 0x160   :  { %v2036_v58 = vrot.slane %v4595_v39, 6  ;;  %v2035_v24 = vrot.slane %v1925_v0, 7  ;;  %v2677_v45 = vperm.slane %v1849_v54, 5  ;;  %v2672_v11 = vperm.slane %v1849_v54, 0 }
 0x161   :  { %v2678_v60 = vperm.slane %v1849_v54, 6  ;;  %v2687_v18 = vmul.f32 %v2673_v4, %v4360_v37  ;;  %v2688_v8 = vmul.f32 %v2674_v7, %v4353_v22  ;;  %v2689_v23 = vmul.f32 %v2675_v59, %v4351_v20 }
 0x162   :  { %v2041_v16 = vsel %vm434_vm6, %v1905_v21, %v2035_v24  ;;  %v2690_v26 = vmul.f32 %v2676_v9, %v4369_v53  ;;  %v2691_v29 = vmul.f32 %v2677_v45, %v4382_v31  ;;  %v2686_v30 = vmul.f32 %v2672_v11, %v4343_v61 }
 0x163   :  { %v2692_v28 = vmul.f32 %v2678_v60, %v4377_v12  ;;  %v2701_v6 = vrot.slane %v2687_v18, 1  ;;  %v2702_v34 = vrot.slane %v2688_v8, 1  ;;  %v2703_v36 = vrot.slane %v2689_v23, 1 }
 0x164   :  { %v2704_v21 = vrot.slane %v2690_v26, 1  ;;  %v2705_v13 = vrot.slane %v2691_v29, 1  ;;  %v2700_v32 = vrot.slane %v2686_v30, 1  ;;  %v2871_v38 = vmul.f32 %v2672_v11, %v4356_v27 }
 0x165   :  { %v2706_v62 = vrot.slane %v2692_v28, 1  ;;  %v4640_v39 = vadd.f32 %v2701_v6, %v2665_v5  ;;  %v4642_v35 = vadd.f32 %v2702_v34, %v2666_v40  ;;  %v4644_v10 = vadd.f32 %v2703_v36, %v2667_v41 }
 0x166   :  { %v1965_v54 = vpop.f32.mrf.mxu2  ;;  %v4647_v0 = vadd.f32 %v2704_v21, %v2668_v46  ;;  %v4649_v24 = vadd.f32 %v2705_v13, %v2669_v44  ;;  %v4651_v18 = vadd.f32 %v2700_v32, %v2664_v56  ;;  %v2521_v5 = vpop.f32.mrf.mxu1  ;;  %v2872_v40 = vmul.f32 %v2673_v4, %v4373_v3 }
 0x167   :  { %v2005_v25 = vpop.f32.mrf.mxu0  ;;  %v1985_v63 = vpop.f32.mrf.mxu3  ;;  %v4653_v8 = vadd.f32 %v2706_v62, %v2670_v47  ;;  %v2037_v23 = vrot.slane %v1965_v54, 5  ;;  %v2873_v41 = vmul.f32 %v2674_v7, %v4367_v49  ;;  %v2874_v26 = vmul.f32 %v2675_v59, %v4365_v48 }
 0x168   :  { %v2039_v33 = vrot.slane %v2005_v25, 3  ;;  %v2038_v25 = vrot.slane %v1985_v63, 4  ;;  %v2875_v11 = vmul.f32 %v2676_v9, %v4379_v15  ;;  %v2876_v46 = vmul.f32 %v2677_v45, %v4392_v14 }
 0x169   :  { %v2877_v44 = vmul.f32 %v2678_v60, %v4387_v43  ;;  %v2042_v56 = vsel %vm436_vm7, %v2036_v58, %v2037_v23  ;;  %v2885_v29 = vrot.slane %v2871_v38, 1  ;;  %v2886_v30 = vrot.slane %v2872_v40, 1 }
 0x16a   :  { %v2044_v47 = vsel %vm439_vm8, %v2038_v25, %v2039_v33  ;;  %v2043_v28 = vsel %vm259_vm1, %v2041_v16, %v2042_v56  ;;  %v2887_v6 = vrot.slane %v2873_v41, 1  ;;  %v2888_v7 = vrot.slane %v2874_v26, 1 }
 0x16b   :  { %v2045_v4 = vsel %vm441_vm9, %v2044_v47, %v2040_v57  ;;  %v2889_v34 = vrot.slane %v2875_v11, 1  ;;  %v2890_v9 = vrot.slane %v2876_v46, 1  ;;  %v2891_v36 = vrot.slane %v2877_v44, 1 }
 0x16c   :  { %v2046_v59 = vsel %vm443_vm3, %v2043_v28, %v2045_v4  ;;  %v4667_v45 = vadd.f32 %v2885_v29, %v4608_v50  ;;  %v4670_v58 = vadd.f32 %v2886_v30, %v4611_v52  ;;  %v4673_v60 = vadd.f32 %v2887_v6, %v4614_v55 }
 0x16d   :  { %v4676_v16 = vadd.f32 %v2888_v7, %v4617_v19  ;;  %v4679_v57 = vadd.f32 %v2889_v34, %v4620_v51  ;;  %v4682_v33 = vadd.f32 %v2890_v9, %v4625_v42  ;;  %v4685_v21 = vadd.f32 %v2891_v36, %v4628_v1 }
 0x16e   :  { %v2532_v13 = vpop.f32.mrf.mxu1 }
 0x16f   :  { %v2467_v50 = vpop.f32.mrf.mxu3 }
 0x176   :  { %v2454_v32 = vpop.f32.mrf.mxu2  ;;  %v2534_v62 = vpop.f32.mrf.mxu1 }
 0x177   :  { %v2469_v52 = vpop.f32.mrf.mxu3  ;;  %v2468_v5 = vadd.f32 %v2467_v50, %v2454_v32  ;;  %v3536_v32 = vld [vmem:[%s4837_s4 + $0x2] ss:$4 sm:$0x7f]  ;;  %s4029_s4 = smov [#allocation5]  }
 0x178   :  { %s3005_s14 = sshll.u32 %s4029_s4, 4  ;;  %s3006_s14 = int_to_ptr.vmem [resolvable:$true] %s3005_s14 }
 0x17e   :  { %v2456_v55 = vpop.f32.mrf.mxu2 }
 0x17f   :  { %v2480_v38 = vpop.f32.mrf.mxu0  ;;  %v2781_v55 = vrot.slane %v4351_v20, 3 }
 0x180   :  { %v2494_v19 = vadd.f32 %v4582_v17, %v2480_v38  ;;  %v2778_v38 = vrot.slane %v4343_v61, 3 }
 0x182   :  { %v2634_v51 = vrot.slane %v2494_v19, 7  ;;  %v2948_v19 = vrot.slane %v4356_v27, 3 }
 0x184   :  { %v2640_v41 = vsel %vm434_vm6, %v2468_v5, %v2634_v51  ;;  %v2782_v5 = vrot.slane %v4369_v53, 3 }
 0x186   :  { %v2545_v23 = vpop.f32.mrf.mxu2 }
 0x187   :  { %v2482_v54 = vpop.f32.mrf.mxu0  ;;  %v2506_v63 = vpop.f32.mrf.mxu3  ;;  %v2546_v42 = vadd.f32 %v2545_v23, %v2532_v13  ;;  %v2048_v23 = vadd.f32 %v3536_v32, %v2046_v59 }
 0x188   :  { %v2520_v25 = vadd.f32 %v4630_v2, %v2506_v63  ;;  %v2780_v54 = vrot.slane %v4353_v22, 3  ;;  %v2779_v63 = vrot.slane %v4360_v37, 3 }
 0x189   :  { %v2636_v1 = vrot.slane %v2546_v42, 5  ;;  %v2951_v42 = vrot.slane %v4365_v48, 3 }
 0x18a   :  { %v2635_v40 = vrot.slane %v2520_v25, 6 }
 0x18b   :  { %v4702_v25 = vpop.permute.xlu0 %2801 }
 0x18c   :  { %v2641_v26 = vsel %vm436_vm7, %v2635_v40, %v2636_v1  ;;  %v2950_v40 = vrot.slane %v4367_v49, 3 }
 0x18d   :  { %v2642_v11 = vsel %vm259_vm1, %v2640_v41, %v2641_v26 }
 0x18e   :  { %v2547_v44 = vpop.f32.mrf.mxu2  ;;  %v2610_v56 = vpop.f32.mrf.mxu1 }
 0x18f   :  { %v2508_v46 = vpop.f32.mrf.mxu3  ;;  %v2949_v44 = vrot.slane %v4373_v3, 3 }
 0x190   :  { %v2784_v46 = vrot.slane %v4377_v12, 3 }
 0x196   :  { %v2612_v29 = vpop.f32.mrf.mxu1 }
 0x197   :  { %v2571_v47 = vpop.f32.mrf.mxu3  ;;  %v4716_v29 = vrot.slane %v4702_v25, 5 }
 0x19a   :  { %v2584_v17 = vpop.f32.mrf.mxu2 }
 0x19f   :  { %v2558_v30 = vpop.f32.mrf.mxu0  ;;  %v2573_v28 = vpop.f32.mrf.mxu3 }
 0x1a0   :  { %v2572_v6 = vadd.f32 %v2571_v47, %v2558_v30  ;;  %v2783_v47 = vrot.slane %v4382_v31, 3  ;;  %v4719_v30 = vrot.slane %v4702_v25, 2 }
 0x1a2   :  { %v2586_v4 = vpop.f32.mrf.mxu2  ;;  %v2637_v36 = vrot.slane %v2572_v6, 4 }
 0x1a7   :  { %v2560_v2 = vpop.f32.mrf.mxu0  ;;  %v2597_v7 = vpop.f32.mrf.mxu3 }
 0x1a8   :  { %v2598_v34 = vadd.f32 %v2597_v7, %v2584_v17 }
 0x1aa   :  { %v2638_v50 = vrot.slane %v2598_v34, 3 }
 0x1ac   :  { %v2643_v52 = vsel %vm439_vm8, %v2637_v36, %v2638_v50 }
 0x1af   :  { %v2623_v9 = vpop.f32.mrf.mxu0  ;;  %v2599_v41 = vpop.f32.mrf.mxu3 }
 0x1b0   :  { %v2624_v13 = vadd.f32 %v2623_v9, %v2610_v56  ;;  %v2831_v9 = vlaneseq }
 0x1b2   :  { %v2639_v62 = vrot.slane %v2624_v13, 2  ;;  %vm4755_vm10 = vcmp.lt.s32.totalorder %v2831_v9, 778 }
 0x1b4   :  { %v2644_v51 = vsel %vm441_vm9, %v2643_v52, %v2639_v62 }
 0x1b5   :  { %v2645_v1 = vsel %vm443_vm3, %v2642_v11, %v2644_v51 }
 0x1b6   :  { %v4711_v59 = vadd.f32 %v2645_v1, %v2048_v23 }
 0x1b7   :  { %v2625_v17 = vpop.f32.mrf.mxu0 }
 0x1b8   :  { %v2723_v11 = vperm.slane %v4711_v59, 1  ;;  %v2724_v28 = vperm.slane %v4711_v59, 2  ;;  %v2725_v4 = vperm.slane %v4711_v59, 3  ;;  %v2726_v2 = vperm.slane %v4711_v59, 4 }
 0x1b9   :  { %v2727_v6 = vperm.slane %v4711_v59, 5  ;;  %v2722_v7 = vperm.slane %v4711_v59, 0  ;;  %v2728_v34 = vperm.slane %v4711_v59, 6 }
 0x1ba   :  { %v2737_v36 = vmul.f32 %v2723_v11, %v4360_v37  ;;  %v2738_v50 = vmul.f32 %v2724_v28, %v4353_v22  ;;  %v2739_v13 = vmul.f32 %v2725_v4, %v4351_v20  ;;  %v2740_v32 = vmul.f32 %v2726_v2, %v4369_v53 }
 0x1bb   :  { %v2741_v52 = vmul.f32 %v2727_v6, %v4382_v31  ;;  %v2736_v62 = vmul.f32 %v2722_v7, %v4343_v61  ;;  %v2742_v23 = vmul.f32 %v2728_v34, %v4377_v12  ;;  %v4742_v37 = vmul.f32 %v2722_v7, %v4356_v27 }
 0x1bc   :  { %v2751_v22 = vrot.slane %v2737_v36, 2  ;;  %v2752_v51 = vrot.slane %v2738_v50, 2  ;;  %v2753_v20 = vrot.slane %v2739_v13, 2  ;;  %v2754_v1 = vrot.slane %v2740_v32, 2 }
 0x1bd   :  { %v2755_v41 = vrot.slane %v2741_v52, 2  ;;  %v2750_v17 = vrot.slane %v2736_v62, 2  ;;  %v2756_v53 = vrot.slane %v2742_v23, 2  ;;  %v4745_v56 = vmul.f32 %v2723_v11, %v4373_v3 }
 0x1be   :  { %v2765_v31 = vadd.f32 %v2751_v22, %v4640_v39  ;;  %v2766_v61 = vadd.f32 %v2752_v51, %v4642_v35  ;;  %v2767_v26 = vadd.f32 %v2753_v20, %v4644_v10  ;;  %v2768_v12 = vadd.f32 %v2754_v1, %v4647_v0 }
 0x1bf   :  { %v2769_v7 = vadd.f32 %v2755_v41, %v4649_v24  ;;  %v2764_v36 = vadd.f32 %v2750_v17, %v4651_v18  ;;  %v2770_v50 = vadd.f32 %v2756_v53, %v4653_v8  ;;  %v2908_v13 = vmul.f32 %v2724_v28, %v4367_v49 }
 0x1c0   :  { %v2793_v32 = vadd.f32 %v2779_v63, %v2765_v31  ;;  %v2794_v52 = vadd.f32 %v2780_v54, %v2766_v61  ;;  %v2795_v11 = vadd.f32 %v2781_v55, %v2767_v26  ;;  %v2796_v62 = vadd.f32 %v2782_v5, %v2768_v12 }
 0x1c1   :  { %v2797_v35 = vadd.f32 %v2783_v47, %v2769_v7  ;;  %v2792_v10 = vadd.f32 %v2778_v38, %v2764_v36  ;;  %v2798_v23 = vadd.f32 %v2784_v46, %v2770_v50  ;;  %v2909_v0 = vmul.f32 %v2725_v4, %v4365_v48 }
 0x1c2   :  { %v2805_v24 = vadd.f32 %v4702_v25, %v2793_v32  ;;  %v2806_v18 = vadd.f32 %v4702_v25, %v2794_v52  ;;  %v2807_v8 = vadd.f32 %v4702_v25, %v2795_v11  ;;  %v2808_v63 = vadd.f32 %v4702_v25, %v2796_v62 }
 0x1c3   :  { %v2809_v55 = vadd.f32 %v4702_v25, %v2797_v35  ;;  %v2839_v54 = vadd.f32 %v4716_v29, %v2793_v32  ;;  %v2840_v5 = vadd.f32 %v4716_v29, %v2794_v52  ;;  %v2841_v26 = vadd.f32 %v4716_v29, %v2795_v11 }
 0x1c4   :  { %v2842_v38 = vadd.f32 %v4716_v29, %v2796_v62  ;;  %v2843_v46 = vadd.f32 %v4716_v29, %v2797_v35  ;;  %v2804_v47 = vadd.f32 %v4702_v25, %v2792_v10  ;;  %v2810_v28 = vadd.f32 %v4702_v25, %v2798_v23 }
 0x1c5   :  { %2853 = vst [vmem:[#allocation1 + $0x9] sm:$0xff] %v2839_v54  ;;  %v2818_v4 = vrot.slane %v2805_v24, 7  ;;  %v2819_v9 = vrot.slane %v2806_v18, 6  ;;  %v2820_v22 = vrot.slane %v2807_v8, 5  ;;  %v2821_v51 = vrot.slane %v2808_v63, 4 }
 0x1c6   :  { %2854 = vst [vmem:[#allocation1 + $0x12] sm:$0xff] %v2840_v5  ;;  %v2822_v20 = vrot.slane %v2809_v55, 3  ;;  %v2823_v1 = vrot.slane %v2810_v28, 2  ;;  %v2838_v41 = vadd.f32 %v4716_v29, %v2792_v10  ;;  %v2844_v17 = vadd.f32 %v4716_v29, %v2798_v23 }
 0x1c7   :  { %2855 = vst [vmem:[#allocation1 + $0x1b] sm:$0xff] %v2841_v26  ;;  %v2824_v53 = vsel %vm434_vm6, %v2804_v47, %v2818_v4  ;;  %v2825_v31 = vsel %vm436_vm7, %v2819_v9, %v2820_v22  ;;  %v2910_v25 = vmul.f32 %v2726_v2, %v4379_v15  ;;  %v2911_v61 = vmul.f32 %v2727_v6, %v4392_v14 }
 0x1c8   :  { %2856 = vst [vmem:[#allocation1 + $0x24] sm:$0xff] %v2842_v38  ;;  %v2826_v12 = vsel %vm259_vm1, %v2824_v53, %v2825_v31  ;;  %v2827_v7 = vsel %vm439_vm8, %v2821_v51, %v2822_v20  ;;  %v2912_v29 = vmul.f32 %v2728_v34, %v4387_v43  ;;  %v2920_v36 = vrot.slane %v4742_v37, 2 }
 0x1c9   :  { %2857 = vst [vmem:[#allocation1 + $0x2d] sm:$0xff] %v2843_v46  ;;  %v2828_v50 = vsel %vm441_vm9, %v2827_v7, %v2823_v1  ;;  %v2921_v2 = vrot.slane %v4745_v56, 2  ;;  %v2922_v32 = vrot.slane %v2908_v13, 2  ;;  %v2923_v52 = vrot.slane %v2909_v0, 2 }
 0x1ca   :  { %v2829_v6 = vsel %vm443_vm3, %v2826_v12, %v2828_v50  ;;  %2852 = vst [vmem:[#allocation1] sm:$0xff] %v2838_v41  ;;  %v2924_v11 = vrot.slane %v2910_v25, 2  ;;  %v2925_v62 = vrot.slane %v2911_v61, 2  ;;  %v2926_v35 = vrot.slane %v2912_v29, 2 }
 0x1cb   :  { %2835 = vst.msk [vmem:[#allocation5] ss:$4 sm:$0x7f] %vm4755_vm10, %v2829_v6  ;;  %v2934_v59 = vadd.f32 %v2920_v36, %v4667_v45  ;;  %v2935_v34 = vadd.f32 %v2921_v2, %v4670_v58  ;;  %v2936_v37 = vadd.f32 %v2922_v32, %v4673_v60  ;;  %v2937_v10 = vadd.f32 %v2923_v52, %v4676_v16 }
 0x1cc   :  { %v2953_v56 = vrot.slane %v4392_v14, 3  ;;  %2858 = vst [vmem:[#allocation1 + $0x36] sm:$0xff] %v2844_v17  ;;  %v2938_v13 = vadd.f32 %v2924_v11, %v4679_v57  ;;  %v2939_v23 = vadd.f32 %v2925_v62, %v4682_v33  ;;  %v2940_v0 = vadd.f32 %v2926_v35, %v4685_v21 }
 0x1cd   :  { %v2962_v24 = vadd.f32 %v2948_v19, %v2934_v59  ;;  %v2963_v45 = vadd.f32 %v2949_v44, %v2935_v34  ;;  %v2964_v58 = vadd.f32 %v2950_v40, %v2936_v37  ;;  %v2965_v60 = vadd.f32 %v2951_v42, %v2937_v10 }
 0x1ce   :  { %v4844_v14 = vrot.slane %v4379_v15, 3  ;;  %v2967_v57 = vadd.f32 %v2953_v56, %v2939_v23  ;;  %v4845_v33 = vrot.slane %v4387_v43, 3 }
 0x1cf   :  { %v2972_v21 = vadd.f32 %v4719_v30, %v2963_v45  ;;  %v2973_v27 = vadd.f32 %v4719_v30, %v2964_v58  ;;  %v2974_v3 = vadd.f32 %v4719_v30, %v2965_v60  ;;  %v2971_v42 = vadd.f32 %v4719_v30, %v2962_v24 }
 0x1d0   :  { %v2966_v16 = vadd.f32 %v4844_v14, %v2938_v13  ;;  %v2968_v18 = vadd.f32 %v4845_v33, %v2940_v0  ;;  %v2976_v49 = vadd.f32 %v4719_v30, %v2967_v57 }
 0x1d1   :  { %v2985_v15 = vrot.slane %v2972_v21, 7  ;;  %v2986_v40 = vrot.slane %v2973_v27, 6  ;;  %v2987_v44 = vrot.slane %v2974_v3, 5 }
 0x1d2   :  { %v2975_v19 = vadd.f32 %v4719_v30, %v2966_v16  ;;  %v2977_v48 = vadd.f32 %v4719_v30, %v2968_v18  ;;  %v2989_v43 = vrot.slane %v2976_v49, 3 }
 0x1d3   :  { %v2860_v55 = vld [vmem:[#allocation1 + $0x4] ss:$9 sm:$0xff]  ;;  %v2991_v54 = vsel %vm434_vm6, %v2971_v42, %v2985_v15  ;;  %v2992_v5 = vsel %vm436_vm7, %v2986_v40, %v2987_v44 }
 0x1d4   :  { %v2988_v8 = vrot.slane %v2975_v19, 4  ;;  %v2990_v63 = vrot.slane %v2977_v48, 2  ;;  %2863 = vst.msk [vmem:[#allocation5 + $0x1] ss:$4 sm:$0x7f] %vm4755_vm10, %v2860_v55  ;;  %v2993_v30 = vsel %vm259_vm1, %v2991_v54, %v2992_v5 }
 0x1d6   :  { %v2994_v26 = vsel %vm439_vm8, %v2988_v8, %v2989_v43 }
 0x1d7   :  { %v2995_v38 = vsel %vm441_vm9, %v2994_v26, %v2990_v63 }
 0x1d8   :  { %v2996_v46 = vsel %vm443_vm3, %v2993_v30, %v2995_v38 }
 0x1d9   :  { %2999 = vst.msk [vmem:[#allocation5 + $0x2] ss:$4 sm:$0x7f] %vm4755_vm10, %v2996_v46 }
 0x1da   :  { %3010 = dma.vmem_to_hbm [thread:$0]  %s3006_s14, 448, %s3008_s16, [#allocation4]  }
 0x1db   :  { %4022 = dma.done.wait [#allocation4], 448  }
 0x1dc   :  { %4023 = vsyncadd [#allocation4], 4294966848 }
 0x1dd   :  { %3015 = vsyncpa [#allocation3], 1 }
 0x1de   :  { %3016 = vsyncpa [#allocation4], 1 }

</bundles_post_ra>
